<compile_context>
chip_gen: v7x
topology: tpu7x:2x2x1
jax: 0.10.0
libtpu: 0.0.40
codegen_flags: <defaults>
</compile_context>

<pallas_src>
import functools

import jax
import jax.numpy as jnp
import numpy as np
from jax import lax
from jax.experimental import pallas as pl
from jax.experimental.pallas import tpu as pltpu

SEQ_LEN = 8
IN_OUT_DIM = 64
CONV_CHANNELS = [IN_OUT_DIM, 16, 8, 4, 2, 1]   # Conv1d stack channel sizes
SLAB_LANES = 16                                # widest conv output channel count
LANE = 128


def _round_up(v, m):
    return (v + m - 1) // m * m


def _cdiv(a, b):
    return (a + b - 1) // b


# ---------------------------------------------------------------------------
# Parameter init (PyTorch layouts) and one-time host-side packing
# ---------------------------------------------------------------------------
def init_params(key, seq_len=SEQ_LEN):
    """Deterministic synthetic parameters matching the PyTorch module shapes."""
    params = {}
    keys = jax.random.split(key, 2 * (len(CONV_CHANNELS) - 1) + 2)
    ki = 0
    for li in range(len(CONV_CHANNELS) - 1):
        i_ch, o_ch = CONV_CHANNELS[li], CONV_CHANNELS[li + 1]
        bound = 1.0 / np.sqrt(i_ch * 3)
        params[f"conv{li}_w"] = jax.random.uniform(
            keys[ki], (o_ch, i_ch, 3), jnp.float32, -bound, bound); ki += 1
        params[f"conv{li}_b"] = jax.random.uniform(
            keys[ki], (o_ch,), jnp.float32, -bound, bound); ki += 1
    bound = 1.0 / np.sqrt(seq_len)
    params["lin_w"] = jax.random.uniform(
        keys[ki], (seq_len, seq_len), jnp.float32, -bound, bound); ki += 1
    params["lin_b"] = jax.random.uniform(
        keys[ki], (seq_len,), jnp.float32, -bound, bound); ki += 1
    return params


def prepare_params(params):
    """One-time packing (hoisted out of the per-call forward path).

    conv_slab : [R, 16] f32 slab containing, at 8-row-aligned offsets:
      * layers 0..3: tap-major stacked conv weights ([3*I, O]) and biases,
      * layer 4 (2->1): the [6, 1] stacked weight REPLICATED to [6, 8] lanes (and
        its bias replicated to 8 lanes) so the last matmul lands the per-frame
        sequence values on lanes without any in-kernel relayout,
      * the 8x8 linear weight stored transposed (W.T) and the linear bias row.
    The slab is F-independent (no more [8F, 8F] block-diagonal weight).
    """
    S = SEQ_LEN
    n_layers = len(CONV_CHANNELS) - 1

    w_offs, off = [], 0
    for li in range(n_layers):
        w_offs.append(off)
        off = _round_up(off + 3 * CONV_CHANNELS[li], 8)
    b_offs = []
    for _ in range(n_layers):
        b_offs.append(off)
        off += 8
    lw_off = off
    off += 8
    blin_off = off
    off += 8

    slab = np.zeros((off, SLAB_LANES), np.float32)
    for li in range(n_layers):
        w = np.asarray(params[f"conv{li}_w"], np.float32)     # [O, I, 3]
        b = np.asarray(params[f"conv{li}_b"], np.float32)     # [O]
        o_ch, i_ch, _ = w.shape
        # Tap-major stacking: rows [d*I:(d+1)*I] hold w[:, :, d].T  -> [3*I, O]
        w_st = np.transpose(w, (2, 1, 0)).reshape(3 * i_ch, o_ch)
        if li == n_layers - 1:
            # o_ch == 1: replicate across 8 lanes (lane-major last-conv output).
            slab[w_offs[li]:w_offs[li] + 3 * i_ch, :S] = np.tile(w_st, (1, S))
            slab[b_offs[li], :S] = np.full((S,), b[0], np.float32)
        else:
            slab[w_offs[li]:w_offs[li] + 3 * i_ch, :o_ch] = w_st
            slab[b_offs[li], :o_ch] = b

    wlin = np.asarray(params["lin_w"], np.float32)            # [S, S] (out x in)
    slab[lw_off:lw_off + S, :S] = wlin.T                      # [s_in, t_out] = W[t, s]
    slab[blin_off, :S] = np.asarray(params["lin_b"], np.float32)

    return {
        "conv_slab": jnp.asarray(slab),
        "w_offs": tuple(int(v) for v in w_offs),
        "b_offs": tuple(int(v) for v in b_offs),
        "lw_off": int(lw_off),
        "blin_off": int(blin_off),
    }


# ---------------------------------------------------------------------------
# Kernel
# ---------------------------------------------------------------------------
def _audio_att_kernel(x_ref, slab_ref, o_ref, *, w_offs, b_offs, lw_off, blin_off):
    """Process one tile of F frames.

    x_ref   : [F, S, C]  f32   (C padded to a multiple of 128 by the wrapper)
    slab_ref: [R, 16]    f32   packed conv/linear weights & biases (resident)
    o_ref   : [F, C]     f32   lane-dense output store
    """
    F, S, C = x_ref.shape
    TM = F * S
    n_layers = len(CONV_CHANNELS) - 1

    x3 = x_ref[...]                                  # [F, S, C]
    y3 = x3[:, :, :IN_OUT_DIM]                       # [F, S, 64]

    def taps_of(y3, i_ch):
        # +/-1 sequence shifts per frame, zero at frame edges; stays inside one
        # 8-sublane tile per frame.  Tap-major concat matches the slab stacking.
        zero = jnp.zeros((F, 1, i_ch), jnp.float32)
        prev = jnp.concatenate([zero, y3[:, :S - 1, :]], axis=1)   # y[t-1]
        nxt = jnp.concatenate([y3[:, 1:, :], zero], axis=1)        # y[t+1]
        taps = jnp.concatenate([prev, y3, nxt], axis=2)            # [F, S, 3*i_ch]
        return taps.reshape(TM, 3 * i_ch)                          # free reshape

    # Conv layers 0..3 (channels 64 -> 16 -> 8 -> 4 -> 2): one matmul per layer.
    for li in range(n_layers - 1):
        i_ch, o_ch = CONV_CHANNELS[li], CONV_CHANNELS[li + 1]
        taps = taps_of(y3, i_ch)
        w = slab_ref[w_offs[li]:w_offs[li] + 3 * i_ch, 0:o_ch]     # [3*i_ch, o_ch]
        b = slab_ref[b_offs[li]:b_offs[li] + 1, 0:o_ch]            # [1, o_ch]
        out = jnp.dot(taps, w, preferred_element_type=jnp.float32) + b
        out = jnp.where(out > 0, out, 0.02 * out)                  # LeakyReLU(0.02)
        y3 = out.reshape(F, S, o_ch)

    # Last conv layer (2 -> 1) with the weight replicated across 8 lanes: every
    # output lane holds the same per-(frame, t) value, i.e. the sequence values
    # are now addressable along lanes with no relayout.
    li = n_layers - 1
    i_ch = CONV_CHANNELS[li]
    taps = taps_of(y3, i_ch)                                       # [TM, 6]
    w = slab_ref[w_offs[li]:w_offs[li] + 3 * i_ch, 0:S]            # [6, 8]
    b = slab_ref[b_offs[li]:b_offs[li] + 1, 0:S]                   # [1, 8]
    v = jnp.dot(taps, w, preferred_element_type=jnp.float32) + b   # [TM, 8]
    v = jnp.where(v > 0, v, 0.02 * v)
    v3 = v.reshape(F, S, S)                                        # v3[f,s,t] = val[f,s]

    # Per-frame Linear(8->8) without any block-diagonal weight:
    #   z[f, t] = sum_s val[f, s] * W[t, s] + b_lin[t]
    wT3 = slab_ref[lw_off:lw_off + S, 0:S].reshape(1, S, S)        # wT3[0,s,t] = W[t,s]
    b_lin = slab_ref[blin_off:blin_off + 1, 0:S]                   # [1, 8]
    z = jnp.sum(v3 * wT3, axis=1) + b_lin                          # [F, 8] (packed)

    # Softmax over the sequence axis, lane-major and packed 8 frames / vreg.
    m = jnp.max(z, axis=-1, keepdims=True)                         # [F, 1]
    e = jnp.exp(z - m)                                             # [F, 8]
    att = e * pl.reciprocal(jnp.sum(e, axis=-1, keepdims=True), approx=False)

    # Weighted sum over the sequence: out[f, :] = sum_s att[f, s] * x[f, s, :].
    att3 = att.reshape(F, S, 1)                                    # [F, 8, 1]
    o_ref[...] = jnp.sum(att3 * x3, axis=1)                        # [F, C] lane-dense


# ---------------------------------------------------------------------------
# Wrappers
# ---------------------------------------------------------------------------
def audio_att_net_batched(x, packed, frames_per_block=None):
    """x: [B, seq_len, c] float32 -> [B, c]  (each frame handled independently)."""
    x = jnp.asarray(x, jnp.float32)
    B, S, C = x.shape
    assert S == SEQ_LEN and C >= IN_OUT_DIM

    # Lane-dense layout: pad channels to a multiple of 128.
    C_pad = max(LANE, _round_up(C, LANE))

    if frames_per_block is None:
        # Big tiles amortize per-step overhead; >= 2 grid steps keeps both v7x
        # TensorCores busy under "parallel"; cap keeps the x tile around 1 MiB.
        F = max(8, min(256, _round_up(_cdiv(B, 2), 8)))
    else:
        F = max(8, _round_up(int(frames_per_block), 8))
    n_tiles = _cdiv(B, F)
    b_pad = n_tiles * F

    if b_pad != B or C_pad != C:
        x = jnp.pad(x, ((0, b_pad - B), (0, 0), (0, C_pad - C)))

    kernel = functools.partial(
        _audio_att_kernel,
        w_offs=packed["w_offs"], b_offs=packed["b_offs"],
        lw_off=packed["lw_off"], blin_off=packed["blin_off"])

    slab = packed["conv_slab"]
    x_tile_bytes = F * S * C_pad * 4
    # Explicit VMEM budget: 2x double-buffered x/out tiles + weights + headroom
    # for in-kernel intermediates; floor at 32 MiB, cap at 64 MiB (v7x physical).
    vmem_limit = int(min(64 * 1024 * 1024,
                         max(32 * 1024 * 1024, 8 * x_tile_bytes)))

    out = pl.pallas_call(
        kernel,
        out_shape=jax.ShapeDtypeStruct((b_pad, C_pad), jnp.float32),
        grid=(n_tiles,),
        in_specs=[
            pl.BlockSpec((F, S, C_pad), lambda i: (i, 0, 0)),
            pl.BlockSpec(slab.shape, lambda i: (0, 0)),   # resident, fetched once
        ],
        out_specs=pl.BlockSpec((F, C_pad), lambda i: (i, 0)),
        compiler_params=pltpu.CompilerParams(
            dimension_semantics=("parallel",),
            vmem_limit_bytes=vmem_limit),
    )(x, slab)
    return out[:B, :C]


def audio_att_net(x, packed):
    """Single-frame forward matching the PyTorch module: [seq_len, c] -> [c]."""
    return audio_att_net_batched(x[None], packed)[0]


# ---------------------------------------------------------------------------
# Pure-JAX reference mirroring the PyTorch code path (NCL conv1d)
# ---------------------------------------------------------------------------
def audio_att_net_ref(x, params):
    y = x[:, :IN_OUT_DIM].T[None]                        # [1, 64, 8]
    for li in range(len(CONV_CHANNELS) - 1):
        w = params[f"conv{li}_w"]                        # [O, I, 3]
        b = params[f"conv{li}_b"]
        y = lax.conv_general_dilated(
            y, w, window_strides=(1,), padding=[(1, 1)],
            dimension_numbers=("NCH", "OIH", "NCH"))
        y = y + b[None, :, None]
        y = jnp.where(y > 0, y, 0.02 * y)
    y = y.reshape(1, SEQ_LEN)                            # [1, 8]
    z = y @ params["lin_w"].T + params["lin_b"][None]    # [1, 8]
    att = jax.nn.softmax(z, axis=1).reshape(SEQ_LEN, 1)  # [8, 1]
    return jnp.sum(att * x, axis=0)                      # [c]


if __name__ == "__main__":
    key = jax.random.PRNGKey(0)
    k_x, k_p = jax.random.split(key)

    B, c = 24, 80                                        # small: 24 frames, c >= 64
    x = jax.random.normal(k_x, (B, SEQ_LEN, c), jnp.float32)
    params = init_params(k_p)
    packed = prepare_params(params)                      # F-independent packing

    # Batched path (B=24 -> F=16, 2 grid steps; exercises frame and lane padding).
    out = jax.block_until_ready(audio_att_net_batched(x, packed))      # [B, c]
    ref = jax.block_until_ready(
        jnp.stack([audio_att_net_ref(x[i], params) for i in range(B)]))
    np.testing.assert_allclose(np.asarray(out), np.asarray(ref), rtol=1e-5, atol=1e-5)

    # Single-frame path (the original module's forward signature).
    out1 = jax.block_until_ready(audio_att_net(x[0], packed))          # [c]
    np.testing.assert_allclose(np.asarray(out1), np.asarray(ref[0]), rtol=1e-5, atol=1e-5)

    print("KERNEL_OK")
</pallas_src>

<mosaic_0001>
module attributes {stable_mosaic.version = 11 : i64} {
  func.func @_audio_att_kernel(%arg0: i32, %arg1: memref<16x8x128xf32, #tpu.memory_space<vmem>>, %arg2: memref<344x16xf32, #tpu.memory_space<vmem>>, %arg3: memref<16x128xf32, #tpu.memory_space<vmem>>) attributes {dimension_semantics = [#tpu.dimension_semantics<parallel>], iteration_bounds = array<i64: 2>, scalar_prefetch = 0 : i64, scratch_operands = 0 : i64, tpu.core_type = #tpu.core_type<tc>, window_params = [{transform_indices = @transform_0, window_bounds = array<i64: 16, 8, 128>}, {pipeline_mode = #tpu.pipeline_mode<synchronous>, transform_indices = @transform_1, window_bounds = array<i64: 344, 16>}, {transform_indices = @transform_2, window_bounds = array<i64: 16, 128>}]} {
    %c0 = arith.constant 0 : index
    %c0_0 = arith.constant 0 : index
    %c0_1 = arith.constant 0 : index
    %0 = vector.load %arg1[%c0, %c0_0, %c0_1] : memref<16x8x128xf32, #tpu.memory_space<vmem>>, vector<16x8x128xf32>
    %1 = vector.extract_strided_slice %0 {offsets = [0, 0, 0], sizes = [16, 8, 64], strides = [1, 1, 1]} : vector<16x8x128xf32> to vector<16x8x64xf32>
    %cst = arith.constant 0.000000e+00 : f32
    %2 = vector.broadcast %cst : f32 to vector<16x1x64xf32>
    %3 = vector.extract_strided_slice %1 {offsets = [0, 0, 0], sizes = [16, 7, 64], strides = [1, 1, 1]} : vector<16x8x64xf32> to vector<16x7x64xf32>
    %4 = tpu.concatenate %2, %3 in 1 : vector<16x1x64xf32>, vector<16x7x64xf32> -> vector<16x8x64xf32>
    %5 = vector.extract_strided_slice %1 {offsets = [0, 1, 0], sizes = [16, 7, 64], strides = [1, 1, 1]} : vector<16x8x64xf32> to vector<16x7x64xf32>
    %6 = tpu.concatenate %5, %2 in 1 : vector<16x7x64xf32>, vector<16x1x64xf32> -> vector<16x8x64xf32>
    %7 = tpu.concatenate %4, %1, %6 in 2 : vector<16x8x64xf32>, vector<16x8x64xf32>, vector<16x8x64xf32> -> vector<16x8x192xf32>
    %8 = vector.shape_cast %7 : vector<16x8x192xf32> to vector<128x192xf32>
    %c0_2 = arith.constant 0 : index
    %c0_3 = arith.constant 0 : index
    %9 = vector.load %arg2[%c0_2, %c0_3] : memref<344x16xf32, #tpu.memory_space<vmem>>, vector<192x16xf32>
    %c288 = arith.constant 288 : index
    %c0_4 = arith.constant 0 : index
    %10 = vector.load %arg2[%c288, %c0_4] : memref<344x16xf32, #tpu.memory_space<vmem>>, vector<1x16xf32>
    %cst_5 = arith.constant dense<0.000000e+00> : vector<128x16xf32>
    %11 = tpu.matmul %8, %9, %cst_5 {dimension_numbers = #tpu.dot_dimension_numbers<[1], [0], [0], [1], [0, 0, 1, 1], [], []>} : vector<128x192xf32>, vector<192x16xf32>, vector<128x16xf32> -> vector<128x16xf32>
    %12 = vector.broadcast %10 : vector<1x16xf32> to vector<128x16xf32>
    %13 = arith.addf %11, %12 : vector<128x16xf32>
    %cst_6 = arith.constant 0.000000e+00 : f32
    %14 = vector.broadcast %cst_6 : f32 to vector<128x16xf32>
    %15 = arith.cmpf ogt, %13, %14 : vector<128x16xf32>
    %cst_7 = arith.constant 2.000000e-02 : f32
    %16 = vector.broadcast %cst_7 : f32 to vector<128x16xf32>
    %17 = arith.mulf %16, %13 : vector<128x16xf32>
    %18 = arith.select %15, %13, %17 : vector<128x16xi1>, vector<128x16xf32>
    %19 = vector.shape_cast %18 : vector<128x16xf32> to vector<16x8x16xf32>
    %cst_8 = arith.constant 0.000000e+00 : f32
    %20 = vector.broadcast %cst_8 : f32 to vector<16x1x16xf32>
    %21 = vector.extract_strided_slice %19 {offsets = [0, 0, 0], sizes = [16, 7, 16], strides = [1, 1, 1]} : vector<16x8x16xf32> to vector<16x7x16xf32>
    %22 = tpu.concatenate %20, %21 in 1 : vector<16x1x16xf32>, vector<16x7x16xf32> -> vector<16x8x16xf32>
    %23 = vector.extract_strided_slice %19 {offsets = [0, 1, 0], sizes = [16, 7, 16], strides = [1, 1, 1]} : vector<16x8x16xf32> to vector<16x7x16xf32>
    %24 = tpu.concatenate %23, %20 in 1 : vector<16x7x16xf32>, vector<16x1x16xf32> -> vector<16x8x16xf32>
    %25 = tpu.concatenate %22, %19, %24 in 2 : vector<16x8x16xf32>, vector<16x8x16xf32>, vector<16x8x16xf32> -> vector<16x8x48xf32>
    %26 = vector.shape_cast %25 : vector<16x8x48xf32> to vector<128x48xf32>
    %c192 = arith.constant 192 : index
    %c0_9 = arith.constant 0 : index
    %27 = vector.load %arg2[%c192, %c0_9] : memref<344x16xf32, #tpu.memory_space<vmem>>, vector<48x8xf32>
    %c296 = arith.constant 296 : index
    %c0_10 = arith.constant 0 : index
    %28 = vector.load %arg2[%c296, %c0_10] : memref<344x16xf32, #tpu.memory_space<vmem>>, vector<1x8xf32>
    %cst_11 = arith.constant dense<0.000000e+00> : vector<128x8xf32>
    %29 = tpu.matmul %26, %27, %cst_11 {dimension_numbers = #tpu.dot_dimension_numbers<[1], [0], [0], [1], [0, 0, 1, 1], [], []>} : vector<128x48xf32>, vector<48x8xf32>, vector<128x8xf32> -> vector<128x8xf32>
    %30 = vector.broadcast %28 : vector<1x8xf32> to vector<128x8xf32>
    %31 = arith.addf %29, %30 : vector<128x8xf32>
    %cst_12 = arith.constant 0.000000e+00 : f32
    %32 = vector.broadcast %cst_12 : f32 to vector<128x8xf32>
    %33 = arith.cmpf ogt, %31, %32 : vector<128x8xf32>
    %cst_13 = arith.constant 2.000000e-02 : f32
    %34 = vector.broadcast %cst_13 : f32 to vector<128x8xf32>
    %35 = arith.mulf %34, %31 : vector<128x8xf32>
    %36 = arith.select %33, %31, %35 : vector<128x8xi1>, vector<128x8xf32>
    %37 = vector.shape_cast %36 : vector<128x8xf32> to vector<16x8x8xf32>
    %cst_14 = arith.constant 0.000000e+00 : f32
    %38 = vector.broadcast %cst_14 : f32 to vector<16x1x8xf32>
    %39 = vector.extract_strided_slice %37 {offsets = [0, 0, 0], sizes = [16, 7, 8], strides = [1, 1, 1]} : vector<16x8x8xf32> to vector<16x7x8xf32>
    %40 = tpu.concatenate %38, %39 in 1 : vector<16x1x8xf32>, vector<16x7x8xf32> -> vector<16x8x8xf32>
    %41 = vector.extract_strided_slice %37 {offsets = [0, 1, 0], sizes = [16, 7, 8], strides = [1, 1, 1]} : vector<16x8x8xf32> to vector<16x7x8xf32>
    %42 = tpu.concatenate %41, %38 in 1 : vector<16x7x8xf32>, vector<16x1x8xf32> -> vector<16x8x8xf32>
    %43 = tpu.concatenate %40, %37, %42 in 2 : vector<16x8x8xf32>, vector<16x8x8xf32>, vector<16x8x8xf32> -> vector<16x8x24xf32>
    %44 = vector.shape_cast %43 : vector<16x8x24xf32> to vector<128x24xf32>
    %c240 = arith.constant 240 : index
    %c0_15 = arith.constant 0 : index
    %45 = vector.load %arg2[%c240, %c0_15] : memref<344x16xf32, #tpu.memory_space<vmem>>, vector<24x4xf32>
    %c304 = arith.constant 304 : index
    %c0_16 = arith.constant 0 : index
    %46 = vector.load %arg2[%c304, %c0_16] : memref<344x16xf32, #tpu.memory_space<vmem>>, vector<1x4xf32>
    %cst_17 = arith.constant dense<0.000000e+00> : vector<128x4xf32>
    %47 = tpu.matmul %44, %45, %cst_17 {dimension_numbers = #tpu.dot_dimension_numbers<[1], [0], [0], [1], [0, 0, 1, 1], [], []>} : vector<128x24xf32>, vector<24x4xf32>, vector<128x4xf32> -> vector<128x4xf32>
    %48 = vector.broadcast %46 : vector<1x4xf32> to vector<128x4xf32>
    %49 = arith.addf %47, %48 : vector<128x4xf32>
    %cst_18 = arith.constant 0.000000e+00 : f32
    %50 = vector.broadcast %cst_18 : f32 to vector<128x4xf32>
    %51 = arith.cmpf ogt, %49, %50 : vector<128x4xf32>
    %cst_19 = arith.constant 2.000000e-02 : f32
    %52 = vector.broadcast %cst_19 : f32 to vector<128x4xf32>
    %53 = arith.mulf %52, %49 : vector<128x4xf32>
    %54 = arith.select %51, %49, %53 : vector<128x4xi1>, vector<128x4xf32>
    %55 = vector.shape_cast %54 : vector<128x4xf32> to vector<16x8x4xf32>
    %cst_20 = arith.constant 0.000000e+00 : f32
    %56 = vector.broadcast %cst_20 : f32 to vector<16x1x4xf32>
    %57 = vector.extract_strided_slice %55 {offsets = [0, 0, 0], sizes = [16, 7, 4], strides = [1, 1, 1]} : vector<16x8x4xf32> to vector<16x7x4xf32>
    %58 = tpu.concatenate %56, %57 in 1 : vector<16x1x4xf32>, vector<16x7x4xf32> -> vector<16x8x4xf32>
    %59 = vector.extract_strided_slice %55 {offsets = [0, 1, 0], sizes = [16, 7, 4], strides = [1, 1, 1]} : vector<16x8x4xf32> to vector<16x7x4xf32>
    %60 = tpu.concatenate %59, %56 in 1 : vector<16x7x4xf32>, vector<16x1x4xf32> -> vector<16x8x4xf32>
    %61 = tpu.concatenate %58, %55, %60 in 2 : vector<16x8x4xf32>, vector<16x8x4xf32>, vector<16x8x4xf32> -> vector<16x8x12xf32>
    %62 = vector.shape_cast %61 : vector<16x8x12xf32> to vector<128x12xf32>
    %c264 = arith.constant 264 : index
    %c0_21 = arith.constant 0 : index
    %63 = vector.load %arg2[%c264, %c0_21] : memref<344x16xf32, #tpu.memory_space<vmem>>, vector<12x2xf32>
    %c312 = arith.constant 312 : index
    %c0_22 = arith.constant 0 : index
    %64 = vector.load %arg2[%c312, %c0_22] : memref<344x16xf32, #tpu.memory_space<vmem>>, vector<1x2xf32>
    %cst_23 = arith.constant dense<0.000000e+00> : vector<128x2xf32>
    %65 = tpu.matmul %62, %63, %cst_23 {dimension_numbers = #tpu.dot_dimension_numbers<[1], [0], [0], [1], [0, 0, 1, 1], [], []>} : vector<128x12xf32>, vector<12x2xf32>, vector<128x2xf32> -> vector<128x2xf32>
    %66 = vector.broadcast %64 : vector<1x2xf32> to vector<128x2xf32>
    %67 = arith.addf %65, %66 : vector<128x2xf32>
    %cst_24 = arith.constant 0.000000e+00 : f32
    %68 = vector.broadcast %cst_24 : f32 to vector<128x2xf32>
    %69 = arith.cmpf ogt, %67, %68 : vector<128x2xf32>
    %cst_25 = arith.constant 2.000000e-02 : f32
    %70 = vector.broadcast %cst_25 : f32 to vector<128x2xf32>
    %71 = arith.mulf %70, %67 : vector<128x2xf32>
    %72 = arith.select %69, %67, %71 : vector<128x2xi1>, vector<128x2xf32>
    %73 = vector.shape_cast %72 : vector<128x2xf32> to vector<16x8x2xf32>
    %cst_26 = arith.constant 0.000000e+00 : f32
    %74 = vector.broadcast %cst_26 : f32 to vector<16x1x2xf32>
    %75 = vector.extract_strided_slice %73 {offsets = [0, 0, 0], sizes = [16, 7, 2], strides = [1, 1, 1]} : vector<16x8x2xf32> to vector<16x7x2xf32>
    %76 = tpu.concatenate %74, %75 in 1 : vector<16x1x2xf32>, vector<16x7x2xf32> -> vector<16x8x2xf32>
    %77 = vector.extract_strided_slice %73 {offsets = [0, 1, 0], sizes = [16, 7, 2], strides = [1, 1, 1]} : vector<16x8x2xf32> to vector<16x7x2xf32>
    %78 = tpu.concatenate %77, %74 in 1 : vector<16x7x2xf32>, vector<16x1x2xf32> -> vector<16x8x2xf32>
    %79 = tpu.concatenate %76, %73, %78 in 2 : vector<16x8x2xf32>, vector<16x8x2xf32>, vector<16x8x2xf32> -> vector<16x8x6xf32>
    %80 = vector.shape_cast %79 : vector<16x8x6xf32> to vector<128x6xf32>
    %c280 = arith.constant 280 : index
    %c0_27 = arith.constant 0 : index
    %81 = vector.load %arg2[%c280, %c0_27] : memref<344x16xf32, #tpu.memory_space<vmem>>, vector<6x8xf32>
    %c320 = arith.constant 320 : index
    %c0_28 = arith.constant 0 : index
    %82 = vector.load %arg2[%c320, %c0_28] : memref<344x16xf32, #tpu.memory_space<vmem>>, vector<1x8xf32>
    %cst_29 = arith.constant dense<0.000000e+00> : vector<128x8xf32>
    %83 = tpu.matmul %80, %81, %cst_29 {dimension_numbers = #tpu.dot_dimension_numbers<[1], [0], [0], [1], [0, 0, 1, 1], [], []>} : vector<128x6xf32>, vector<6x8xf32>, vector<128x8xf32> -> vector<128x8xf32>
    %84 = vector.broadcast %82 : vector<1x8xf32> to vector<128x8xf32>
    %85 = arith.addf %83, %84 : vector<128x8xf32>
    %cst_30 = arith.constant 0.000000e+00 : f32
    %86 = vector.broadcast %cst_30 : f32 to vector<128x8xf32>
    %87 = arith.cmpf ogt, %85, %86 : vector<128x8xf32>
    %cst_31 = arith.constant 2.000000e-02 : f32
    %88 = vector.broadcast %cst_31 : f32 to vector<128x8xf32>
    %89 = arith.mulf %88, %85 : vector<128x8xf32>
    %90 = arith.select %87, %85, %89 : vector<128x8xi1>, vector<128x8xf32>
    %91 = vector.shape_cast %90 : vector<128x8xf32> to vector<16x8x8xf32>
    %c328 = arith.constant 328 : index
    %c0_32 = arith.constant 0 : index
    %92 = vector.load %arg2[%c328, %c0_32] : memref<344x16xf32, #tpu.memory_space<vmem>>, vector<8x8xf32>
    %93 = vector.shape_cast %92 : vector<8x8xf32> to vector<1x8x8xf32>
    %c336 = arith.constant 336 : index
    %c0_33 = arith.constant 0 : index
    %94 = vector.load %arg2[%c336, %c0_33] : memref<344x16xf32, #tpu.memory_space<vmem>>, vector<1x8xf32>
    %95 = vector.broadcast %93 : vector<1x8x8xf32> to vector<16x8x8xf32>
    %96 = arith.mulf %91, %95 : vector<16x8x8xf32>
    %cst_34 = arith.constant dense<0.000000e+00> : vector<16x8xf32>
    %97 = vector.multi_reduction <add>, %96, %cst_34 [1] : vector<16x8x8xf32> to vector<16x8xf32>
    %98 = vector.broadcast %94 : vector<1x8xf32> to vector<16x8xf32>
    %99 = arith.addf %97, %98 : vector<16x8xf32>
    %cst_35 = arith.constant dense<0xFF800000> : vector<16xf32>
    %100 = vector.multi_reduction <maximumf>, %99, %cst_35 [1] : vector<16x8xf32> to vector<16xf32>
    %101 = vector.shape_cast %100 : vector<16xf32> to vector<16x1xf32>
    %102 = vector.broadcast %101 : vector<16x1xf32> to vector<16x8xf32>
    %103 = arith.subf %99, %102 : vector<16x8xf32>
    %104 = math.exp %103 : vector<16x8xf32>
    %cst_36 = arith.constant dense<0.000000e+00> : vector<16xf32>
    %105 = vector.multi_reduction <add>, %104, %cst_36 [1] : vector<16x8xf32> to vector<16xf32>
    %106 = vector.shape_cast %105 : vector<16xf32> to vector<16x1xf32>
    %107 = tpu.reciprocal %106 : vector<16x1xf32> -> vector<16x1xf32>
    %108 = vector.broadcast %107 : vector<16x1xf32> to vector<16x8xf32>
    %109 = arith.mulf %104, %108 : vector<16x8xf32>
    %110 = vector.shape_cast %109 : vector<16x8xf32> to vector<16x8x1xf32>
    %111 = vector.broadcast %110 : vector<16x8x1xf32> to vector<16x8x128xf32>
    %112 = arith.mulf %111, %0 : vector<16x8x128xf32>
    %cst_37 = arith.constant dense<0.000000e+00> : vector<16x128xf32>
    %113 = vector.multi_reduction <add>, %112, %cst_37 [1] : vector<16x8x128xf32> to vector<16x128xf32>
    %c0_38 = arith.constant 0 : index
    %c0_39 = arith.constant 0 : index
    %114 = vector.load %arg3[%c0_38, %c0_39] : memref<16x128xf32, #tpu.memory_space<vmem>>, vector<16x128xf32>
    tpu.vector_store %arg3[%c0_38, %c0_39], %113 {strides = array<i32>} : memref<16x128xf32, #tpu.memory_space<vmem>>, vector<16x128xf32>,
    return
  }
  func.func @transform_0(%arg0: i32) -> (i32, i32, i32) {
    %c0_i32 = arith.constant 0 : i32
    %c0_i32_0 = arith.constant 0 : i32
    %c0_i32_1 = arith.constant 0 : i32
    return %arg0, %c0_i32, %c0_i32_0 : i32, i32, i32
  }
  func.func @transform_1(%arg0: i32) -> (i32, i32) {
    %c0_i32 = arith.constant 0 : i32
    %c0_i32_0 = arith.constant 0 : i32
    %c0_i32_1 = arith.constant 0 : i32
    return %c0_i32, %c0_i32_0 : i32, i32
  }
  func.func @transform_2(%arg0: i32) -> (i32, i32) {
    %c0_i32 = arith.constant 0 : i32
    %c0_i32_0 = arith.constant 0 : i32
    return %arg0, %c0_i32 : i32, i32
  }
}

</mosaic_0001>

<bundles_post_ra>
// kernel: tpu_custom_call.1
= control target key start
LH: loop header
LB: loop body
LE: loop exit
PB: predicated region body
PF: predicated region fallthrough
CT: control target
= control target key end

     0   :  { %7 = vsyncpa [#allocation3], 0  ;;  %s5471_s0 = inlined_call_operand.vmem [shape: f32[32,8,128], index: 0, kind: input, shape index: {}]   ;;  %s5472_s1 = inlined_call_operand.vmem [shape: f32[344,16], index: 1, kind: input, shape index: {}]   ;;  %s5473_s2 = inlined_call_operand.hbm [shape: f32[32,128], index: 2, kind: output, shape index: {}]  }
   0x1   :  { %9 = vsyncpa [#allocation3 + $0x1], 0  ;;  %s3922_s9 = smov 0   ;;  %s3924_s10 = smov 0  }
   0x2   :  { %s3926_s11 = smov 0   ;;  %s3928_s12 = smov 0  }
   0x3 LB: > { %s3943_s13 = sadd.s32 4294967295, %s3895_s12   ;;  %s3372_s14 = sadd.s32 4294967294, %s3895_s12   ;;  %s3895_s12 = sphi %s3928_s12, %s5479_s12   ;;  %s3891_s11 = sphi %s3926_s11, %s5478_s11   ;;  %s3887_s10 = sphi %s3924_s10, %s5477_s10   ;;  %s3883_s9 = sphi %s3922_s9, %s5476_s9  }
   0x4   : > { %s3947_s15 = sadd.s32 1, %s3895_s12   ;;  %s69_s16 = sadd.s32 1, %s3891_s11 }
   0x5   : > { %s66_s17 = ssub.s32 %s3895_s12, %s3947_s15  ;;  %p79_p0 = scmp.ne.s32.totalorder %s3891_s11, %s3887_s10 }
   0x6   : > { %p67_p1 = scmp.eq.s32.totalorder %s66_s17, 0  ;;  %p80_p2 = scmp.eq.s32.totalorder %s3943_s13, 1 }
   0x7   : > { %p85_p3 = scmp.ne.s32.totalorder %s3887_s10, %s3883_s9  ;;  %p86_p4 = scmp.eq.s32.totalorder %s3372_s14, 1 }
   0x8   : > { %s3958_s18 = scalar_select %p67_p1, %s3891_s11, %s69_s16  }
   0x9   : > { %p3960_p5 = por %p80_p2, %p79_p0  ;;  %p3964_p6 = por %p86_p4, %p85_p3 }
   0xa   : > { %p3375_p7 = scmp.ge.s32.totalorder %s3895_s12, 1  ;;  %p116_p8 = scmp.lt.s32.totalorder %s3895_s12, 3 }
   0xc   : > { %p117_p9 = pnand %p3375_p7, %p116_p8 }
   0xd   : > { %s3377_s21 = sshll.u32 (!%p117_p9), %s3943_s13, 4  ;;  %v340_v0 = vld [vmem:[%s5472_s1] sm:$0xff] (!%p117_p9)  ;;  %v341_v1 = vld [vmem:[%s5472_s1 + $0x8] sm:$0xff] (!%p117_p9)  ;;  %v342_v2 = vld [vmem:[%s5472_s1 + $0x10] sm:$0xff] (!%p117_p9)  ;;  %v3897_v3 = vmov (!%p117_p9), 0.0|0.0   ;;  %vm258_vm0 = vcmask (!%p117_p9), 1046528  }
   0xe   : > { %120 = sbr.rel (%p117_p9) target bundleno = 2294 (0x8f6), region = 28  ;;  %p139_p10 = scmp.lt.s32.totalorder (!%p117_p9), %s3377_s21, 31  ;;  %3669 = vmatprep.subr.bf16.mxu0 (!%p117_p9), %v3897_v3  ;;  %v3670_v4 = vpack.c.bf16 (!%p117_p9), %v341_v1, %v340_v0  ;;  %v343_v5 = vld [vmem:[%s5472_s1 + $0x18] sm:$0xff] (!%p117_p9)  ;;  %v344_v7 = vld [vmem:[%s5472_s1 + $0x20] sm:$0xff] (!%p117_p9)  ;;  %v345_v8 = vld [vmem:[%s5472_s1 + $0x28] sm:$0xff] (!%p117_p9)  ;;  %vm323_vm1 = vcmask (!%p117_p9), 523264  }
   0xf   : > { %v3673_v6 = vpack.c.bf16 (!%p117_p9), %v343_v5, %v342_v2  ;;  %v3676_v11 = vpack.c.bf16 (!%p117_p9), %v345_v8, %v344_v7  ;;  %s3898_s16 = smov (!%p117_p9), 64   ;;  %v346_v12 = vld [vmem:[%s5472_s1 + $0x30] sm:$0xff] (!%p117_p9)  ;;  %v347_v13 = vld [vmem:[%s5472_s1 + $0x38] sm:$0xff] (!%p117_p9)  ;;  %v348_v19 = vld [vmem:[%s5472_s1 + $0x40] sm:$0xff] (!%p117_p9)  ;;  %vm209_vm2 = vcmask (!%p117_p9), 1040384   ;;  %s3899_s7 = smov (!%p117_p9), 16  }
  0x10   : > { %3671 = vmatpush1.bf16.msra.mxu0 (!%p117_p9), %v3670_v4  ;;  %v3679_v18 = vpack.c.bf16 (!%p117_p9), %v347_v13, %v346_v12  ;;  %v349_v20 = vld [vmem:[%s5472_s1 + $0x48] sm:$0xff] (!%p117_p9)  ;;  %v350_v24 = vld [vmem:[%s5472_s1 + $0x50] sm:$0xff] (!%p117_p9)  ;;  %v351_v25 = vld [vmem:[%s5472_s1 + $0x58] sm:$0xff] (!%p117_p9)  ;;  %s3900_s8 = smov (!%p117_p9), 32   ;;  %s3901_s27 = smov (!%p117_p9), 8  }
  0x11   : > { %3672 = vmatprep.subr.bf16.mxu0 (!%p117_p9), %v3897_v3  ;;  %v3682_v23 = vpack.c.bf16 (!%p117_p9), %v349_v20, %v348_v19  ;;  %v3685_v28 = vpack.c.bf16 (!%p117_p9), %v351_v25, %v350_v24  ;;  %v352_v29 = vld [vmem:[%s5472_s1 + $0x60] sm:$0xff] (!%p117_p9)  ;;  %v353_v30 = vld [vmem:[%s5472_s1 + $0x68] sm:$0xff] (!%p117_p9)  ;;  %v354_v34 = vld [vmem:[%s5472_s1 + $0x70] sm:$0xff] (!%p117_p9)  ;;  %s135_s29 = sand.u32 (!%p117_p9), 1, %s3887_s10   ;;  %s3905_s17 = smov (!%p117_p9), [#allocation2]  }
  0x12   : > { %v3688_v33 = vpack.c.bf16 (!%p117_p9), %v353_v30, %v352_v29  ;;  %v355_v35 = vld [vmem:[%s5472_s1 + $0x78] sm:$0xff] (!%p117_p9)  ;;  %v356_v39 = vld [vmem:[%s5472_s1 + $0x80] sm:$0xff] (!%p117_p9)  ;;  %v357_v40 = vld [vmem:[%s5472_s1 + $0x88] sm:$0xff] (!%p117_p9)  ;;  %s3376_s30 = sshll.u32 (!%p117_p9), %s135_s29, 4 }
  0x13   : > { %v3691_v38 = vpack.c.bf16 (!%p117_p9), %v355_v35, %v354_v34  ;;  %v3694_v43 = vpack.c.bf16 (!%p117_p9), %v357_v40, %v356_v39  ;;  %v358_v44 = vld [vmem:[%s5472_s1 + $0x90] sm:$0xff] (!%p117_p9)  ;;  %v359_v45 = vld [vmem:[%s5472_s1 + $0x98] sm:$0xff] (!%p117_p9)  ;;  %v360_v49 = vld [vmem:[%s5472_s1 + $0xa0] sm:$0xff] (!%p117_p9)  ;;  %s5403_s3 = scalar_lea.vmem (!%p117_p9), [#allocation2], %s3376_s30 }
  0x14   : > { %3674 = vmatpush1.bf16.msra.mxu0 (!%p117_p9), %v3673_v6  ;;  %v3697_v48 = vpack.c.bf16 (!%p117_p9), %v359_v45, %v358_v44  ;;  %v361_v50 = vld [vmem:[%s5472_s1 + $0xa8] sm:$0xff] (!%p117_p9)  ;;  %v362_v52 = vld [vmem:[%s5472_s1 + $0xb0] sm:$0xff] (!%p117_p9)  ;;  %v363_v53 = vld [vmem:[%s5472_s1 + $0xb8] sm:$0xff] (!%p117_p9)  ;;  %s3310_s4 = sshll.u32 (!%p117_p9), %s5403_s3, 4  ;;  %s5423_s4 = int_to_ptr.vmem [resolvable:$true] %s3310_s4 }
  0x15   : > { %s5481_s21 = smov (!%p139_p10, %s3377_s21), 31  ;;  %3675 = vmatprep.subr.bf16.mxu0 %v3897_v3  ;;  %v3700_v51 = vpack.c.bf16 %v361_v50, %v360_v49  ;;  %v3703_v54 = vpack.c.bf16 %v363_v53, %v362_v52 }
  0x16   : > { %s3378_s6 = sshll.u32 %s5481_s21, 3  ;;  %s3904_s21 = smov 2  }
  0x17   : > { %s3994_s14 = scalar_lea.vmem %s5471_s0, %s3378_s6  ;;  %s3903_s6 = smov 4  }
  0x18   : > { %v3997_v9 = vld [vmem:[%s3994_s14] sm:$0xff]  ;;  %v4000_v10 = vld [vmem:[%s3994_s14 + $0x10] sm:$0xff]  ;;  %v4014_v15 = vld [vmem:[%s3994_s14 + $0x8] sm:$0xff]  ;;  %3677 = vmatpush1.bf16.msra.mxu0 %v3676_v11 }
  0x19   : > { %275 = vrot.lane.b32.xlu0 %v3997_v9, %s3898_s16  ;;  %279 = vrot.lane.b32.xlu1 %v4000_v10, %s3898_s16  ;;  %v226_v14 = vrot.slane %v3997_v9, 1  ;;  %v4017_v16 = vld [vmem:[%s3994_s14 + $0x18] sm:$0xff]  ;;  %v4033_v21 = vld [vmem:[%s3994_s14 + $0x20] sm:$0xff]  ;;  %v177_v55 = vrot.slane %v3997_v9, 7  ;;  %v227_v56 = vrot.slane %v4014_v15, 1  ;;  %v178_v58 = vrot.slane %v4014_v15, 7 }
  0x1a   : > { %v4036_v22 = vld [vmem:[%s3994_s14 + $0x28] sm:$0xff]  ;;  %3678 = vmatprep.subr.bf16.mxu0 %v3897_v3  ;;  %v4050_v26 = vld [vmem:[%s3994_s14 + $0x30] sm:$0xff]  ;;  %v4053_v27 = vld [vmem:[%s3994_s14 + $0x38] sm:$0xff]  ;;  %v228_v61 = vrot.slane %v4000_v10, 1  ;;  %v179_v62 = vrot.slane %v4000_v10, 7  ;;  %v229_v5 = vrot.slane %v4017_v16, 1 }
  0x1b   : > { %v259_v17 = vsel %vm258_vm0, %v226_v14, 0.0  ;;  %v4067_v31 = vld [vmem:[%s3994_s14 + $0x40] sm:$0xff]  ;;  %v4070_v32 = vld [vmem:[%s3994_s14 + $0x48] sm:$0xff]  ;;  %v4084_v36 = vld [vmem:[%s3994_s14 + $0x50] sm:$0xff]  ;;  %v210_v57 = vsel %vm209_vm2, 0.0, %v177_v55  ;;  %v260_v60 = vsel %vm258_vm0, %v227_v56, 0.0 }
  0x1c   : > { %3380 = vmatprep.mubr.msk.f32.mxu0 %vm323_vm1, %v259_v17  ;;  %3680 = vmatpush1.bf16.msra.mxu0 %v3679_v18  ;;  %v4087_v37 = vld [vmem:[%s3994_s14 + $0x58] sm:$0xff]  ;;  %v4101_v41 = vld [vmem:[%s3994_s14 + $0x60] sm:$0xff]  ;;  %v4104_v42 = vld [vmem:[%s3994_s14 + $0x68] sm:$0xff]  ;;  %v211_v0 = vsel %vm209_vm2, 0.0, %v178_v58  ;;  %v212_v4 = vsel %vm209_vm2, 0.0, %v179_v62  ;;  %v180_v6 = vrot.slane %v4017_v16, 7 }
  0x1d   : > { %277 = vrot.lane.b32.xlu0 %v4014_v15, %s3898_s16  ;;  %281 = vrot.lane.b32.xlu1 %v4017_v16, %s3898_s16  ;;  %v4118_v46 = vld [vmem:[%s3994_s14 + $0x70] sm:$0xff]  ;;  %v4121_v47 = vld [vmem:[%s3994_s14 + $0x78] sm:$0xff]  ;;  %v262_v10 = vsel %vm258_vm0, %v229_v5, 0.0  ;;  %v230_v12 = vrot.slane %v4033_v21, 1  ;;  %v181_v13 = vrot.slane %v4033_v21, 7  ;;  %v231_v18 = vrot.slane %v4036_v22, 1 }
  0x1e   : > { %3681 = vmatprep.subr.bf16.mxu0 %v3897_v3  ;;  %v213_v11 = vsel %vm209_vm2, 0.0, %v180_v6  ;;  %v182_v19 = vrot.slane %v4036_v22, 7  ;;  %v232_v25 = vrot.slane %v4050_v26, 1  ;;  %v233_v34 = vrot.slane %v4053_v27, 1 }
  0x1f   : > { %v263_v16 = vsel %vm258_vm0, %v230_v12, 0.0  ;;  %v214_v17 = vsel %vm209_vm2, 0.0, %v181_v13  ;;  %v184_v35 = vrot.slane %v4053_v27, 7  ;;  %v185_v44 = vrot.slane %v4067_v31, 7 }
  0x20   : > { %3683 = vmatpush1.bf16.msra.mxu0 %v3682_v23  ;;  %v264_v23 = vsel %vm258_vm0, %v231_v18, 0.0  ;;  %v215_v24 = vsel %vm209_vm2, 0.0, %v182_v19  ;;  %v265_v30 = vsel %vm258_vm0, %v232_v25, 0.0  ;;  %v266_v39 = vsel %vm258_vm0, %v233_v34, 0.0  ;;  %v870_v25 = vld [vmem:[%s5472_s1 + $0xd0] sm:$0xff] }
  0x21   : > { %283 = vrot.lane.b32.xlu0 %v4033_v21, %s3898_s16  ;;  %285 = vrot.lane.b32.xlu1 %v4036_v22, %s3898_s16  ;;  %v217_v40 = vsel %vm209_vm2, 0.0, %v184_v35  ;;  %v218_v49 = vsel %vm209_vm2, 0.0, %v185_v44  ;;  %v235_v50 = vrot.slane %v4070_v32, 1  ;;  %v236_v55 = vrot.slane %v4084_v36, 1  ;;  %v4257_v34 = vld [vmem:[%s5472_s1 + $0x120] ss:$0 sm:$0xff] }
  0x22   : > { %3684 = vmatprep.subr.bf16.mxu0 %v3897_v3  ;;  %v187_v56 = vrot.slane %v4084_v36, 7  ;;  %v239_v6 = vrot.slane %v4104_v42, 1  ;;  %v191_v12 = vrot.slane %v4118_v46, 7 }
  0x23   : > { %v268_v53 = vsel %vm258_vm0, %v235_v50, 0.0  ;;  %v269_v58 = vsel %vm258_vm0, %v236_v55, 0.0 }
  0x24   : > { %3686 = vmatpush1.bf16.msra.mxu0 %v3685_v28  ;;  %v183_v28 = vrot.slane %v4050_v26, 7 }
  0x25   : > { %287 = vrot.lane.b32.xlu0 %v4050_v26, %s3898_s16  ;;  %289 = vrot.lane.b32.xlu1 %v4053_v27, %s3898_s16 }
  0x26   : > { %3687 = vmatprep.subr.bf16.mxu0 %v3897_v3 }
  0x28   : > { %3689 = vmatpush1.bf16.msra.mxu0 %v3688_v33  ;;  %v216_v33 = vsel %vm209_vm2, 0.0, %v183_v28  ;;  %v871_v28 = vld [vmem:[%s5472_s1 + $0xd8] sm:$0xff] }
  0x29   : > { %291 = vrot.lane.b32.xlu0 %v4067_v31, %s3898_s16  ;;  %293 = vrot.lane.b32.xlu1 %v4070_v32, %s3898_s16 }
  0x2a   : > { %3690 = vmatprep.subr.bf16.mxu0 %v3897_v3 }
  0x2c   : > { %3692 = vmatpush1.bf16.msra.mxu0 %v3691_v38 }
  0x2d   : > { %295 = vrot.lane.b32.xlu0 %v4084_v36, %s3898_s16  ;;  %297 = vrot.lane.b32.xlu1 %v4087_v37, %s3898_s16 }
  0x2e   : > { %3693 = vmatprep.subr.bf16.mxu0 %v3897_v3 }
  0x30   : > { %3695 = vmatpush1.bf16.msra.mxu0 %v3694_v43  ;;  %v234_v43 = vrot.slane %v4067_v31, 1 }
  0x31   : > { %299 = vrot.lane.b32.xlu0 %v4101_v41, %s3898_s16  ;;  %301 = vrot.lane.b32.xlu1 %v4104_v42, %s3898_s16 }
  0x32   : > { %3696 = vmatprep.subr.bf16.mxu0 %v3897_v3 }
  0x34   : > { %3698 = vmatpush1.bf16.msra.mxu0 %v3697_v48  ;;  %v267_v48 = vsel %vm258_vm0, %v234_v43, 0.0 }
  0x35   : > { %303 = vrot.lane.b32.xlu0 %v4118_v46, %s3898_s16  ;;  %305 = vrot.lane.b32.xlu1 %v4121_v47, %s3898_s16  ;;  %s3837_s16 = sshll.u32 %s3905_s17, 4  ;;  %s3838_s16 = int_to_ptr.vmem [resolvable:$false] %s3837_s16 }
  0x36   : > { %3699 = vmatprep.subr.bf16.mxu0 %v3897_v3  ;;  %p3840_p0 = scmp.lt.s32.totalorder %s5423_s4, %s3838_s16 }
  0x38   : > { %3701 = vmatpush1.bf16.msra.mxu0 %v3700_v51  ;;  %v186_v51 = vrot.slane %v4070_v32, 7 }
  0x39   : > { %3702 = vmatprep.subr.bf16.mxu0 %v3897_v3  ;;  %v261_v3 = vsel %vm258_vm0, %v228_v61, 0.0  ;;  %v188_v61 = vrot.slane %v4087_v37, 7 }
  0x3c   : > { %3704 = vmatpush1.bf16.msra.mxu0 %v3703_v54  ;;  %v219_v54 = vsel %vm209_vm2, 0.0, %v186_v51 }
  0x8b   : > { %v276_v59 = vpop.permute.xlu0 %275  ;;  %v280_v1 = vpop.permute.xlu1 %279 }
  0x8c   : > { %v324_v63 = vsel %vm323_vm1, %v210_v57, %v276_v59  ;;  %v326_v8 = vsel %vm323_vm1, %v212_v4, %v280_v1  ;;  %v220_v59 = vsel %vm209_vm2, 0.0, %v187_v56  ;;  %v238_v1 = vrot.slane %v4101_v41, 1 }
  0x8d   : > { %482 = vmatmul.mubr.f32.vlgmr.msra.gmra.mrb[0].mxu0 %v324_v63 }
  0x8e   : > { %3381 = vmatprep.mubr.msk.f32.mxu0 %vm323_vm1, %v260_v60  ;;  %v237_v60 = vrot.slane %v4087_v37, 1  ;;  %v271_v4 = vsel %vm258_vm0, %v238_v1, 0.0 }
  0x8f   : > { %v278_v2 = vpop.permute.xlu0 %277  ;;  %v282_v9 = vpop.permute.xlu1 %281 }
  0x90   : > { %v325_v7 = vsel %vm323_vm1, %v211_v0, %v278_v2  ;;  %v327_v14 = vsel %vm323_vm1, %v213_v11, %v282_v9  ;;  %v270_v63 = vsel %vm258_vm0, %v237_v60, 0.0  ;;  %v221_v0 = vsel %vm209_vm2, 0.0, %v188_v61 }
  0x91   : > { %487 = vmatmul.mubr.f32.gmra.mrb[2].mxu0 %v325_v7  ;;  %v189_v2 = vrot.slane %v4101_v41, 7  ;;  %v190_v7 = vrot.slane %v4104_v42, 7  ;;  %v272_v9 = vsel %vm258_vm0, %v239_v6, 0.0  ;;  %v240_v11 = vrot.slane %v4118_v46, 1 }
  0x92   : > { %3382 = vmatprep.mubr.msk.f32.mxu0 %vm323_vm1, %v261_v3 }
  0x93   : > { %v284_v15 = vpop.permute.xlu0 %283  ;;  %v286_v21 = vpop.permute.xlu1 %285  ;;  %v222_v5 = vsel %vm209_vm2, 0.0, %v189_v2 }
  0x94   : > { %v328_v20 = vsel %vm323_vm1, %v214_v17, %v284_v15  ;;  %v329_v29 = vsel %vm323_vm1, %v215_v24, %v286_v21  ;;  %v224_v15 = vsel %vm209_vm2, 0.0, %v191_v12  ;;  %v192_v17 = vrot.slane %v4121_v47, 7 }
  0x95   : > { %492 = vmatmul.mubr.f32.gmra.mrb[4].mxu0 %v326_v8 }
  0x96   : > { %3383 = vmatprep.mubr.msk.f32.mxu0 %vm323_vm1, %v262_v10  ;;  %v223_v10 = vsel %vm209_vm2, 0.0, %v190_v7 }
  0x97   : > { %v288_v22 = vpop.permute.xlu0 %287  ;;  %v290_v26 = vpop.permute.xlu1 %289 }
  0x98   : > { %v330_v38 = vsel %vm323_vm1, %v216_v33, %v288_v22  ;;  %v331_v45 = vsel %vm323_vm1, %v217_v40, %v290_v26  ;;  %v3709_v22 = vpack.c.bf16 %v871_v28, %v870_v25 }
  0x99   : > { %497 = vmatmul.mubr.f32.gmra.mrb[6].mxu0 %v327_v14  ;;  %v273_v14 = vsel %vm258_vm0, %v240_v11, 0.0 }
  0x9a   : > { %3384 = vmatprep.mubr.msk.f32.mxu0 %vm323_vm1, %v263_v16  ;;  %v241_v16 = vrot.slane %v4121_v47, 1  ;;  %v868_v47 = vld [vmem:[%s5472_s1 + $0xc0] sm:$0xff] }
  0x9b   : > { %v292_v27 = vpop.permute.xlu0 %291  ;;  %v294_v31 = vpop.permute.xlu1 %293 }
  0x9c   : > { %v332_v52 = vsel %vm323_vm1, %v218_v49, %v292_v27  ;;  %v333_v57 = vsel %vm323_vm1, %v219_v54, %v294_v31  ;;  %v274_v19 = vsel %vm258_vm0, %v241_v16, 0.0 }
  0x9d   : > { %502 = vmatmul.mubr.f32.gmra.mrb[8].mxu0 %v328_v20  ;;  %v225_v20 = vsel %vm209_vm2, 0.0, %v192_v17 }
  0x9e   : > { %3385 = vmatprep.mubr.msk.f32.mxu0 %vm323_vm1, %v264_v23  ;;  %v869_v23 = vld [vmem:[%s5472_s1 + $0xc8] sm:$0xff] }
  0x9f   : > { %v296_v32 = vpop.permute.xlu0 %295  ;;  %v298_v36 = vpop.permute.xlu1 %297  ;;  %v3705_v24 = vpack.c.bf16 %v869_v23, %v868_v47 }
  0xa0   : > { %v334_v62 = vsel %vm323_vm1, %v220_v59, %v296_v32  ;;  %v335_v3 = vsel %vm323_vm1, %v221_v0, %v298_v36 }
  0xa1   : > { %507 = vmatmul.mubr.f32.gmra.mrb[10].mxu0 %v329_v29  ;;  %3706 = vmatprep.subr.bf16.mxu0 %v3705_v24  ;;  %v872_v29 = vld [vmem:[%s5472_s1 + $0xe0] sm:$0xff] }
  0xa2   : > { %3386 = vmatprep.mubr.msk.f32.mxu0 %vm323_vm1, %v265_v30  ;;  %3727 = vmatprep.subr.bf16.mxu1 %v3705_v24  ;;  %v873_v30 = vld [vmem:[%s5472_s1 + $0xe8] sm:$0xff] }
  0xa3   : > { %v300_v37 = vpop.permute.xlu0 %299  ;;  %v302_v41 = vpop.permute.xlu1 %301  ;;  %3708 = vmatpush3.bf16.msra.mxu0 %v3705_v24  ;;  %3730 = vmatpush3.bf16.msra.mxu1 %v3705_v24  ;;  %v3713_v33 = vpack.c.bf16 %v873_v30, %v872_v29 }
  0xa4   : > { %v336_v8 = vsel %vm323_vm1, %v222_v5, %v300_v37  ;;  %v337_v13 = vsel %vm323_vm1, %v223_v10, %v302_v41  ;;  %3710 = vmatprep.subr.bf16.mxu0 %v3709_v22  ;;  %3728 = vmatprep.subr.bf16.mxu1 %v3709_v22 }
  0xa5   : > { %512 = vmatmul.mubr.f32.gmra.mrb[12].mxu0 %v330_v38 }
  0xa6   : > { %3387 = vmatprep.mubr.msk.f32.mxu0 %vm323_vm1, %v266_v39 }
  0xa7   : > { %v304_v42 = vpop.permute.xlu0 %303  ;;  %v306_v46 = vpop.permute.xlu1 %305  ;;  %3712 = vmatpush3.bf16.msra.mxu0 %v3709_v22  ;;  %3731 = vmatpush3.bf16.msra.mxu1 %v3709_v22 }
  0xa8   : > { %v338_v18 = vsel %vm323_vm1, %v224_v15, %v304_v42  ;;  %v339_v21 = vsel %vm323_vm1, %v225_v20, %v306_v46  ;;  %3714 = vmatprep.subr.bf16.mxu0 %v3713_v33  ;;  %3729 = vmatprep.subr.bf16.mxu1 %v3713_v33 }
  0xa9   : > { %517 = vmatmul.mubr.f32.gmra.mrb[14].mxu0 %v331_v45 }
  0xaa   : > { %3388 = vmatprep.mubr.msk.f32.mxu0 %vm323_vm1, %v267_v48 }
  0xab   : > { %3716 = vmatpush3.bf16.msra.mxu0 %v3713_v33  ;;  %3732 = vmatpush3.bf16.msra.mxu1 %v3713_v33 }
  0xad   : > { %522 = vmatmul.mubr.f32.gmra.mrb[16].mxu0 %v332_v52 }
  0xae   : > { %3389 = vmatprep.mubr.msk.f32.mxu0 %vm323_vm1, %v268_v53 }
  0xb1   : > { %527 = vmatmul.mubr.f32.gmra.mrb[18].mxu0 %v333_v57 }
  0xb2   : > { %3390 = vmatprep.mubr.msk.f32.mxu0 %vm323_vm1, %v269_v58 }
  0xb5   : > { %532 = vmatmul.mubr.f32.gmra.mrb[20].mxu0 %v334_v62 }
  0xb6   : > { %3391 = vmatprep.mubr.msk.f32.mxu0 %vm323_vm1, %v270_v63 }
  0xb9   : > { %537 = vmatmul.mubr.f32.gmra.mrb[22].mxu0 %v335_v3 }
  0xba   : > { %3392 = vmatprep.mubr.msk.f32.mxu0 %vm323_vm1, %v271_v4 }
  0xbd   : > { %542 = vmatmul.mubr.f32.gmra.mrb[24].mxu0 %v336_v8 }
  0xbe   : > { %3393 = vmatprep.mubr.msk.f32.mxu0 %vm323_vm1, %v272_v9 }
  0xc1   : > { %547 = vmatmul.mubr.f32.gmra.mrb[26].mxu0 %v337_v13 }
  0xc2   : > { %3394 = vmatprep.mubr.msk.f32.mxu0 %vm323_vm1, %v273_v14 }
  0xc5   : > { %552 = vmatmul.mubr.f32.gmra.mrb[28].mxu0 %v338_v18 }
  0xc6   : > { %3395 = vmatprep.mubr.msk.f32.mxu0 %vm323_vm1, %v274_v19 }
  0xc9   : > { %557 = vmatmul.mubr.f32.gmra.mrb[30].mxu0 %v339_v21 }
 0x160   : > { %v483_v35 = vpop.f32.mrb[0].mxu0 }
 0x161   : > { %v484_v38 = vadd.f32 %v4257_v34, %v483_v35  ;;  %v485_v26 = vpop.f32.mrb[1].mxu0 }
 0x163   : > { %v578_v39 = vmul.f32 0.02, %v484_v38  ;;  %vm562_vm3 = vcmp.gt.f32.partialorder %v484_v38, 0.0 }
 0x164   : > { %v488_v40 = vpop.f32.mrb[2].mxu0 }
 0x165   : > { %v489_v43 = vadd.f32 %v4257_v34, %v488_v40  ;;  %v490_v44 = vpop.f32.mrb[3].mxu0  ;;  %v4261_v45 = vsel %vm562_vm3, %v484_v38, %v578_v39 }
 0x166   : > { %722 = vrot.lane.b32.xlu0 %v4261_v45, %s3899_s7  ;;  %v674_v27 = vrot.slane %v4261_v45, 1 }
 0x167   : > { %v579_v48 = vmul.f32 0.02, %v489_v43  ;;  %vm563_vm4 = vcmp.gt.f32.partialorder %v489_v43, 0.0 }
 0x168   : > { %v493_v49 = vpop.f32.mrb[4].mxu0  ;;  %v706_v50 = vsel %vm258_vm0, %v674_v27, 0.0 }
 0x169   : > { %v494_v51 = vadd.f32 %v4257_v34, %v493_v49  ;;  %v495_v52 = vpop.f32.mrb[5].mxu0  ;;  %v4268_v31 = vsel %vm563_vm4, %v489_v43, %v579_v48 }
 0x16a   : > { %724 = vrot.lane.b32.xlu1 %v4268_v31, %s3899_s7  ;;  %786 = vrot.lane.b32.xlu0 %v706_v50, %s3900_s8  ;;  %v675_v53 = vrot.slane %v4268_v31, 1 }
 0x16b   : > { %v580_v54 = vmul.f32 0.02, %v494_v51  ;;  %vm564_vm5 = vcmp.gt.f32.partialorder %v494_v51, 0.0 }
 0x16c   : > { %v498_v55 = vpop.f32.mrb[6].mxu0  ;;  %v707_v56 = vsel %vm258_vm0, %v675_v53, 0.0 }
 0x16d   : > { %v499_v57 = vadd.f32 %v4257_v34, %v498_v55  ;;  %v500_v32 = vpop.f32.mrb[7].mxu0  ;;  %v4276_v58 = vsel %vm564_vm5, %v494_v51, %v580_v54  ;;  %vm834_vm5 = vcmask 130048  }
 0x16e   : > { %788 = vrot.lane.b32.xlu1 %v707_v56, %s3900_s8  ;;  %726 = vrot.lane.b32.xlu0 %v4276_v58, %s3899_s7  ;;  %v676_v59 = vrot.slane %v4276_v58, 1 }
 0x16f   : > { %v581_v60 = vmul.f32 0.02, %v499_v57  ;;  %vm565_vm6 = vcmp.gt.f32.partialorder %v499_v57, 0.0 }
 0x170   : > { %v503_v61 = vpop.f32.mrb[8].mxu0  ;;  %v708_v62 = vsel %vm258_vm0, %v676_v59, 0.0 }
 0x171   : > { %v504_v36 = vadd.f32 %v4257_v34, %v503_v61  ;;  %v505_v63 = vpop.f32.mrb[9].mxu0  ;;  %v4284_v0 = vsel %vm565_vm6, %v499_v57, %v581_v60  ;;  %vm851_vm6 = vcmask 261120  }
 0x172   : > { %728 = vrot.lane.b32.xlu1 %v4284_v0, %s3899_s7  ;;  %790 = vrot.lane.b32.xlu0 %v708_v62, %s3900_s8  ;;  %v677_v1 = vrot.slane %v4284_v0, 1 }
 0x173   : > { %v582_v2 = vmul.f32 0.02, %v504_v36  ;;  %vm566_vm7 = vcmp.gt.f32.partialorder %v504_v36, 0.0 }
 0x174   : > { %v508_v3 = vpop.f32.mrb[10].mxu0  ;;  %v709_v37 = vsel %vm258_vm0, %v677_v1, 0.0 }
 0x175   : > { %v509_v4 = vadd.f32 %v4257_v34, %v508_v3  ;;  %v510_v5 = vpop.f32.mrb[11].mxu0  ;;  %v4292_v6 = vsel %vm566_vm7, %v504_v36, %v582_v2  ;;  %vm879_vm7 = vcmask 392192  }
 0x176   : > { %792 = vrot.lane.b32.xlu1 %v709_v37, %s3900_s8  ;;  %730 = vrot.lane.b32.xlu0 %v4292_v6, %s3899_s7  ;;  %v678_v7 = vrot.slane %v4292_v6, 1 }
 0x177   : > { %v583_v8 = vmul.f32 0.02, %v509_v4  ;;  %vm567_vm8 = vcmp.gt.f32.partialorder %v509_v4, 0.0 }
 0x178   : > { %v513_v41 = vpop.f32.mrb[12].mxu0  ;;  %v710_v9 = vsel %vm258_vm0, %v678_v7, 0.0 }
 0x179   : > { %v514_v10 = vadd.f32 %v4257_v34, %v513_v41  ;;  %v515_v11 = vpop.f32.mrb[13].mxu0  ;;  %v4300_v12 = vsel %vm567_vm8, %v509_v4, %v583_v8 }
 0x17a   : > { %732 = vrot.lane.b32.xlu1 %v4300_v12, %s3899_s7  ;;  %794 = vrot.lane.b32.xlu0 %v710_v9, %s3900_s8  ;;  %v679_v13 = vrot.slane %v4300_v12, 1 }
 0x17b   : > { %v584_v42 = vmul.f32 0.02, %v514_v10  ;;  %vm568_vm9 = vcmp.gt.f32.partialorder %v514_v10, 0.0 }
 0x17c   : > { %v518_v14 = vpop.f32.mrb[14].mxu0  ;;  %v711_v15 = vsel %vm258_vm0, %v679_v13, 0.0 }
 0x17d   : > { %v519_v16 = vadd.f32 %v4257_v34, %v518_v14  ;;  %v520_v17 = vpop.f32.mrb[15].mxu0  ;;  %v4308_v18 = vsel %vm568_vm9, %v514_v10, %v584_v42 }
 0x17e   : > { %796 = vrot.lane.b32.xlu1 %v711_v15, %s3900_s8  ;;  %734 = vrot.lane.b32.xlu0 %v4308_v18, %s3899_s7  ;;  %v680_v46 = vrot.slane %v4308_v18, 1 }
 0x17f   : > { %v585_v19 = vmul.f32 0.02, %v519_v16  ;;  %vm569_vm10 = vcmp.gt.f32.partialorder %v519_v16, 0.0 }
 0x180   : > { %v523_v20 = vpop.f32.mrb[16].mxu0  ;;  %v712_v21 = vsel %vm258_vm0, %v680_v46, 0.0 }
 0x181   : > { %v524_v47 = vadd.f32 %v4257_v34, %v523_v20  ;;  %v525_v23 = vpop.f32.mrb[17].mxu0  ;;  %v4316_v24 = vsel %vm569_vm10, %v519_v16, %v585_v19 }
 0x182   : > { %736 = vrot.lane.b32.xlu1 %v4316_v24, %s3899_s7  ;;  %798 = vrot.lane.b32.xlu0 %v712_v21, %s3900_s8  ;;  %v681_v25 = vrot.slane %v4316_v24, 1  ;;  %v626_v23 = vrot.slane %v4261_v45, 7 }
 0x183   : > { %v586_v28 = vmul.f32 0.02, %v524_v47  ;;  %vm570_vm11 = vcmp.gt.f32.partialorder %v524_v47, 0.0 }
 0x184   : > { %v528_v29 = vpop.f32.mrb[18].mxu0  ;;  %v713_v22 = vsel %vm258_vm0, %v681_v25, 0.0 }
 0x185   : > { %v529_v30 = vadd.f32 %v4257_v34, %v528_v29  ;;  %v530_v33 = vpop.f32.mrb[19].mxu0  ;;  %v4324_v35 = vsel %vm570_vm11, %v524_v47, %v586_v28  ;;  %v627_v28 = vrot.slane %v4268_v31, 7  ;;  %v658_v29 = vsel %vm209_vm2, 0.0, %v626_v23 }
 0x186   : > { %800 = vrot.lane.b32.xlu1 %v713_v22, %s3900_s8  ;;  %738 = vrot.lane.b32.xlu0 %v4324_v35, %s3899_s7  ;;  %v682_v38 = vrot.slane %v4324_v35, 1 }
 0x187   : > { %v587_v26 = vmul.f32 0.02, %v529_v30  ;;  %vm571_vm12 = vcmp.gt.f32.partialorder %v529_v30, 0.0  ;;  %v659_v45 = vsel %vm209_vm2, 0.0, %v627_v28 }
 0x188   : > { %v533_v39 = vpop.f32.mrb[20].mxu0  ;;  %v714_v40 = vsel %vm258_vm0, %v682_v38, 0.0 }
 0x189   : > { %v534_v43 = vadd.f32 %v4257_v34, %v533_v39  ;;  %v535_v44 = vpop.f32.mrb[21].mxu0  ;;  %v4332_v27 = vsel %vm571_vm12, %v529_v30, %v587_v26  ;;  %v628_v26 = vrot.slane %v4276_v58, 7 }
 0x18a   : > { %740 = vrot.lane.b32.xlu1 %v4332_v27, %s3899_s7  ;;  %802 = vrot.lane.b32.xlu0 %v714_v40, %s3900_s8  ;;  %v683_v48 = vrot.slane %v4332_v27, 1  ;;  %v629_v44 = vrot.slane %v4284_v0, 7 }
 0x18b   : > { %v588_v49 = vmul.f32 0.02, %v534_v43  ;;  %vm572_vm13 = vcmp.gt.f32.partialorder %v534_v43, 0.0 }
 0x18c   : > { %v538_v50 = vpop.f32.mrb[22].mxu0  ;;  %v715_v51 = vsel %vm258_vm0, %v683_v48, 0.0  ;;  %v660_v48 = vsel %vm209_vm2, 0.0, %v628_v26 }
 0x18d   : > { %v539_v52 = vadd.f32 %v4257_v34, %v538_v50  ;;  %v540_v53 = vpop.f32.mrb[23].mxu0  ;;  %v4340_v54 = vsel %vm572_vm13, %v534_v43, %v588_v49 }
 0x18e   : > { %804 = vrot.lane.b32.xlu1 %v715_v51, %s3900_s8  ;;  %742 = vrot.lane.b32.xlu0 %v4340_v54, %s3899_s7  ;;  %v684_v55 = vrot.slane %v4340_v54, 1  ;;  %v661_v53 = vsel %vm209_vm2, 0.0, %v629_v44 }
 0x18f   : > { %v589_v56 = vmul.f32 0.02, %v539_v52  ;;  %vm573_vm14 = vcmp.gt.f32.partialorder %v539_v52, 0.0 }
 0x190   : > { %v543_v57 = vpop.f32.mrb[24].mxu0  ;;  %v716_v32 = vsel %vm258_vm0, %v684_v55, 0.0 }
 0x191   : > { %v544_v59 = vadd.f32 %v4257_v34, %v543_v57  ;;  %v545_v60 = vpop.f32.mrb[25].mxu0  ;;  %v4348_v61 = vsel %vm573_vm14, %v539_v52, %v589_v56  ;;  %v630_v52 = vrot.slane %v4292_v6, 7 }
 0x192   : > { %744 = vrot.lane.b32.xlu1 %v4348_v61, %s3899_s7  ;;  %806 = vrot.lane.b32.xlu0 %v716_v32, %s3900_s8  ;;  %v685_v62 = vrot.slane %v4348_v61, 1  ;;  %v631_v32 = vrot.slane %v4300_v12, 7 }
 0x193   : > { %v590_v36 = vmul.f32 0.02, %v544_v59  ;;  %vm574_vm15 = vcmp.gt.f32.partialorder %v544_v59, 0.0 }
 0x194   : > { %v548_v63 = vpop.f32.mrb[26].mxu0  ;;  %v717_v1 = vsel %vm258_vm0, %v685_v62, 0.0 }
 0x195   : > { %v549_v2 = vadd.f32 %v4257_v34, %v548_v63  ;;  %v550_v3 = vpop.f32.mrb[27].mxu0  ;;  %v4356_v37 = vsel %vm574_vm15, %v544_v59, %v590_v36  ;;  %v662_v59 = vsel %vm209_vm2, 0.0, %v630_v52  ;;  %v632_v63 = vrot.slane %v4308_v18, 7 }
 0x196   : > { %808 = vrot.lane.b32.xlu1 %v717_v1, %s3900_s8  ;;  %746 = vrot.lane.b32.xlu0 %v4356_v37, %s3899_s7  ;;  %v686_v4 = vrot.slane %v4356_v37, 1  ;;  %v663_v1 = vsel %vm209_vm2, 0.0, %v631_v32 }
 0x197   : > { %v591_v5 = vmul.f32 0.02, %v549_v2  ;;  %vm575_vm1 = vcmp.gt.f32.partialorder %v549_v2, 0.0 }
 0x198   : > { %v553_v7 = vpop.f32.mrb[28].mxu0  ;;  %v718_v8 = vsel %vm258_vm0, %v686_v4, 0.0 }
 0x199   : > { %v554_v41 = vadd.f32 %v4257_v34, %v553_v7  ;;  %v555_v9 = vpop.f32.mrb[29].mxu0  ;;  %v4364_v10 = vsel %vm575_vm1, %v549_v2, %v591_v5  ;;  %v633_v5 = vrot.slane %v4316_v24, 7  ;;  %v664_v7 = vsel %vm209_vm2, 0.0, %v632_v63 }
 0x19a   : > { %748 = vrot.lane.b32.xlu1 %v4364_v10, %s3899_s7  ;;  %810 = vrot.lane.b32.xlu0 %v718_v8, %s3900_s8  ;;  %v687_v11 = vrot.slane %v4364_v10, 1  ;;  %v639_v44 = vrot.slane %v4364_v10, 7 }
 0x19b   : > { %v592_v13 = vmul.f32 0.02, %v554_v41  ;;  %vm576_vm3 = vcmp.gt.f32.partialorder %v554_v41, 0.0 }
 0x19c   : > { %v558_v42 = vpop.f32.mrb[30].mxu0  ;;  %v719_v14 = vsel %vm258_vm0, %v687_v11, 0.0  ;;  %v634_v11 = vrot.slane %v4324_v35, 7  ;;  %v671_v52 = vsel %vm209_vm2, 0.0, %v639_v44 }
 0x19d   : > { %v559_v15 = vadd.f32 %v4257_v34, %v558_v42  ;;  %v560_v16 = vpop.f32.mrb[31].mxu0  ;;  %v4372_v17 = vsel %vm576_vm3, %v554_v41, %v592_v13  ;;  %v665_v13 = vsel %vm209_vm2, 0.0, %v633_v5 }
 0x19e   : > { %812 = vrot.lane.b32.xlu1 %v719_v14, %s3900_s8  ;;  %750 = vrot.lane.b32.xlu0 %v4372_v17, %s3899_s7  ;;  %v688_v46 = vrot.slane %v4372_v17, 1  ;;  %v635_v16 = vrot.slane %v4332_v27, 7 }
 0x19f   : > { %v593_v19 = vmul.f32 0.02, %v559_v15  ;;  %vm577_vm4 = vcmp.gt.f32.partialorder %v559_v15, 0.0 }
 0x1a0   : > { %v720_v20 = vsel %vm258_vm0, %v688_v46, 0.0  ;;  %v666_v46 = vsel %vm209_vm2, 0.0, %v634_v11  ;;  %v667_v23 = vsel %vm209_vm2, 0.0, %v635_v16 }
 0x1a1   : > { %v4379_v21 = vsel %vm577_vm4, %v559_v15, %v593_v19 }
 0x1a2   : > { %752 = vrot.lane.b32.xlu1 %v4379_v21, %s3899_s7  ;;  %814 = vrot.lane.b32.xlu0 %v720_v20, %s3900_s8  ;;  %v689_v34 = vrot.slane %v4379_v21, 1 }
 0x1a4   : > { %v721_v47 = vsel %vm258_vm0, %v689_v34, 0.0 }
 0x1a6   : > { %816 = vrot.lane.b32.xlu1 %v721_v47, %s3900_s8  ;;  %v636_v47 = vrot.slane %v4340_v54, 7  ;;  %s3833_s8 = scalar_lea.vmem %s5423_s4, 256 }
 0x1a7   : > { %p3834_p11 = scmp.ne.s32.totalorder %s5423_s4, %s3833_s8 }
 0x1a9   : > { %p3835_p12 = pnand %p3834_p11, %p3960_p5 }
 0x1ab   : > { %p3836_p13 = pneg %p3835_p12 }
 0x1d8   : > { %v723_v25 = vpop.permute.xlu0 %722 }
 0x1d9   : > { %v835_v22 = vsel %vm834_vm5, %v658_v29, %v723_v25 }
 0x1dc   : > { %v725_v30 = vpop.permute.xlu1 %724  ;;  %v787_v33 = vpop.permute.xlu0 %786 }
 0x1dd   : > { %v852_v38 = vsel %vm851_vm6, %v835_v22, %v787_v33  ;;  %v836_v39 = vsel %vm834_vm5, %v659_v45, %v725_v30  ;;  %v637_v22 = vrot.slane %v4348_v61, 7  ;;  %v668_v30 = vsel %vm209_vm2, 0.0, %v636_v47 }
 0x1de   : > { %3561 = vmatprep.mubr.msk.f32.mxu0 %vm879_vm7, %v852_v38  ;;  %v638_v45 = vrot.slane %v4356_v37, 7 }
 0x1e0   : > { %v789_v40 = vpop.permute.xlu1 %788  ;;  %v727_v43 = vpop.permute.xlu0 %726 }
 0x1e1   : > { %v853_v31 = vsel %vm851_vm6, %v836_v39, %v789_v40  ;;  %v837_v49 = vsel %vm834_vm5, %v660_v48, %v727_v43  ;;  %v669_v39 = vsel %vm209_vm2, 0.0, %v637_v22  ;;  %v670_v48 = vsel %vm209_vm2, 0.0, %v638_v45 }
 0x1e2   : > { %3562 = vmatmul.mubr.msk.f32.vlgmr.msra.gmra.mrb[32].mxu0 %vm879_vm7, %v853_v31 }
 0x1e4   : > { %v729_v50 = vpop.permute.xlu1 %728  ;;  %v791_v51 = vpop.permute.xlu0 %790 }
 0x1e5   : > { %v854_v58 = vsel %vm851_vm6, %v837_v49, %v791_v51  ;;  %v838_v55 = vsel %vm834_vm5, %v661_v53, %v729_v50 }
 0x1e6   : > { %3564 = vmatprep.mubr.msk.f32.mxu0 %vm879_vm7, %v854_v58  ;;  %v640_v58 = vrot.slane %v4372_v17, 7 }
 0x1e8   : > { %v793_v56 = vpop.permute.xlu1 %792  ;;  %v731_v57 = vpop.permute.xlu0 %730 }
 0x1e9   : > { %v855_v0 = vsel %vm851_vm6, %v838_v55, %v793_v56  ;;  %v839_v60 = vsel %vm834_vm5, %v662_v59, %v731_v57  ;;  %v641_v57 = vrot.slane %v4379_v21, 7  ;;  %v1378_v21 = vld [vmem:[%s5472_s1 + $0xf0] sm:$0xff] }
 0x1ea   : > { %3565 = vmatmul.mubr.msk.f32.gmra.mrb[34].mxu0 %vm879_vm7, %v855_v0  ;;  %v672_v0 = vsel %vm209_vm2, 0.0, %v640_v58 }
 0x1ec   : > { %v733_v62 = vpop.permute.xlu1 %732  ;;  %v795_v36 = vpop.permute.xlu0 %794 }
 0x1ed   : > { %v856_v6 = vsel %vm851_vm6, %v839_v60, %v795_v36  ;;  %v840_v2 = vsel %vm834_vm5, %v663_v1, %v733_v62  ;;  %v673_v62 = vsel %vm209_vm2, 0.0, %v641_v57  ;;  %v1379_v1 = vld [vmem:[%s5472_s1 + $0xf8] sm:$0xff] }
 0x1ee   : > { %3567 = vmatprep.mubr.msk.f32.mxu0 %vm879_vm7, %v856_v6 }
 0x1f0   : > { %v797_v3 = vpop.permute.xlu1 %796  ;;  %v735_v4 = vpop.permute.xlu0 %734 }
 0x1f1   : > { %v857_v12 = vsel %vm851_vm6, %v840_v2, %v797_v3  ;;  %v841_v8 = vsel %vm834_vm5, %v664_v7, %v735_v4  ;;  %v3717_v2 = vpack.c.bf16 %v1379_v1, %v1378_v21  ;;  %v1380_v3 = vld [vmem:[%s5472_s1 + $0x100] sm:$0xff]  ;;  %v4479_v4 = vld [vmem:[%s5472_s1 + $0x128] ss:$0 sm:$0xff] }
 0x1f2   : > { %3568 = vmatmul.mubr.msk.f32.gmra.mrb[36].mxu0 %vm879_vm7, %v857_v12 }
 0x1f3   : > { %3718 = vmatprep.subr.bf16.mxu1 %v3717_v2 }
 0x1f4   : > { %v737_v41 = vpop.permute.xlu1 %736  ;;  %v799_v9 = vpop.permute.xlu0 %798 }
 0x1f5   : > { %v858_v18 = vsel %vm851_vm6, %v841_v8, %v799_v9  ;;  %v842_v42 = vsel %vm834_vm5, %v665_v13, %v737_v41 }
 0x1f6   : > { %3570 = vmatprep.mubr.msk.f32.mxu1 %vm879_vm7, %v858_v18 }
 0x1f8   : > { %v801_v14 = vpop.permute.xlu1 %800  ;;  %v739_v15 = vpop.permute.xlu0 %738 }
 0x1f9   : > { %v859_v24 = vsel %vm851_vm6, %v842_v42, %v801_v14  ;;  %v843_v19 = vsel %vm834_vm5, %v666_v46, %v739_v15 }
 0x1fa   : > { %3571 = vmatmul.mubr.msk.f32.vlgmr.msra.gmra.mrb[0].mxu1 %vm879_vm7, %v859_v24 }
 0x1fb   : > { %3720 = vmatpush3.bf16.msra.mxu1 %v3717_v2 }
 0x1fc   : > { %v741_v20 = vpop.permute.xlu1 %740  ;;  %v803_v34 = vpop.permute.xlu0 %802  ;;  %3589 = vmatprep.subr.mxu1 %v1380_v3 }
 0x1fd   : > { %v860_v35 = vsel %vm851_vm6, %v843_v19, %v803_v34  ;;  %v844_v25 = vsel %vm834_vm5, %v667_v23, %v741_v20 }
 0x1fe   : > { %3573 = vmatprep.mubr.msk.f32.mxu1 %vm879_vm7, %v860_v35 }
 0x1ff   : > { %3590 = vmatpush3.msra.mxu1 %v1380_v3 }
 0x200   : > { %v805_v28 = vpop.permute.xlu1 %804  ;;  %v743_v29 = vpop.permute.xlu0 %742 }
 0x201   : > { %v861_v27 = vsel %vm851_vm6, %v844_v25, %v805_v28  ;;  %v845_v33 = vsel %vm834_vm5, %v668_v30, %v743_v29 }
 0x202   : > { %3574 = vmatmul.mubr.msk.f32.gmra.mrb[2].mxu1 %vm879_vm7, %v861_v27 }
 0x204   : > { %v745_v38 = vpop.permute.xlu1 %744  ;;  %v807_v26 = vpop.permute.xlu0 %806 }
 0x205   : > { %v862_v54 = vsel %vm851_vm6, %v845_v33, %v807_v26  ;;  %v846_v40 = vsel %vm834_vm5, %v669_v39, %v745_v38 }
 0x206   : > { %3576 = vmatprep.mubr.msk.f32.mxu1 %vm879_vm7, %v862_v54 }
 0x208   : > { %v809_v43 = vpop.permute.xlu1 %808  ;;  %v747_v31 = vpop.permute.xlu0 %746 }
 0x209   : > { %v863_v61 = vsel %vm851_vm6, %v846_v40, %v809_v43  ;;  %v847_v49 = vsel %vm834_vm5, %v670_v48, %v747_v31 }
 0x20a   : > { %3577 = vmatmul.mubr.msk.f32.gmra.mrb[4].mxu1 %vm879_vm7, %v863_v61 }
 0x20c   : > { %v749_v50 = vpop.permute.xlu1 %748  ;;  %v811_v51 = vpop.permute.xlu0 %810 }
 0x20d   : > { %v864_v37 = vsel %vm851_vm6, %v847_v49, %v811_v51  ;;  %v848_v53 = vsel %vm834_vm5, %v671_v52, %v749_v50 }
 0x20e   : > { %3579 = vmatprep.mubr.msk.f32.mxu1 %vm879_vm7, %v864_v37 }
 0x210   : > { %v813_v55 = vpop.permute.xlu1 %812  ;;  %v751_v56 = vpop.permute.xlu0 %750 }
 0x211   : > { %v865_v10 = vsel %vm851_vm6, %v848_v53, %v813_v55  ;;  %v849_v32 = vsel %vm834_vm5, %v672_v0, %v751_v56 }
 0x212   : > { %3580 = vmatmul.mubr.msk.f32.gmra.mrb[6].mxu1 %vm879_vm7, %v865_v10 }
 0x214   : > { %v753_v59 = vpop.permute.xlu1 %752  ;;  %v815_v60 = vpop.permute.xlu0 %814 }
 0x215   : > { %v866_v17 = vsel %vm851_vm6, %v849_v32, %v815_v60  ;;  %v850_v36 = vsel %vm834_vm5, %v673_v62, %v753_v59 }
 0x216   : > { %3582 = vmatprep.mubr.msk.f32.mxu1 %vm879_vm7, %v866_v17 }
 0x218   : > { %v817_v6 = vpop.permute.xlu1 %816 }
 0x219   : > { %v867_v63 = vsel %vm851_vm6, %v850_v36, %v817_v6 }
 0x21a   : > { %3583 = vmatmul.mubr.msk.f32.gmra.mrb[8].mxu1 %vm879_vm7, %v867_v63 }
 0x2b5   : > { %v3563_v12 = vpop.f32.mrb[32].mxu0 }
 0x2b6   : > { %v1000_v5 = vadd.f32 %v3563_v12, %v4479_v4  ;;  %v994_v7 = vpop.f32.mrb[33].mxu0 }
 0x2b7   : > { %v995_v8 = vadd.f32 %v4479_v4, %v994_v7 }
 0x2b8   : > { %v1090_v41 = vmul.f32 0.02, %v1000_v5  ;;  %vm1074_vm8 = vcmp.gt.f32.partialorder %v1000_v5, 0.0 }
 0x2b9   : > { %v1089_v9 = vmul.f32 0.02, %v995_v8  ;;  %vm1073_vm9 = vcmp.gt.f32.partialorder %v995_v8, 0.0 }
 0x2ba   : > { %v4483_v18 = vsel %vm1074_vm8, %v1000_v5, %v1090_v41 }
 0x2bb   : > { %1235 = vrot.lane.b32.xlu1 %v4483_v18, %s3901_s27  ;;  %v4487_v11 = vsel %vm1073_vm9, %v995_v8, %v1089_v9  ;;  %v1186_v13 = vrot.slane %v4483_v18, 1 }
 0x2bc   : > { %1233 = vrot.lane.b32.xlu0 %v4487_v11, %s3901_s27  ;;  %v1185_v42 = vrot.slane %v4487_v11, 1 }
 0x2bd   : > { %v3566_v14 = vpop.f32.mrb[34].mxu0  ;;  %v1218_v15 = vsel %vm258_vm0, %v1186_v13, 0.0 }
 0x2be   : > { %v1010_v24 = vadd.f32 %v3566_v14, %v4479_v4  ;;  %v1004_v16 = vpop.f32.mrb[35].mxu0  ;;  %v1217_v46 = vsel %vm258_vm0, %v1185_v42, 0.0 }
 0x2bf   : > { %v1005_v19 = vadd.f32 %v4479_v4, %v1004_v16  ;;  %1299 = vrot.lane.b32.xlu1 %v1218_v15, %s3899_s7 }
 0x2c0   : > { %v1092_v20 = vmul.f32 0.02, %v1010_v24  ;;  %1297 = vrot.lane.b32.xlu0 %v1217_v46, %s3899_s7  ;;  %vm1076_vm10 = vcmp.gt.f32.partialorder %v1010_v24, 0.0 }
 0x2c1   : > { %v1091_v34 = vmul.f32 0.02, %v1005_v19  ;;  %vm1075_vm11 = vcmp.gt.f32.partialorder %v1005_v19, 0.0 }
 0x2c2   : > { %v4499_v35 = vsel %vm1076_vm10, %v1010_v24, %v1092_v20 }
 0x2c3   : > { %1239 = vrot.lane.b32.xlu1 %v4499_v35, %s3901_s27  ;;  %v4503_v47 = vsel %vm1075_vm11, %v1005_v19, %v1091_v34  ;;  %v1188_v23 = vrot.slane %v4499_v35, 1  ;;  %vm1345_vm11 = vcmask 64512  }
 0x2c4   : > { %1237 = vrot.lane.b32.xlu0 %v4503_v47, %s3901_s27  ;;  %v1187_v25 = vrot.slane %v4503_v47, 1 }
 0x2c5   : > { %v3569_v28 = vpop.f32.mrb[36].mxu0  ;;  %v1220_v29 = vsel %vm258_vm0, %v1188_v23, 0.0 }
 0x2c6   : > { %v1020_v27 = vadd.f32 %v3569_v28, %v4479_v4  ;;  %v1014_v22 = vpop.f32.mrb[37].mxu0  ;;  %v1219_v30 = vsel %vm258_vm0, %v1187_v25, 0.0 }
 0x2c7   : > { %v1015_v33 = vadd.f32 %v4479_v4, %v1014_v22  ;;  %1303 = vrot.lane.b32.xlu1 %v1220_v29, %s3899_s7 }
 0x2c8   : > { %v1094_v38 = vmul.f32 0.02, %v1020_v27  ;;  %1301 = vrot.lane.b32.xlu0 %v1219_v30, %s3899_s7  ;;  %vm1078_vm12 = vcmp.gt.f32.partialorder %v1020_v27, 0.0 }
 0x2c9   : > { %v1093_v26 = vmul.f32 0.02, %v1015_v33  ;;  %vm1077_vm13 = vcmp.gt.f32.partialorder %v1015_v33, 0.0 }
 0x2ca   : > { %v4515_v54 = vsel %vm1078_vm12, %v1020_v27, %v1094_v38  ;;  %vm1386_vm12 = vcmask 195584  }
 0x2cb   : > { %1243 = vrot.lane.b32.xlu1 %v4515_v54, %s3901_s27  ;;  %v4519_v45 = vsel %vm1077_vm13, %v1015_v33, %v1093_v26  ;;  %v1190_v39 = vrot.slane %v4515_v54, 1  ;;  %vm1941_vm13 = vcmask 1043456  }
 0x2cc   : > { %1241 = vrot.lane.b32.xlu0 %v4519_v45, %s3901_s27  ;;  %v1189_v40 = vrot.slane %v4519_v45, 1 }
 0x2cd   : > { %v3572_v43 = vpop.f32.mrb[0].mxu1  ;;  %v1222_v31 = vsel %vm258_vm0, %v1190_v39, 0.0 }
 0x2ce   : > { %v1030_v61 = vadd.f32 %v3572_v43, %v4479_v4  ;;  %v1024_v44 = vpop.f32.mrb[1].mxu1  ;;  %v1221_v48 = vsel %vm258_vm0, %v1189_v40, 0.0 }
 0x2cf   : > { %v1025_v49 = vadd.f32 %v4479_v4, %v1024_v44  ;;  %1307 = vrot.lane.b32.xlu1 %v1222_v31, %s3899_s7 }
 0x2d0   : > { %v1096_v50 = vmul.f32 0.02, %v1030_v61  ;;  %1305 = vrot.lane.b32.xlu0 %v1221_v48, %s3899_s7  ;;  %vm1080_vm14 = vcmp.gt.f32.partialorder %v1030_v61, 0.0  ;;  %v1137_v48 = vrot.slane %v4487_v11, 7 }
 0x2d1   : > { %v1095_v51 = vmul.f32 0.02, %v1025_v49  ;;  %vm1079_vm15 = vcmp.gt.f32.partialorder %v1025_v49, 0.0 }
 0x2d2   : > { %v4531_v37 = vsel %vm1080_vm14, %v1030_v61, %v1096_v50  ;;  %v1138_v50 = vrot.slane %v4483_v18, 7  ;;  %v1139_v18 = vrot.slane %v4503_v47, 7  ;;  %vm3902_vm14 = vmmov 1  }
 0x2d3   : > { %1247 = vrot.lane.b32.xlu1 %v4531_v37, %s3901_s27  ;;  %v4535_v58 = vsel %vm1079_vm15, %v1025_v49, %v1095_v51  ;;  %v1192_v52 = vrot.slane %v4531_v37, 1  ;;  %vm3722_vm15 = vmpackc.low %vm1941_vm13, %vm3902_vm14 }
 0x2d4   : > { %1245 = vrot.lane.b32.xlu0 %v4535_v58, %s3901_s27  ;;  %v1191_v53 = vrot.slane %v4535_v58, 1 }
 0x2d5   : > { %v3575_v55 = vpop.f32.mrb[2].mxu1  ;;  %v1224_v56 = vsel %vm258_vm0, %v1192_v52, 0.0  ;;  %v1169_v52 = vsel %vm209_vm2, 0.0, %v1137_v48 }
 0x2d6   : > { %v1040_v10 = vadd.f32 %v3575_v55, %v4479_v4  ;;  %v1034_v57 = vpop.f32.mrb[3].mxu1  ;;  %v1223_v0 = vsel %vm258_vm0, %v1191_v53, 0.0  ;;  %v1170_v55 = vsel %vm209_vm2, 0.0, %v1138_v50 }
 0x2d7   : > { %v1035_v32 = vadd.f32 %v4479_v4, %v1034_v57  ;;  %1311 = vrot.lane.b32.xlu1 %v1224_v56, %s3899_s7 }
 0x2d8   : > { %v1098_v59 = vmul.f32 0.02, %v1040_v10  ;;  %1309 = vrot.lane.b32.xlu0 %v1223_v0, %s3899_s7  ;;  %vm1082_vm1 = vcmp.gt.f32.partialorder %v1040_v10, 0.0 }
 0x2d9   : > { %v1097_v60 = vmul.f32 0.02, %v1035_v32  ;;  %vm1081_vm3 = vcmp.gt.f32.partialorder %v1035_v32, 0.0 }
 0x2da   : > { %v4547_v17 = vsel %vm1082_vm1, %v1040_v10, %v1098_v59  ;;  %v1140_v59 = vrot.slane %v4499_v35, 7 }
 0x2db   : > { %1251 = vrot.lane.b32.xlu1 %v4547_v17, %s3901_s27  ;;  %v4551_v62 = vsel %vm1081_vm3, %v1035_v32, %v1097_v60  ;;  %v1194_v36 = vrot.slane %v4547_v17, 1 }
 0x2dc   : > { %1249 = vrot.lane.b32.xlu0 %v4551_v62, %s3901_s27  ;;  %v1193_v6 = vrot.slane %v4551_v62, 1 }
 0x2dd   : > { %v3578_v63 = vpop.f32.mrb[4].mxu1  ;;  %v1226_v21 = vsel %vm258_vm0, %v1194_v36, 0.0  ;;  %v1171_v36 = vsel %vm209_vm2, 0.0, %v1139_v18 }
 0x2de   : > { %v1050_v1 = vadd.f32 %v3578_v63, %v4479_v4  ;;  %v1044_v2 = vpop.f32.mrb[5].mxu1  ;;  %v1225_v3 = vsel %vm258_vm0, %v1193_v6, 0.0  ;;  %v1172_v63 = vsel %vm209_vm2, 0.0, %v1140_v59 }
 0x2df   : > { %v1045_v12 = vadd.f32 %v4479_v4, %v1044_v2  ;;  %1315 = vrot.lane.b32.xlu1 %v1226_v21, %s3899_s7 }
 0x2e0   : > { %v1100_v5 = vmul.f32 0.02, %v1050_v1  ;;  %1313 = vrot.lane.b32.xlu0 %v1225_v3, %s3899_s7  ;;  %vm1084_vm4 = vcmp.gt.f32.partialorder %v1050_v1, 0.0 }
 0x2e1   : > { %v1099_v7 = vmul.f32 0.02, %v1045_v12  ;;  %vm1083_vm6 = vcmp.gt.f32.partialorder %v1045_v12, 0.0 }
 0x2e2   : > { %v4563_v8 = vsel %vm1084_vm4, %v1050_v1, %v1100_v5  ;;  %v1142_v5 = vrot.slane %v4515_v54, 7 }
 0x2e3   : > { %1255 = vrot.lane.b32.xlu1 %v4563_v8, %s3901_s27  ;;  %v4567_v41 = vsel %vm1083_vm6, %v1045_v12, %v1099_v7  ;;  %v1196_v9 = vrot.slane %v4563_v8, 1  ;;  %v1141_v12 = vrot.slane %v4519_v45, 7 }
 0x2e4   : > { %1253 = vrot.lane.b32.xlu0 %v4567_v41, %s3901_s27  ;;  %v1195_v13 = vrot.slane %v4567_v41, 1 }
 0x2e5   : > { %v3581_v42 = vpop.f32.mrb[6].mxu1  ;;  %v1228_v14 = vsel %vm258_vm0, %v1196_v9, 0.0  ;;  %v1173_v9 = vsel %vm209_vm2, 0.0, %v1141_v12 }
 0x2e6   : > { %v1060_v15 = vadd.f32 %v3581_v42, %v4479_v4  ;;  %v1054_v24 = vpop.f32.mrb[7].mxu1  ;;  %v1227_v16 = vsel %vm258_vm0, %v1195_v13, 0.0  ;;  %v1174_v42 = vsel %vm209_vm2, 0.0, %v1142_v5 }
 0x2e7   : > { %v1055_v46 = vadd.f32 %v4479_v4, %v1054_v24  ;;  %1319 = vrot.lane.b32.xlu1 %v1228_v14, %s3899_s7 }
 0x2e8   : > { %v1102_v19 = vmul.f32 0.02, %v1060_v15  ;;  %1317 = vrot.lane.b32.xlu0 %v1227_v16, %s3899_s7  ;;  %vm1086_vm7 = vcmp.gt.f32.partialorder %v1060_v15, 0.0 }
 0x2e9   : > { %v1101_v20 = vmul.f32 0.02, %v1055_v46  ;;  %vm1085_vm8 = vcmp.gt.f32.partialorder %v1055_v46, 0.0 }
 0x2ea   : > { %v4579_v34 = vsel %vm1086_vm7, %v1060_v15, %v1102_v19  ;;  %v1144_v19 = vrot.slane %v4531_v37, 7 }
 0x2eb   : > { %1259 = vrot.lane.b32.xlu1 %v4579_v34, %s3901_s27  ;;  %v4583_v23 = vsel %vm1085_vm8, %v1055_v46, %v1101_v20  ;;  %v1198_v25 = vrot.slane %v4579_v34, 1  ;;  %v1143_v46 = vrot.slane %v4535_v58, 7  ;;  %v1150_v59 = vrot.slane %v4579_v34, 7 }
 0x2ec   : > { %1257 = vrot.lane.b32.xlu0 %v4583_v23, %s3901_s27  ;;  %v1197_v28 = vrot.slane %v4583_v23, 1 }
 0x2ed   : > { %v3584_v29 = vpop.f32.mrb[8].mxu1  ;;  %v1230_v27 = vsel %vm258_vm0, %v1198_v25, 0.0  ;;  %v1175_v25 = vsel %vm209_vm2, 0.0, %v1143_v46 }
 0x2ee   : > { %v1070_v22 = vadd.f32 %v3584_v29, %v4479_v4  ;;  %v1064_v30 = vpop.f32.mrb[9].mxu1  ;;  %v1229_v33 = vsel %vm258_vm0, %v1197_v28, 0.0  ;;  %v1176_v29 = vsel %vm209_vm2, 0.0, %v1144_v19 }
 0x2ef   : > { %v1065_v38 = vadd.f32 %v4479_v4, %v1064_v30  ;;  %1323 = vrot.lane.b32.xlu1 %v1230_v27, %s3899_s7 }
 0x2f0   : > { %v1104_v26 = vmul.f32 0.02, %v1070_v22  ;;  %1321 = vrot.lane.b32.xlu0 %v1229_v33, %s3899_s7  ;;  %vm1088_vm9 = vcmp.gt.f32.partialorder %v1070_v22, 0.0 }
 0x2f1   : > { %v1103_v39 = vmul.f32 0.02, %v1065_v38  ;;  %vm1087_vm10 = vcmp.gt.f32.partialorder %v1065_v38, 0.0 }
 0x2f2   : > { %v4595_v40 = vsel %vm1088_vm9, %v1070_v22, %v1104_v26  ;;  %v1146_v26 = vrot.slane %v4547_v17, 7 }
 0x2f3   : > { %1263 = vrot.lane.b32.xlu1 %v4595_v40, %s3901_s27  ;;  %v4599_v43 = vsel %vm1087_vm10, %v1065_v38, %v1103_v39  ;;  %v1200_v31 = vrot.slane %v4595_v40, 1  ;;  %v1145_v38 = vrot.slane %v4551_v62, 7  ;;  %v1152_v12 = vrot.slane %v4595_v40, 7  ;;  %v1885_v40 = vld [vmem:[%s5472_s1 + $0x108] sm:$0xff] }
 0x2f4   : > { %1261 = vrot.lane.b32.xlu0 %v4599_v43, %s3901_s27  ;;  %v1199_v4 = vrot.slane %v4599_v43, 1 }
 0x2f5   : > { %v1232_v61 = vsel %vm258_vm0, %v1200_v31, 0.0  ;;  %v1177_v31 = vsel %vm209_vm2, 0.0, %v1145_v38 }
 0x2f6   : > { %v1231_v44 = vsel %vm258_vm0, %v1199_v4, 0.0 }
 0x2f7   : > { %1327 = vrot.lane.b32.xlu1 %v1232_v61, %s3899_s7  ;;  %v1178_v61 = vsel %vm209_vm2, 0.0, %v1146_v26 }
 0x2f8   : > { %1325 = vrot.lane.b32.xlu0 %v1231_v44, %s3899_s7 }
 0x32d   : > { %v1236_v49 = vpop.permute.xlu1 %1235 }
 0x32e   : > { %v1234_v51 = vpop.permute.xlu0 %1233  ;;  %v1347_v57 = vsel %vm1345_vm11, %v1170_v55, %v1236_v49 }
 0x32f   : > { %v1346_v56 = vsel %vm1345_vm11, %v1169_v52, %v1234_v51  ;;  %v1147_v51 = vrot.slane %v4567_v41, 7  ;;  %v1148_v52 = vrot.slane %v4563_v8, 7 }
 0x331   : > { %v1300_v53 = vpop.permute.xlu1 %1299  ;;  %v1179_v55 = vsel %vm209_vm2, 0.0, %v1147_v51 }
 0x332   : > { %v1298_v10 = vpop.permute.xlu0 %1297  ;;  %v1363_v11 = vsel %vm834_vm5, %v1347_v57, %v1300_v53 }
 0x333   : > { %v1362_v0 = vsel %vm834_vm5, %v1346_v56, %v1298_v10  ;;  %v1180_v10 = vsel %vm209_vm2, 0.0, %v1148_v52 }
 0x334   : > { %3591 = vmatprep.mubr.msk.f32.mxu1 %vm1386_vm12, %v1362_v0 }
 0x335   : > { %v1240_v32 = vpop.permute.xlu1 %1239  ;;  %3592 = vmatmul.mubr.msk.f32.vlgmr.msra.gmra.mrb[10].mxu1 %vm1386_vm12, %v1363_v11 }
 0x336   : > { %v1238_v60 = vpop.permute.xlu0 %1237  ;;  %v1349_v2 = vsel %vm1345_vm11, %v1172_v63, %v1240_v32  ;;  %v1149_v32 = vrot.slane %v4583_v23, 7  ;;  %v1182_v63 = vsel %vm209_vm2, 0.0, %v1150_v59 }
 0x337   : > { %v1348_v21 = vsel %vm1345_vm11, %v1171_v36, %v1238_v60 }
 0x338   : > { %v1181_v36 = vsel %vm209_vm2, 0.0, %v1149_v32 }
 0x339   : > { %v1304_v6 = vpop.permute.xlu1 %1303 }
 0x33a   : > { %v1302_v1 = vpop.permute.xlu0 %1301  ;;  %v1365_v47 = vsel %vm834_vm5, %v1349_v2, %v1304_v6 }
 0x33b   : > { %v1364_v3 = vsel %vm834_vm5, %v1348_v21, %v1302_v1 }
 0x33c   : > { %3594 = vmatprep.mubr.msk.f32.mxu1 %vm1386_vm12, %v1364_v3 }
 0x33d   : > { %v1244_v35 = vpop.permute.xlu1 %1243  ;;  %3595 = vmatmul.mubr.msk.f32.gmra.mrb[12].mxu1 %vm1386_vm12, %v1365_v47  ;;  %v1151_v47 = vrot.slane %v4599_v43, 7 }
 0x33e   : > { %v1242_v7 = vpop.permute.xlu0 %1241  ;;  %v1351_v24 = vsel %vm1345_vm11, %v1174_v42, %v1244_v35 }
 0x33f   : > { %v1350_v14 = vsel %vm1345_vm11, %v1173_v9, %v1242_v7  ;;  %v1183_v5 = vsel %vm209_vm2, 0.0, %v1151_v47  ;;  %v1184_v9 = vsel %vm209_vm2, 0.0, %v1152_v12 }
 0x341   : > { %v1308_v13 = vpop.permute.xlu1 %1307 }
 0x342   : > { %v1306_v15 = vpop.permute.xlu0 %1305  ;;  %v1367_v45 = vsel %vm834_vm5, %v1351_v24, %v1308_v13  ;;  %v1886_v24 = vld [vmem:[%s5472_s1 + $0x110] sm:$0xf] }
 0x343   : > { %v1366_v16 = vsel %vm834_vm5, %v1350_v14, %v1306_v15 }
 0x344   : > { %3597 = vmatprep.mubr.msk.f32.mxu1 %vm1386_vm12, %v1366_v16  ;;  %v3721_v16 = vpack.c.bf16 %v1886_v24, %v1885_v40 }
 0x345   : > { %v1248_v54 = vpop.permute.xlu1 %1247  ;;  %3598 = vmatmul.mubr.msk.f32.gmra.mrb[14].mxu1 %vm1386_vm12, %v1367_v45  ;;  %v4698_v45 = vld [vmem:[%s5472_s1 + $0x130] ss:$0 sm:$0xff] }
 0x346   : > { %v1246_v20 = vpop.permute.xlu0 %1245  ;;  %v1353_v30 = vsel %vm1345_vm11, %v1176_v29, %v1248_v54  ;;  %3723 = vmatprep.subr.msk.bf16.mxu1 %vm3722_vm15, %v3721_v16 }
 0x347   : > { %v1352_v27 = vsel %vm1345_vm11, %v1175_v25, %v1246_v20  ;;  %3726 = vmatpush3.bf16.msk.msra.mxu1 %vm3722_vm15, %v3721_v16 }
 0x349   : > { %v1312_v28 = vpop.permute.xlu1 %1311 }
 0x34a   : > { %v1310_v22 = vpop.permute.xlu0 %1309  ;;  %v1369_v58 = vsel %vm834_vm5, %v1353_v30, %v1312_v28 }
 0x34b   : > { %v1368_v33 = vsel %vm834_vm5, %v1352_v27, %v1310_v22 }
 0x34c   : > { %3600 = vmatprep.mubr.msk.f32.mxu1 %vm1386_vm12, %v1368_v33 }
 0x34d   : > { %v1252_v37 = vpop.permute.xlu1 %1251  ;;  %3601 = vmatmul.mubr.msk.f32.gmra.mrb[16].mxu1 %vm1386_vm12, %v1369_v58 }
 0x34e   : > { %v1250_v39 = vpop.permute.xlu0 %1249  ;;  %v1355_v49 = vsel %vm1345_vm11, %v1178_v61, %v1252_v37 }
 0x34f   : > { %v1354_v44 = vsel %vm1345_vm11, %v1177_v31, %v1250_v39 }
 0x351   : > { %v1316_v4 = vpop.permute.xlu1 %1315 }
 0x352   : > { %v1314_v48 = vpop.permute.xlu0 %1313  ;;  %v1371_v62 = vsel %vm834_vm5, %v1355_v49, %v1316_v4 }
 0x353   : > { %v1370_v50 = vsel %vm834_vm5, %v1354_v44, %v1314_v48 }
 0x354   : > { %3603 = vmatprep.mubr.msk.f32.mxu1 %vm1386_vm12, %v1370_v50 }
 0x355   : > { %v1256_v17 = vpop.permute.xlu1 %1255  ;;  %3604 = vmatmul.mubr.msk.f32.gmra.mrb[18].mxu1 %vm1386_vm12, %v1371_v62 }
 0x356   : > { %v1254_v53 = vpop.permute.xlu0 %1253  ;;  %v1357_v11 = vsel %vm1345_vm11, %v1180_v10, %v1256_v17 }
 0x357   : > { %v1356_v57 = vsel %vm1345_vm11, %v1179_v55, %v1254_v53 }
 0x359   : > { %v1320_v56 = vpop.permute.xlu1 %1319 }
 0x35a   : > { %v1318_v0 = vpop.permute.xlu0 %1317  ;;  %v1373_v41 = vsel %vm834_vm5, %v1357_v11, %v1320_v56 }
 0x35b   : > { %v1372_v18 = vsel %vm834_vm5, %v1356_v57, %v1318_v0 }
 0x35c   : > { %3606 = vmatprep.mubr.msk.f32.mxu1 %vm1386_vm12, %v1372_v18 }
 0x35d   : > { %v1260_v8 = vpop.permute.xlu1 %1259  ;;  %3607 = vmatmul.mubr.msk.f32.gmra.mrb[20].mxu1 %vm1386_vm12, %v1373_v41 }
 0x35e   : > { %v1258_v60 = vpop.permute.xlu0 %1257  ;;  %v1359_v2 = vsel %vm1345_vm11, %v1182_v63, %v1260_v8 }
 0x35f   : > { %v1358_v21 = vsel %vm1345_vm11, %v1181_v36, %v1258_v60 }
 0x361   : > { %v1324_v6 = vpop.permute.xlu1 %1323 }
 0x362   : > { %v1322_v1 = vpop.permute.xlu0 %1321  ;;  %v1375_v23 = vsel %vm834_vm5, %v1359_v2, %v1324_v6 }
 0x363   : > { %v1374_v3 = vsel %vm834_vm5, %v1358_v21, %v1322_v1 }
 0x364   : > { %3609 = vmatprep.mubr.msk.f32.mxu1 %vm1386_vm12, %v1374_v3 }
 0x365   : > { %v1264_v34 = vpop.permute.xlu1 %1263  ;;  %3610 = vmatmul.mubr.msk.f32.gmra.mrb[22].mxu1 %vm1386_vm12, %v1375_v23 }
 0x366   : > { %v1262_v35 = vpop.permute.xlu0 %1261  ;;  %v1361_v14 = vsel %vm1345_vm11, %v1184_v9, %v1264_v34 }
 0x367   : > { %v1360_v13 = vsel %vm1345_vm11, %v1183_v5, %v1262_v35 }
 0x369   : > { %v1328_v7 = vpop.permute.xlu1 %1327 }
 0x36a   : > { %v1326_v42 = vpop.permute.xlu0 %1325  ;;  %v1377_v43 = vsel %vm834_vm5, %v1361_v14, %v1328_v7 }
 0x36b   : > { %v1376_v15 = vsel %vm834_vm5, %v1360_v13, %v1326_v42 }
 0x36c   : > { %3612 = vmatprep.mubr.msk.f32.mxu1 %vm1386_vm12, %v1376_v15 }
 0x36d   : > { %3613 = vmatmul.mubr.msk.f32.gmra.mrb[24].mxu1 %vm1386_vm12, %v1377_v43 }
 0x408   : > { %v3593_v46 = vpop.f32.mrb[10].mxu1 }
 0x409   : > { %v1507_v54 = vadd.f32 %v3593_v46, %v4698_v45  ;;  %v1501_v19 = vpop.f32.mrb[11].mxu1 }
 0x40a   : > { %v1502_v20 = vadd.f32 %v4698_v45, %v1501_v19 }
 0x40b   : > { %v1597_v25 = vmul.f32 0.02, %v1507_v54  ;;  %vm1581_vm5 = vcmp.gt.f32.partialorder %v1507_v54, 0.0 }
 0x40c   : > { %v1596_v28 = vmul.f32 0.02, %v1502_v20  ;;  %vm1580_vm1 = vcmp.gt.f32.partialorder %v1502_v20, 0.0 }
 0x40d   : > { %v4702_v29 = vsel %vm1581_vm5, %v1507_v54, %v1597_v25 }
 0x40e   : > { %1742 = vrot.lane.b32.xlu1 %v4702_v29, %s3903_s6  ;;  %v4706_v27 = vsel %vm1580_vm1, %v1502_v20, %v1596_v28  ;;  %v1693_v22 = vrot.slane %v4702_v29, 1 }
 0x40f   : > { %1740 = vrot.lane.b32.xlu0 %v4706_v27, %s3903_s6  ;;  %v1692_v30 = vrot.slane %v4706_v27, 1 }
 0x410   : > { %v3596_v33 = vpop.f32.mrb[12].mxu1  ;;  %v1725_v58 = vsel %vm258_vm0, %v1693_v22, 0.0 }
 0x411   : > { %v1517_v38 = vadd.f32 %v3596_v33, %v4698_v45  ;;  %v1511_v37 = vpop.f32.mrb[13].mxu1  ;;  %v1724_v26 = vsel %vm258_vm0, %v1692_v30, 0.0 }
 0x412   : > { %v1512_v39 = vadd.f32 %v4698_v45, %v1511_v37  ;;  %1806 = vrot.lane.b32.xlu1 %v1725_v58, %s3901_s27 }
 0x413   : > { %v1599_v31 = vmul.f32 0.02, %v1517_v38  ;;  %1804 = vrot.lane.b32.xlu0 %v1724_v26, %s3901_s27  ;;  %vm1583_vm3 = vcmp.gt.f32.partialorder %v1517_v38, 0.0 }
 0x414   : > { %v1598_v4 = vmul.f32 0.02, %v1512_v39  ;;  %vm1582_vm4 = vcmp.gt.f32.partialorder %v1512_v39, 0.0 }
 0x415   : > { %v4718_v61 = vsel %vm1583_vm3, %v1517_v38, %v1599_v31 }
 0x416   : > { %1746 = vrot.lane.b32.xlu1 %v4718_v61, %s3903_s6  ;;  %v4722_v44 = vsel %vm1582_vm4, %v1512_v39, %v1598_v4  ;;  %v1695_v48 = vrot.slane %v4718_v61, 1  ;;  %vm1852_vm4 = vcmask 31744  }
 0x417   : > { %1744 = vrot.lane.b32.xlu0 %v4722_v44, %s3903_s6  ;;  %v1694_v49 = vrot.slane %v4722_v44, 1 }
 0x418   : > { %v3599_v50 = vpop.f32.mrb[14].mxu1  ;;  %v1727_v62 = vsel %vm258_vm0, %v1695_v48, 0.0 }
 0x419   : > { %v1527_v51 = vadd.f32 %v3599_v50, %v4698_v45  ;;  %v1521_v17 = vpop.f32.mrb[15].mxu1  ;;  %v1726_v52 = vsel %vm258_vm0, %v1694_v49, 0.0 }
 0x41a   : > { %v1522_v53 = vadd.f32 %v4698_v45, %v1521_v17  ;;  %1810 = vrot.lane.b32.xlu1 %v1727_v62, %s3901_s27 }
 0x41b   : > { %v1601_v55 = vmul.f32 0.02, %v1527_v51  ;;  %1808 = vrot.lane.b32.xlu0 %v1726_v52, %s3901_s27  ;;  %vm1585_vm6 = vcmp.gt.f32.partialorder %v1527_v51, 0.0 }
 0x41c   : > { %v1600_v56 = vmul.f32 0.02, %v1522_v53  ;;  %vm1584_vm7 = vcmp.gt.f32.partialorder %v1522_v53, 0.0 }
 0x41d   : > { %v4734_v10 = vsel %vm1585_vm6, %v1527_v51, %v1601_v55  ;;  %vm1892_vm6 = vcmask 97280  }
 0x41e   : > { %1750 = vrot.lane.b32.xlu1 %v4734_v10, %s3903_s6  ;;  %v4738_v57 = vsel %vm1584_vm7, %v1522_v53, %v1600_v56  ;;  %v1697_v0 = vrot.slane %v4734_v10, 1  ;;  %vm2450_vm7 = vcmask 1045504  }
 0x41f   : > { %1748 = vrot.lane.b32.xlu0 %v4738_v57, %s3903_s6  ;;  %v1696_v11 = vrot.slane %v4738_v57, 1 }
 0x420   : > { %v3602_v18 = vpop.f32.mrb[16].mxu1  ;;  %v1729_v41 = vsel %vm258_vm0, %v1697_v0, 0.0 }
 0x421   : > { %v1537_v32 = vadd.f32 %v3602_v18, %v4698_v45  ;;  %v1531_v8 = vpop.f32.mrb[17].mxu1  ;;  %v1728_v59 = vsel %vm258_vm0, %v1696_v11, 0.0 }
 0x422   : > { %v1532_v60 = vadd.f32 %v4698_v45, %v1531_v8  ;;  %1814 = vrot.lane.b32.xlu1 %v1729_v41, %s3901_s27 }
 0x423   : > { %v1603_v36 = vmul.f32 0.02, %v1537_v32  ;;  %1812 = vrot.lane.b32.xlu0 %v1728_v59, %s3901_s27  ;;  %vm1587_vm8 = vcmp.gt.f32.partialorder %v1537_v32, 0.0  ;;  %v1644_v59 = vrot.slane %v4706_v27, 7 }
 0x424   : > { %v1602_v6 = vmul.f32 0.02, %v1532_v60  ;;  %vm1586_vm9 = vcmp.gt.f32.partialorder %v1532_v60, 0.0 }
 0x425   : > { %v4750_v63 = vsel %vm1587_vm8, %v1537_v32, %v1603_v36  ;;  %v1645_v36 = vrot.slane %v4702_v29, 7  ;;  %v1646_v29 = vrot.slane %v4722_v44, 7 }
 0x426   : > { %1754 = vrot.lane.b32.xlu1 %v4750_v63, %s3903_s6  ;;  %v4754_v21 = vsel %vm1586_vm9, %v1532_v60, %v1602_v6  ;;  %v1699_v1 = vrot.slane %v4750_v63, 1 }
 0x427   : > { %1752 = vrot.lane.b32.xlu0 %v4754_v21, %s3903_s6  ;;  %v1698_v2 = vrot.slane %v4754_v21, 1 }
 0x428   : > { %v3605_v3 = vpop.f32.mrb[18].mxu1  ;;  %v1731_v23 = vsel %vm258_vm0, %v1699_v1, 0.0  ;;  %v1676_v1 = vsel %vm209_vm2, 0.0, %v1644_v59 }
 0x429   : > { %v1547_v47 = vadd.f32 %v3605_v3, %v4698_v45  ;;  %v1541_v34 = vpop.f32.mrb[19].mxu1  ;;  %v1730_v12 = vsel %vm258_vm0, %v1698_v2, 0.0  ;;  %v1677_v3 = vsel %vm209_vm2, 0.0, %v1645_v36 }
 0x42a   : > { %v1542_v35 = vadd.f32 %v4698_v45, %v1541_v34  ;;  %1818 = vrot.lane.b32.xlu1 %v1731_v23, %s3901_s27 }
 0x42b   : > { %v1605_v5 = vmul.f32 0.02, %v1547_v47  ;;  %1816 = vrot.lane.b32.xlu0 %v1730_v12, %s3901_s27  ;;  %vm1589_vm10 = vcmp.gt.f32.partialorder %v1547_v47, 0.0 }
 0x42c   : > { %v1604_v7 = vmul.f32 0.02, %v1542_v35  ;;  %vm1588_vm12 = vcmp.gt.f32.partialorder %v1542_v35, 0.0 }
 0x42d   : > { %v4766_v9 = vsel %vm1589_vm10, %v1547_v47, %v1605_v5  ;;  %v1647_v5 = vrot.slane %v4718_v61, 7 }
 0x42e   : > { %1758 = vrot.lane.b32.xlu1 %v4766_v9, %s3903_s6  ;;  %v1701_v13 = vrot.slane %v4766_v9, 1  ;;  %v4771_v42 = vsel %vm1588_vm12, %v1542_v35, %v1604_v7 }
 0x42f   : > { %v1700_v14 = vrot.slane %v4771_v42, 1  ;;  %1756 = vrot.lane.b32.xlu0 %v4771_v42, %s3903_s6 }
 0x430   : > { %v3608_v15 = vpop.f32.mrb[20].mxu1  ;;  %v1733_v43 = vsel %vm258_vm0, %v1701_v13, 0.0  ;;  %v1678_v13 = vsel %vm209_vm2, 0.0, %v1646_v29 }
 0x431   : > { %v1557_v40 = vadd.f32 %v3608_v15, %v4698_v45  ;;  %v1551_v24 = vpop.f32.mrb[21].mxu1  ;;  %v1732_v16 = vsel %vm258_vm0, %v1700_v14, 0.0  ;;  %v1679_v15 = vsel %vm209_vm2, 0.0, %v1647_v5 }
 0x432   : > { %v1552_v46 = vadd.f32 %v4698_v45, %v1551_v24  ;;  %1822 = vrot.lane.b32.xlu1 %v1733_v43, %s3901_s27 }
 0x433   : > { %vm1591_vm13 = vcmp.gt.f32.partialorder %v1557_v40, 0.0  ;;  %v1607_v54 = vmul.f32 0.02, %v1557_v40  ;;  %1820 = vrot.lane.b32.xlu0 %v1732_v16, %s3901_s27 }
 0x434   : > { %vm1590_vm14 = vcmp.gt.f32.partialorder %v1552_v46, 0.0  ;;  %v1606_v19 = vmul.f32 0.02, %v1552_v46 }
 0x435   : > { %v4782_v20 = vsel %vm1591_vm13, %v1557_v40, %v1607_v54  ;;  %v1649_v54 = vrot.slane %v4734_v10, 7 }
 0x436   : > { %1762 = vrot.lane.b32.xlu1 %v4782_v20, %s3903_s6  ;;  %v4786_v25 = vsel %vm1590_vm14, %v1552_v46, %v1606_v19  ;;  %v1703_v28 = vrot.slane %v4782_v20, 1  ;;  %v1648_v46 = vrot.slane %v4738_v57, 7 }
 0x437   : > { %1760 = vrot.lane.b32.xlu0 %v4786_v25, %s3903_s6  ;;  %v1702_v22 = vrot.slane %v4786_v25, 1 }
 0x438   : > { %v3611_v30 = vpop.f32.mrb[22].mxu1  ;;  %v1735_v33 = vsel %vm258_vm0, %v1703_v28, 0.0  ;;  %v1680_v28 = vsel %vm209_vm2, 0.0, %v1648_v46 }
 0x439   : > { %v1567_v58 = vadd.f32 %v3611_v30, %v4698_v45  ;;  %v1561_v38 = vpop.f32.mrb[23].mxu1  ;;  %v1734_v37 = vsel %vm258_vm0, %v1702_v22, 0.0  ;;  %v1681_v30 = vsel %vm209_vm2, 0.0, %v1649_v54 }
 0x43a   : > { %v1562_v26 = vadd.f32 %v4698_v45, %v1561_v38  ;;  %1826 = vrot.lane.b32.xlu1 %v1735_v33, %s3901_s27 }
 0x43b   : > { %vm1593_vm15 = vcmp.gt.f32.partialorder %v1567_v58, 0.0  ;;  %v1609_v39 = vmul.f32 0.02, %v1567_v58  ;;  %1824 = vrot.lane.b32.xlu0 %v1734_v37, %s3901_s27 }
 0x43c   : > { %vm1592_vm5 = vcmp.gt.f32.partialorder %v1562_v26, 0.0  ;;  %v1608_v31 = vmul.f32 0.02, %v1562_v26 }
 0x43d   : > { %v4798_v4 = vsel %vm1593_vm15, %v1567_v58, %v1609_v39  ;;  %v1651_v39 = vrot.slane %v4750_v63, 7 }
 0x43e   : > { %1766 = vrot.lane.b32.xlu1 %v4798_v4, %s3903_s6  ;;  %v4802_v48 = vsel %vm1592_vm5, %v1562_v26, %v1608_v31  ;;  %v1705_v49 = vrot.slane %v4798_v4, 1  ;;  %v1650_v26 = vrot.slane %v4754_v21, 7  ;;  %v1657_v5 = vrot.slane %v4798_v4, 7 }
 0x43f   : > { %1764 = vrot.lane.b32.xlu0 %v4802_v48, %s3903_s6  ;;  %v1704_v50 = vrot.slane %v4802_v48, 1 }
 0x440   : > { %v3614_v62 = vpop.f32.mrb[24].mxu1  ;;  %v1737_v51 = vsel %vm258_vm0, %v1705_v49, 0.0  ;;  %v1682_v49 = vsel %vm209_vm2, 0.0, %v1650_v26 }
 0x441   : > { %v1577_v17 = vadd.f32 %v3614_v62, %v4698_v45  ;;  %v1571_v52 = vpop.f32.mrb[25].mxu1  ;;  %v1736_v53 = vsel %vm258_vm0, %v1704_v50, 0.0  ;;  %v1683_v62 = vsel %vm209_vm2, 0.0, %v1651_v39 }
 0x442   : > { %v1572_v55 = vadd.f32 %v4698_v45, %v1571_v52  ;;  %1830 = vrot.lane.b32.xlu1 %v1737_v51, %s3901_s27 }
 0x443   : > { %vm1595_vm1 = vcmp.gt.f32.partialorder %v1577_v17, 0.0  ;;  %v1611_v56 = vmul.f32 0.02, %v1577_v17  ;;  %1828 = vrot.lane.b32.xlu0 %v1736_v53, %s3901_s27 }
 0x444   : > { %vm1594_vm3 = vcmp.gt.f32.partialorder %v1572_v55, 0.0  ;;  %v1610_v0 = vmul.f32 0.02, %v1572_v55 }
 0x445   : > { %v4814_v11 = vsel %vm1595_vm1, %v1577_v17, %v1611_v56  ;;  %v1653_v56 = vrot.slane %v4766_v9, 7 }
 0x446   : > { %1770 = vrot.lane.b32.xlu1 %v4814_v11, %s3903_s6  ;;  %v4818_v18 = vsel %vm1594_vm3, %v1572_v55, %v1610_v0  ;;  %v1707_v41 = vrot.slane %v4814_v11, 1  ;;  %v1652_v55 = vrot.slane %v4771_v42, 7  ;;  %v1659_v46 = vrot.slane %v4814_v11, 7  ;;  %v2395_v11 = vld [vmem:[%s5472_s1 + $0x118] sm:$0x3f] }
 0x447   : > { %1768 = vrot.lane.b32.xlu0 %v4818_v18, %s3903_s6  ;;  %v1706_v45 = vrot.slane %v4818_v18, 1  ;;  %3643 = vmatprep.subr.msk.mxu1 %vm2450_vm7, %v2395_v11 }
 0x448   : > { %v1739_v32 = vsel %vm258_vm0, %v1707_v41, 0.0  ;;  %v1684_v41 = vsel %vm209_vm2, 0.0, %v1652_v55 }
 0x449   : > { %v1738_v8 = vsel %vm258_vm0, %v1706_v45, 0.0 }
 0x44a   : > { %1834 = vrot.lane.b32.xlu1 %v1739_v32, %s3901_s27  ;;  %v1685_v32 = vsel %vm209_vm2, 0.0, %v1653_v56 }
 0x44b   : > { %1832 = vrot.lane.b32.xlu0 %v1738_v8, %s3901_s27 }
 0x480   : > { %v1743_v60 = vpop.permute.xlu1 %1742 }
 0x481   : > { %v1741_v6 = vpop.permute.xlu0 %1740  ;;  %v1854_v34 = vsel %vm1852_vm4, %v1677_v3, %v1743_v60 }
 0x482   : > { %v1853_v23 = vsel %vm1852_vm4, %v1676_v1, %v1741_v6  ;;  %v1654_v6 = vrot.slane %v4786_v25, 7  ;;  %v1655_v1 = vrot.slane %v4782_v20, 7 }
 0x484   : > { %v1807_v2 = vpop.permute.xlu1 %1806  ;;  %v1686_v3 = vsel %vm209_vm2, 0.0, %v1654_v6 }
 0x485   : > { %v1805_v47 = vpop.permute.xlu0 %1804  ;;  %v1870_v27 = vsel %vm1345_vm11, %v1854_v34, %v1807_v2 }
 0x486   : > { %v1869_v12 = vsel %vm1345_vm11, %v1853_v23, %v1805_v47  ;;  %v1687_v47 = vsel %vm209_vm2, 0.0, %v1655_v1 }
 0x487   : > { %3619 = vmatprep.mubr.msk.f32.mxu1 %vm1892_vm6, %v1869_v12 }
 0x488   : > { %v1747_v35 = vpop.permute.xlu1 %1746  ;;  %3620 = vmatmul.mubr.msk.f32.vlgmr.msra.gmra.mrb[26].mxu1 %vm1892_vm6, %v1870_v27 }
 0x489   : > { %v1745_v7 = vpop.permute.xlu0 %1744  ;;  %v1856_v24 = vsel %vm1852_vm4, %v1679_v15, %v1747_v35  ;;  %v1656_v35 = vrot.slane %v4802_v48, 7  ;;  %v1689_v15 = vsel %vm209_vm2, 0.0, %v1657_v5  ;;  %3644 = vmatpush3.msk.msra.mxu1 %vm2450_vm7, %v2395_v11 }
 0x48a   : > { %v1855_v43 = vsel %vm1852_vm4, %v1678_v13, %v1745_v7 }
 0x48b   : > { %v1688_v13 = vsel %vm209_vm2, 0.0, %v1656_v35 }
 0x48c   : > { %v1811_v14 = vpop.permute.xlu1 %1810 }
 0x48d   : > { %v1809_v40 = vpop.permute.xlu0 %1808  ;;  %v1872_v44 = vsel %vm1345_vm11, %v1856_v24, %v1811_v14 }
 0x48e   : > { %v1871_v16 = vsel %vm1345_vm11, %v1855_v43, %v1809_v40 }
 0x48f   : > { %3622 = vmatprep.mubr.msk.f32.mxu1 %vm1892_vm6, %v1871_v16 }
 0x490   : > { %v1751_v61 = vpop.permute.xlu1 %1750  ;;  %3623 = vmatmul.mubr.msk.f32.gmra.mrb[28].mxu1 %vm1892_vm6, %v1872_v44  ;;  %v1658_v44 = vrot.slane %v4818_v18, 7 }
 0x491   : > { %v1749_v19 = vpop.permute.xlu0 %1748  ;;  %v1858_v38 = vsel %vm1852_vm4, %v1681_v30, %v1751_v61 }
 0x492   : > { %v1857_v33 = vsel %vm1852_vm4, %v1680_v28, %v1749_v19  ;;  %v1690_v54 = vsel %vm209_vm2, 0.0, %v1658_v44  ;;  %v1691_v28 = vsel %vm209_vm2, 0.0, %v1659_v46 }
 0x494   : > { %v1815_v22 = vpop.permute.xlu1 %1814 }
 0x495   : > { %v1813_v58 = vpop.permute.xlu0 %1812  ;;  %v1874_v57 = vsel %vm1345_vm11, %v1858_v38, %v1815_v22  ;;  %v4914_v38 = vld [vmem:[%s5472_s1 + $0x138] ss:$0 sm:$0xff] }
 0x496   : > { %v1873_v37 = vsel %vm1345_vm11, %v1857_v33, %v1813_v58 }
 0x497   : > { %3625 = vmatprep.mubr.msk.f32.mxu1 %vm1892_vm6, %v1873_v37 }
 0x498   : > { %v1755_v10 = vpop.permute.xlu1 %1754  ;;  %3626 = vmatmul.mubr.msk.f32.gmra.mrb[30].mxu1 %vm1892_vm6, %v1874_v57 }
 0x499   : > { %v1753_v31 = vpop.permute.xlu0 %1752  ;;  %v1860_v52 = vsel %vm1852_vm4, %v1683_v62, %v1755_v10 }
 0x49a   : > { %v1859_v51 = vsel %vm1852_vm4, %v1682_v49, %v1753_v31 }
 0x49c   : > { %v1819_v50 = vpop.permute.xlu1 %1818 }
 0x49d   : > { %v1817_v17 = vpop.permute.xlu0 %1816  ;;  %v1876_v21 = vsel %vm1345_vm11, %v1860_v52, %v1819_v50 }
 0x49e   : > { %v1875_v53 = vsel %vm1345_vm11, %v1859_v51, %v1817_v17 }
 0x49f   : > { %3628 = vmatprep.mubr.msk.f32.mxu1 %vm1892_vm6, %v1875_v53 }
 0x4a0   : > { %v1759_v63 = vpop.permute.xlu1 %1758  ;;  %3629 = vmatmul.mubr.msk.f32.gmra.mrb[32].mxu1 %vm1892_vm6, %v1876_v21 }
 0x4a1   : > { %v1757_v0 = vpop.permute.xlu0 %1756  ;;  %v1862_v60 = vsel %vm1852_vm4, %v1685_v32, %v1759_v63 }
 0x4a2   : > { %v1861_v8 = vsel %vm1852_vm4, %v1684_v41, %v1757_v0 }
 0x4a4   : > { %v1823_v45 = vpop.permute.xlu1 %1822 }
 0x4a5   : > { %v1821_v59 = vpop.permute.xlu0 %1820  ;;  %v1878_v42 = vsel %vm1345_vm11, %v1862_v60, %v1823_v45 }
 0x4a6   : > { %v1877_v36 = vsel %vm1345_vm11, %v1861_v8, %v1821_v59 }
 0x4a7   : > { %3631 = vmatprep.mubr.msk.f32.mxu1 %vm1892_vm6, %v1877_v36 }
 0x4a8   : > { %v1763_v9 = vpop.permute.xlu1 %1762  ;;  %3632 = vmatmul.mubr.msk.f32.gmra.mrb[34].mxu1 %vm1892_vm6, %v1878_v42 }
 0x4a9   : > { %v1761_v2 = vpop.permute.xlu0 %1760  ;;  %v1864_v27 = vsel %vm1852_vm4, %v1687_v47, %v1763_v9 }
 0x4aa   : > { %v1863_v34 = vsel %vm1852_vm4, %v1686_v3, %v1761_v2 }
 0x4ac   : > { %v1827_v23 = vpop.permute.xlu1 %1826 }
 0x4ad   : > { %v1825_v12 = vpop.permute.xlu0 %1824  ;;  %v1880_v25 = vsel %vm1345_vm11, %v1864_v27, %v1827_v23 }
 0x4ae   : > { %v1879_v29 = vsel %vm1345_vm11, %v1863_v34, %v1825_v12 }
 0x4af   : > { %3634 = vmatprep.mubr.msk.f32.mxu1 %vm1892_vm6, %v1879_v29 }
 0x4b0   : > { %v1767_v20 = vpop.permute.xlu1 %1766  ;;  %3635 = vmatmul.mubr.msk.f32.gmra.mrb[36].mxu1 %vm1892_vm6, %v1880_v25 }
 0x4b1   : > { %v1765_v7 = vpop.permute.xlu0 %1764  ;;  %v1866_v24 = vsel %vm1852_vm4, %v1689_v15, %v1767_v20 }
 0x4b2   : > { %v1865_v43 = vsel %vm1852_vm4, %v1688_v13, %v1765_v7 }
 0x4b4   : > { %v1831_v14 = vpop.permute.xlu1 %1830 }
 0x4b5   : > { %v1829_v40 = vpop.permute.xlu0 %1828  ;;  %v1882_v48 = vsel %vm1345_vm11, %v1866_v24, %v1831_v14 }
 0x4b6   : > { %v1881_v16 = vsel %vm1345_vm11, %v1865_v43, %v1829_v40 }
 0x4b7   : > { %3637 = vmatprep.mubr.msk.f32.mxu1 %vm1892_vm6, %v1881_v16 }
 0x4b8   : > { %v1771_v4 = vpop.permute.xlu1 %1770  ;;  %3638 = vmatmul.mubr.msk.f32.gmra.mrb[38].mxu1 %vm1892_vm6, %v1882_v48 }
 0x4b9   : > { %v1769_v61 = vpop.permute.xlu0 %1768  ;;  %v1868_v33 = vsel %vm1852_vm4, %v1691_v28, %v1771_v4 }
 0x4ba   : > { %v1867_v22 = vsel %vm1852_vm4, %v1690_v54, %v1769_v61 }
 0x4bc   : > { %v1835_v19 = vpop.permute.xlu1 %1834 }
 0x4bd   : > { %v1833_v30 = vpop.permute.xlu0 %1832  ;;  %v1884_v18 = vsel %vm1345_vm11, %v1868_v33, %v1835_v19 }
 0x4be   : > { %v1883_v58 = vsel %vm1345_vm11, %v1867_v22, %v1833_v30 }
 0x4bf   : > { %3640 = vmatprep.mubr.msk.f32.mxu1 %vm1892_vm6, %v1883_v58 }
 0x4c0   : > { %3641 = vmatmul.mubr.msk.f32.gmra.mrb[40].mxu1 %vm1892_vm6, %v1884_v18 }
 0x55b   : > { %v3621_v37 = vpop.f32.mrb[26].mxu1 }
 0x55c   : > { %v2017_v57 = vadd.f32 %v3621_v37, %v4914_v38  ;;  %v2011_v26 = vpop.f32.mrb[27].mxu1 }
 0x55d   : > { %v2012_v10 = vadd.f32 %v4914_v38, %v2011_v26 }
 0x55e   : > { %vm2091_vm8 = vcmp.gt.f32.partialorder %v2017_v57, 0.0  ;;  %v2107_v39 = vmul.f32 0.02, %v2017_v57 }
 0x55f   : > { %vm2090_vm9 = vcmp.gt.f32.partialorder %v2012_v10, 0.0  ;;  %v2106_v31 = vmul.f32 0.02, %v2012_v10 }
 0x560   : > { %v4918_v49 = vsel %vm2091_vm8, %v2017_v57, %v2107_v39 }
 0x561   : > { %2252 = vrot.lane.b32.xlu1 %v4918_v49, %s3904_s21  ;;  %v4922_v50 = vsel %vm2090_vm9, %v2012_v10, %v2106_v31  ;;  %v2203_v62 = vrot.slane %v4918_v49, 1 }
 0x562   : > { %2250 = vrot.lane.b32.xlu0 %v4922_v50, %s3904_s21  ;;  %v2202_v51 = vrot.slane %v4922_v50, 1 }
 0x563   : > { %v3624_v17 = vpop.f32.mrb[28].mxu1  ;;  %v2235_v52 = vsel %vm258_vm0, %v2203_v62, 0.0 }
 0x564   : > { %v2027_v53 = vadd.f32 %v3624_v17, %v4914_v38  ;;  %v2021_v21 = vpop.f32.mrb[29].mxu1  ;;  %v2234_v55 = vsel %vm258_vm0, %v2202_v51, 0.0 }
 0x565   : > { %v2022_v63 = vadd.f32 %v4914_v38, %v2021_v21  ;;  %2316 = vrot.lane.b32.xlu1 %v2235_v52, %s3903_s6 }
 0x566   : > { %vm2093_vm10 = vcmp.gt.f32.partialorder %v2027_v53, 0.0  ;;  %v2109_v56 = vmul.f32 0.02, %v2027_v53  ;;  %2314 = vrot.lane.b32.xlu0 %v2234_v55, %s3903_s6 }
 0x567   : > { %vm2092_vm12 = vcmp.gt.f32.partialorder %v2022_v63, 0.0  ;;  %v2108_v0 = vmul.f32 0.02, %v2022_v63 }
 0x568   : > { %v4934_v41 = vsel %vm2093_vm10, %v2027_v53, %v2109_v56 }
 0x569   : > { %2256 = vrot.lane.b32.xlu1 %v4934_v41, %s3904_s21  ;;  %v4938_v45 = vsel %vm2092_vm12, %v2022_v63, %v2108_v0  ;;  %v2205_v32 = vrot.slane %v4934_v41, 1 }
 0x56a   : > { %2254 = vrot.lane.b32.xlu0 %v4938_v45, %s3904_s21  ;;  %v2204_v8 = vrot.slane %v4938_v45, 1 }
 0x56b   : > { %v3627_v59 = vpop.f32.mrb[30].mxu1  ;;  %v2237_v60 = vsel %vm258_vm0, %v2205_v32, 0.0 }
 0x56c   : > { %v2037_v36 = vadd.f32 %v3627_v59, %v4914_v38  ;;  %v2031_v42 = vpop.f32.mrb[31].mxu1  ;;  %v2236_v6 = vsel %vm258_vm0, %v2204_v8, 0.0 }
 0x56d   : > { %v2032_v9 = vadd.f32 %v4914_v38, %v2031_v42  ;;  %2320 = vrot.lane.b32.xlu1 %v2237_v60, %s3903_s6 }
 0x56e   : > { %vm2095_vm13 = vcmp.gt.f32.partialorder %v2037_v36, 0.0  ;;  %v2111_v1 = vmul.f32 0.02, %v2037_v36  ;;  %2318 = vrot.lane.b32.xlu0 %v2236_v6, %s3903_s6 }
 0x56f   : > { %vm2094_vm14 = vcmp.gt.f32.partialorder %v2032_v9, 0.0  ;;  %v2110_v2 = vmul.f32 0.02, %v2032_v9 }
 0x570   : > { %v4950_v3 = vsel %vm2095_vm13, %v2037_v36, %v2111_v1  ;;  %vm2362_vm13 = vcmask 15360  }
 0x571   : > { %2260 = vrot.lane.b32.xlu1 %v4950_v3, %s3904_s21  ;;  %v4954_v23 = vsel %vm2094_vm14, %v2032_v9, %v2110_v2  ;;  %v2207_v47 = vrot.slane %v4950_v3, 1  ;;  %vm2401_vm14 = vcmask 48128  }
 0x572   : > { %2258 = vrot.lane.b32.xlu0 %v4954_v23, %s3904_s21  ;;  %v2206_v34 = vrot.slane %v4954_v23, 1 }
 0x573   : > { %v3630_v12 = vpop.f32.mrb[32].mxu1  ;;  %v2239_v27 = vsel %vm258_vm0, %v2207_v47, 0.0 }
 0x574   : > { %v2047_v29 = vadd.f32 %v3630_v12, %v4914_v38  ;;  %v2041_v25 = vpop.f32.mrb[33].mxu1  ;;  %v2238_v35 = vsel %vm258_vm0, %v2206_v34, 0.0 }
 0x575   : > { %v2042_v20 = vadd.f32 %v4914_v38, %v2041_v25  ;;  %2324 = vrot.lane.b32.xlu1 %v2239_v27, %s3903_s6 }
 0x576   : > { %vm2097_vm15 = vcmp.gt.f32.partialorder %v2047_v29, 0.0  ;;  %v2113_v5 = vmul.f32 0.02, %v2047_v29  ;;  %2322 = vrot.lane.b32.xlu0 %v2238_v35, %s3903_s6  ;;  %v2154_v35 = vrot.slane %v4922_v50, 7 }
 0x577   : > { %vm2096_vm5 = vcmp.gt.f32.partialorder %v2042_v20, 0.0  ;;  %v2112_v7 = vmul.f32 0.02, %v2042_v20 }
 0x578   : > { %v4966_v13 = vsel %vm2097_vm15, %v2047_v29, %v2113_v5  ;;  %v2155_v5 = vrot.slane %v4918_v49, 7  ;;  %v2156_v49 = vrot.slane %v4938_v45, 7 }
 0x579   : > { %2264 = vrot.lane.b32.xlu1 %v4966_v13, %s3904_s21  ;;  %v4970_v14 = vsel %vm2096_vm5, %v2042_v20, %v2112_v7  ;;  %v2209_v15 = vrot.slane %v4966_v13, 1 }
 0x57a   : > { %2262 = vrot.lane.b32.xlu0 %v4970_v14, %s3904_s21  ;;  %v2208_v43 = vrot.slane %v4970_v14, 1 }
 0x57b   : > { %v3633_v40 = vpop.f32.mrb[34].mxu1  ;;  %v2241_v24 = vsel %vm258_vm0, %v2209_v15, 0.0  ;;  %v2186_v15 = vsel %vm209_vm2, 0.0, %v2154_v35 }
 0x57c   : > { %v2057_v16 = vadd.f32 %v3633_v40, %v4914_v38  ;;  %v2051_v48 = vpop.f32.mrb[35].mxu1  ;;  %v2240_v44 = vsel %vm258_vm0, %v2208_v43, 0.0  ;;  %v2187_v40 = vsel %vm209_vm2, 0.0, %v2155_v5 }
 0x57d   : > { %v2052_v4 = vadd.f32 %v4914_v38, %v2051_v48  ;;  %2328 = vrot.lane.b32.xlu1 %v2241_v24, %s3903_s6 }
 0x57e   : > { %vm2099_vm1 = vcmp.gt.f32.partialorder %v2057_v16, 0.0  ;;  %v2115_v46 = vmul.f32 0.02, %v2057_v16  ;;  %2326 = vrot.lane.b32.xlu0 %v2240_v44, %s3903_s6 }
 0x57f   : > { %vm2098_vm3 = vcmp.gt.f32.partialorder %v2052_v4, 0.0  ;;  %v2114_v61 = vmul.f32 0.02, %v2052_v4 }
 0x580   : > { %v4982_v54 = vsel %vm2099_vm1, %v2057_v16, %v2115_v46  ;;  %v2157_v46 = vrot.slane %v4934_v41, 7 }
 0x581   : > { %2268 = vrot.lane.b32.xlu1 %v4982_v54, %s3904_s21  ;;  %v4986_v19 = vsel %vm2098_vm3, %v2052_v4, %v2114_v61  ;;  %v2211_v28 = vrot.slane %v4982_v54, 1 }
 0x582   : > { %2266 = vrot.lane.b32.xlu0 %v4986_v19, %s3904_s21  ;;  %v2210_v22 = vrot.slane %v4986_v19, 1 }
 0x583   : > { %v3636_v30 = vpop.f32.mrb[36].mxu1  ;;  %v2243_v33 = vsel %vm258_vm0, %v2211_v28, 0.0  ;;  %v2188_v28 = vsel %vm209_vm2, 0.0, %v2156_v49 }
 0x584   : > { %v2067_v58 = vadd.f32 %v3636_v30, %v4914_v38  ;;  %v2061_v18 = vpop.f32.mrb[37].mxu1  ;;  %v2242_v11 = vsel %vm258_vm0, %v2210_v22, 0.0  ;;  %v2189_v30 = vsel %vm209_vm2, 0.0, %v2157_v46 }
 0x585   : > { %v2062_v37 = vadd.f32 %v4914_v38, %v2061_v18  ;;  %2332 = vrot.lane.b32.xlu1 %v2243_v33, %s3903_s6 }
 0x586   : > { %vm2101_vm6 = vcmp.gt.f32.partialorder %v2067_v58, 0.0  ;;  %v2117_v57 = vmul.f32 0.02, %v2067_v58  ;;  %2330 = vrot.lane.b32.xlu0 %v2242_v11, %s3903_s6 }
 0x587   : > { %vm2100_vm7 = vcmp.gt.f32.partialorder %v2062_v37, 0.0  ;;  %v2116_v26 = vmul.f32 0.02, %v2062_v37 }
 0x588   : > { %v4998_v10 = vsel %vm2101_vm6, %v2067_v58, %v2117_v57  ;;  %v2159_v57 = vrot.slane %v4950_v3, 7 }
 0x589   : > { %2272 = vrot.lane.b32.xlu1 %v4998_v10, %s3904_s21  ;;  %v5002_v39 = vsel %vm2100_vm7, %v2062_v37, %v2116_v26  ;;  %v2213_v31 = vrot.slane %v4998_v10, 1  ;;  %v2158_v37 = vrot.slane %v4954_v23, 7  ;;  %vm2814_vm7 = vcmask 1041409  }
 0x58a   : > { %2270 = vrot.lane.b32.xlu0 %v5002_v39, %s3904_s21  ;;  %v2212_v62 = vrot.slane %v5002_v39, 1 }
 0x58b   : > { %v3639_v51 = vpop.f32.mrb[38].mxu1  ;;  %v2245_v17 = vsel %vm258_vm0, %v2213_v31, 0.0  ;;  %v2190_v31 = vsel %vm209_vm2, 0.0, %v2158_v37 }
 0x58c   : > { %v2077_v52 = vadd.f32 %v3639_v51, %v4914_v38  ;;  %v2071_v53 = vpop.f32.mrb[39].mxu1  ;;  %v2244_v21 = vsel %vm258_vm0, %v2212_v62, 0.0  ;;  %v2191_v51 = vsel %vm209_vm2, 0.0, %v2159_v57 }
 0x58d   : > { %v2072_v55 = vadd.f32 %v4914_v38, %v2071_v53  ;;  %2336 = vrot.lane.b32.xlu1 %v2245_v17, %s3903_s6 }
 0x58e   : > { %vm2103_vm8 = vcmp.gt.f32.partialorder %v2077_v52, 0.0  ;;  %v2119_v63 = vmul.f32 0.02, %v2077_v52  ;;  %2334 = vrot.lane.b32.xlu0 %v2244_v21, %s3903_s6 }
 0x58f   : > { %vm2102_vm9 = vcmp.gt.f32.partialorder %v2072_v55, 0.0  ;;  %v2118_v56 = vmul.f32 0.02, %v2072_v55 }
 0x590   : > { %v5014_v0 = vsel %vm2103_vm8, %v2077_v52, %v2119_v63  ;;  %v2161_v63 = vrot.slane %v4966_v13, 7  ;;  %vm2817_vm8 = vcmask 1042434  }
 0x591   : > { %2276 = vrot.lane.b32.xlu1 %v5014_v0, %s3904_s21  ;;  %v5018_v32 = vsel %vm2102_vm9, %v2072_v55, %v2118_v56  ;;  %v2215_v8 = vrot.slane %v5014_v0, 1  ;;  %v2160_v55 = vrot.slane %v4970_v14, 7  ;;  %v2167_v46 = vrot.slane %v5014_v0, 7 }
 0x592   : > { %2274 = vrot.lane.b32.xlu0 %v5018_v32, %s3904_s21  ;;  %v2214_v59 = vrot.slane %v5018_v32, 1 }
 0x593   : > { %v3642_v60 = vpop.f32.mrb[40].mxu1  ;;  %v2247_v36 = vsel %vm258_vm0, %v2215_v8, 0.0  ;;  %v2192_v8 = vsel %vm209_vm2, 0.0, %v2160_v55 }
 0x594   : > { %v2087_v42 = vadd.f32 %v3642_v60, %v4914_v38  ;;  %v2081_v6 = vpop.f32.mrb[41].mxu1  ;;  %v2246_v9 = vsel %vm258_vm0, %v2214_v59, 0.0  ;;  %v2193_v60 = vsel %vm209_vm2, 0.0, %v2161_v63  ;;  %v5134_v63 = vld [vmem:[%s5472_s1 + $0x148] sm:$0xff] }
 0x595   : > { %v2082_v1 = vadd.f32 %v4914_v38, %v2081_v6  ;;  %2340 = vrot.lane.b32.xlu1 %v2247_v36, %s3903_s6 }
 0x596   : > { %vm2105_vm10 = vcmp.gt.f32.partialorder %v2087_v42, 0.0  ;;  %v2121_v2 = vmul.f32 0.02, %v2087_v42  ;;  %2338 = vrot.lane.b32.xlu0 %v2246_v9, %s3903_s6 }
 0x597   : > { %vm2104_vm12 = vcmp.gt.f32.partialorder %v2082_v1, 0.0  ;;  %v2120_v47 = vmul.f32 0.02, %v2082_v1 }
 0x598   : > { %v5030_v34 = vsel %vm2105_vm10, %v2087_v42, %v2121_v2  ;;  %v2163_v2 = vrot.slane %v4982_v54, 7 }
 0x599   : > { %2280 = vrot.lane.b32.xlu1 %v5030_v34, %s3904_s21  ;;  %v5034_v12 = vsel %vm2104_vm12, %v2082_v1, %v2120_v47  ;;  %v2217_v27 = vrot.slane %v5030_v34, 1  ;;  %v2162_v1 = vrot.slane %v4986_v19, 7  ;;  %v2169_v37 = vrot.slane %v5030_v34, 7  ;;  %v5127_v34 = vld [vmem:[%s5472_s1 + $0x140] ss:$0 sm:$0xff] }
 0x59a   : > { %2278 = vrot.lane.b32.xlu0 %v5034_v12, %s3904_s21  ;;  %v2216_v38 = vrot.slane %v5034_v12, 1  ;;  %vm2820_vm12 = vcmask 1043459   ;;  %s3839_s21 = scalar_lea.vmem %s3838_s16, 512 }
 0x59b   : > { %v2249_v29 = vsel %vm258_vm0, %v2217_v27, 0.0  ;;  %v2194_v27 = vsel %vm209_vm2, 0.0, %v2162_v1  ;;  %p3841_p1 = scmp.lt.s32.totalorder %s3839_s21, %s3833_s8 }
 0x59c   : > { %v2248_v25 = vsel %vm258_vm0, %v2216_v38, 0.0 }
 0x59d   : > { %2344 = vrot.lane.b32.xlu1 %v2249_v29, %s3903_s6  ;;  %v2195_v29 = vsel %vm209_vm2, 0.0, %v2163_v2  ;;  %p3842_p2 = por %p3841_p1, %p3840_p0 }
 0x59e   : > { %2342 = vrot.lane.b32.xlu0 %v2248_v25, %s3903_s6 }
 0x59f   : > { %p3843_p3 = pnand %p3842_p2, %p3836_p13 }
 0x5d3   : > { %v2253_v20 = vpop.permute.xlu1 %2252 }
 0x5d4   : > { %v2251_v7 = vpop.permute.xlu0 %2250  ;;  %v2364_v48 = vsel %vm2362_vm13, %v2187_v40, %v2253_v20 }
 0x5d5   : > { %v2363_v24 = vsel %vm2362_vm13, %v2186_v15, %v2251_v7  ;;  %v2164_v7 = vrot.slane %v5002_v39, 7  ;;  %v2165_v15 = vrot.slane %v4998_v10, 7 }
 0x5d7   : > { %v2317_v43 = vpop.permute.xlu1 %2316  ;;  %v2196_v40 = vsel %vm209_vm2, 0.0, %v2164_v7 }
 0x5d8   : > { %v2315_v16 = vpop.permute.xlu0 %2314  ;;  %v2380_v50 = vsel %vm1852_vm4, %v2364_v48, %v2317_v43 }
 0x5d9   : > { %v2379_v44 = vsel %vm1852_vm4, %v2363_v24, %v2315_v16  ;;  %v2197_v16 = vsel %vm209_vm2, 0.0, %v2165_v15 }
 0x5da   : > { %3645 = vmatprep.mubr.msk.f32.mxu1 %vm2401_vm14, %v2379_v44 }
 0x5db   : > { %v2257_v4 = vpop.permute.xlu1 %2256  ;;  %3646 = vmatmul.mubr.msk.f32.vlgmr.msra.gmra.mrb[42].mxu1 %vm2401_vm14, %v2380_v50 }
 0x5dc   : > { %v2255_v61 = vpop.permute.xlu0 %2254  ;;  %v2366_v18 = vsel %vm2362_vm13, %v2189_v30, %v2257_v4  ;;  %v2166_v4 = vrot.slane %v5018_v32, 7  ;;  %v2199_v30 = vsel %vm209_vm2, 0.0, %v2167_v46 }
 0x5dd   : > { %v2365_v33 = vsel %vm2362_vm13, %v2188_v28, %v2255_v61 }
 0x5de   : > { %v2198_v28 = vsel %vm209_vm2, 0.0, %v2166_v4 }
 0x5df   : > { %v2321_v22 = vpop.permute.xlu1 %2320 }
 0x5e0   : > { %v2319_v58 = vpop.permute.xlu0 %2318  ;;  %v2382_v45 = vsel %vm1852_vm4, %v2366_v18, %v2321_v22 }
 0x5e1   : > { %v2381_v11 = vsel %vm1852_vm4, %v2365_v33, %v2319_v58 }
 0x5e2   : > { %3648 = vmatprep.mubr.msk.f32.mxu1 %vm2401_vm14, %v2381_v11 }
 0x5e3   : > { %v2261_v41 = vpop.permute.xlu1 %2260  ;;  %3649 = vmatmul.mubr.msk.f32.gmra.mrb[44].mxu1 %vm2401_vm14, %v2382_v45  ;;  %v2168_v45 = vrot.slane %v5034_v12, 7 }
 0x5e4   : > { %v2259_v26 = vpop.permute.xlu0 %2258  ;;  %v2368_v53 = vsel %vm2362_vm13, %v2191_v51, %v2261_v41 }
 0x5e5   : > { %v2367_v17 = vsel %vm2362_vm13, %v2190_v31, %v2259_v26  ;;  %v2200_v57 = vsel %vm209_vm2, 0.0, %v2168_v45  ;;  %v2201_v31 = vsel %vm209_vm2, 0.0, %v2169_v37  ;;  %v5153_v37 = vld [vmem:[%s5472_s1 + $0x150] ss:$0 sm:$0xff] }
 0x5e7   : > { %v2325_v62 = vpop.permute.xlu1 %2324 }
 0x5e8   : > { %v2323_v52 = vpop.permute.xlu0 %2322  ;;  %v2384_v23 = vsel %vm1852_vm4, %v2368_v53, %v2325_v62 }
 0x5e9   : > { %v2383_v21 = vsel %vm1852_vm4, %v2367_v17, %v2323_v52 }
 0x5ea   : > { %3651 = vmatprep.mubr.msk.f32.mxu1 %vm2401_vm14, %v2383_v21 }
 0x5eb   : > { %v2265_v3 = vpop.permute.xlu1 %2264  ;;  %3652 = vmatmul.mubr.msk.f32.gmra.mrb[46].mxu1 %vm2401_vm14, %v2384_v23 }
 0x5ec   : > { %v2263_v56 = vpop.permute.xlu0 %2262  ;;  %v2370_v6 = vsel %vm2362_vm13, %v2193_v60, %v2265_v3 }
 0x5ed   : > { %v2369_v36 = vsel %vm2362_vm13, %v2192_v8, %v2263_v56 }
 0x5ef   : > { %v2329_v59 = vpop.permute.xlu1 %2328 }
 0x5f0   : > { %v2327_v42 = vpop.permute.xlu0 %2326  ;;  %v2386_v14 = vsel %vm1852_vm4, %v2370_v6, %v2329_v59 }
 0x5f1   : > { %v2385_v9 = vsel %vm1852_vm4, %v2369_v36, %v2327_v42 }
 0x5f2   : > { %3654 = vmatprep.mubr.msk.f32.mxu1 %vm2401_vm14, %v2385_v9 }
 0x5f3   : > { %v2269_v13 = vpop.permute.xlu1 %2268  ;;  %3655 = vmatmul.mubr.msk.f32.gmra.mrb[48].mxu1 %vm2401_vm14, %v2386_v14 }
 0x5f4   : > { %v2267_v47 = vpop.permute.xlu0 %2266  ;;  %v2372_v20 = vsel %vm2362_vm13, %v2195_v29, %v2269_v13 }
 0x5f5   : > { %v2371_v25 = vsel %vm2362_vm13, %v2194_v27, %v2267_v47 }
 0x5f7   : > { %v2333_v38 = vpop.permute.xlu1 %2332 }
 0x5f8   : > { %v2331_v35 = vpop.permute.xlu0 %2330  ;;  %v2388_v19 = vsel %vm1852_vm4, %v2372_v20, %v2333_v38 }
 0x5f9   : > { %v2387_v5 = vsel %vm1852_vm4, %v2371_v25, %v2331_v35 }
 0x5fa   : > { %3657 = vmatprep.mubr.msk.f32.mxu1 %vm2401_vm14, %v2387_v5 }
 0x5fb   : > { %v2273_v54 = vpop.permute.xlu1 %2272  ;;  %3658 = vmatmul.mubr.msk.f32.gmra.mrb[50].mxu1 %vm2401_vm14, %v2388_v19 }
 0x5fc   : > { %v2271_v43 = vpop.permute.xlu0 %2270  ;;  %v2374_v50 = vsel %vm2362_vm13, %v2197_v16, %v2273_v54 }
 0x5fd   : > { %v2373_v48 = vsel %vm2362_vm13, %v2196_v40, %v2271_v43 }
 0x5ff   : > { %v2337_v24 = vpop.permute.xlu1 %2336 }
 0x600   : > { %v2335_v44 = vpop.permute.xlu0 %2334  ;;  %v2390_v39 = vsel %vm1852_vm4, %v2374_v50, %v2337_v24 }
 0x601   : > { %v2389_v49 = vsel %vm1852_vm4, %v2373_v48, %v2335_v44 }
 0x602   : > { %3660 = vmatprep.mubr.msk.f32.mxu1 %vm2401_vm14, %v2389_v49 }
 0x603   : > { %v2277_v10 = vpop.permute.xlu1 %2276  ;;  %3661 = vmatmul.mubr.msk.f32.gmra.mrb[52].mxu1 %vm2401_vm14, %v2390_v39 }
 0x604   : > { %v2275_v61 = vpop.permute.xlu0 %2274  ;;  %v2376_v18 = vsel %vm2362_vm13, %v2199_v30, %v2277_v10 }
 0x605   : > { %v2375_v33 = vsel %vm2362_vm13, %v2198_v28, %v2275_v61 }
 0x607   : > { %v2341_v22 = vpop.permute.xlu1 %2340 }
 0x608   : > { %v2339_v58 = vpop.permute.xlu0 %2338  ;;  %v2392_v32 = vsel %vm1852_vm4, %v2376_v18, %v2341_v22 }
 0x609   : > { %v2391_v11 = vsel %vm1852_vm4, %v2375_v33, %v2339_v58 }
 0x60a   : > { %3663 = vmatprep.mubr.msk.f32.mxu1 %vm2401_vm14, %v2391_v11 }
 0x60b   : > { %v2281_v0 = vpop.permute.xlu1 %2280  ;;  %3664 = vmatmul.mubr.msk.f32.gmra.mrb[54].mxu1 %vm2401_vm14, %v2392_v32 }
 0x60c   : > { %v2279_v41 = vpop.permute.xlu0 %2278  ;;  %v2378_v17 = vsel %vm2362_vm13, %v2201_v31, %v2281_v0 }
 0x60d   : > { %v2377_v62 = vsel %vm2362_vm13, %v2200_v57, %v2279_v41  ;;  %vm2823_vm13 = vcmask 1044484  }
 0x60f   : > { %v2345_v26 = vpop.permute.xlu1 %2344 }
 0x610   : > { %v2343_v51 = vpop.permute.xlu0 %2342  ;;  %v2394_v12 = vsel %vm1852_vm4, %v2378_v17, %v2345_v26 }
 0x611   : > { %v2393_v52 = vsel %vm1852_vm4, %v2377_v62, %v2343_v51 }
 0x612   : > { %3666 = vmatprep.mubr.msk.f32.mxu1 %vm2401_vm14, %v2393_v52 }
 0x613   : > { %3667 = vmatmul.mubr.msk.f32.gmra.mrb[56].mxu1 %vm2401_vm14, %v2394_v12 }
 0x6ae   : > { %v3647_v53 = vpop.f32.mrb[42].mxu1 }
 0x6af   : > { %v2526_v21 = vadd.f32 %v3647_v53, %v5127_v34  ;;  %v2520_v23 = vpop.f32.mrb[43].mxu1 }
 0x6b0   : > { %v2521_v55 = vadd.f32 %v5127_v34, %v2520_v23 }
 0x6b1   : > { %vm2600_vm0 = vcmp.gt.f32.partialorder %v2526_v21, 0.0  ;;  %v2616_v3 = vmul.f32 0.02, %v2526_v21 }
 0x6b2   : > { %vm2599_vm2 = vcmp.gt.f32.partialorder %v2521_v55, 0.0  ;;  %v2615_v56 = vmul.f32 0.02, %v2521_v55 }
 0x6b3   : > { %v2632_v8 = vsel %vm2600_vm0, %v2526_v21, %v2616_v3 }
 0x6b4   : > { %v2650_v59 = vmul.f32 %v5134_v63, %v2632_v8  ;;  %v2631_v60 = vsel %vm2599_vm2, %v2521_v55, %v2615_v56  ;;  %vm2826_vm2 = vcmask 1045509  }
 0x6b5   : > { %v2649_v36 = vmul.f32 %v5134_v63, %v2631_v60 }
 0x6b6   : > { %v2672_v42 = vsel %vm1345_vm11, %v2650_v59, 0.0  ;;  %v3650_v6 = vpop.f32.mrb[44].mxu1 }
 0x6b7   : > { %v2673_v9 = vrot.slane %v2672_v42, 4  ;;  %v2665_v14 = vsel %vm1345_vm11, %v2649_v36, 0.0  ;;  %v2536_v1 = vadd.f32 %v3650_v6, %v5127_v34  ;;  %v2530_v13 = vpop.f32.mrb[45].mxu1 }
 0x6b8   : > { %v2666_v2 = vrot.slane %v2665_v14, 4  ;;  %v2531_v47 = vadd.f32 %v5127_v34, %v2530_v13 }
 0x6b9   : > { %v2674_v27 = vadd.f32 %v2673_v9, %v2672_v42  ;;  %vm2602_vm4 = vcmp.gt.f32.partialorder %v2536_v1, 0.0  ;;  %v2618_v38 = vmul.f32 0.02, %v2536_v1 }
 0x6ba   : > { %v2667_v29 = vadd.f32 %v2666_v2, %v2665_v14  ;;  %vm2601_vm15 = vcmp.gt.f32.partialorder %v2531_v47, 0.0  ;;  %v2617_v25 = vmul.f32 0.02, %v2531_v47 }
 0x6bb   : > { %v2675_v35 = vrot.slane %v2674_v27, 2  ;;  %v2634_v20 = vsel %vm2602_vm4, %v2536_v1, %v2618_v38  ;;  %vm2829_vm4 = vcmask 1046534  }
 0x6bc   : > { %v2668_v5 = vrot.slane %v2667_v29, 2  ;;  %v2652_v19 = vmul.f32 %v5134_v63, %v2634_v20  ;;  %v2633_v7 = vsel %vm2601_vm15, %v2531_v47, %v2617_v25  ;;  %vm2832_vm15 = vcmask 1047559  }
 0x6bd   : > { %v2676_v54 = vadd.f32 %v2675_v35, %v2674_v27  ;;  %v2651_v15 = vmul.f32 %v5134_v63, %v2633_v7 }
 0x6be   : > { %v2686_v43 = vsel %vm1345_vm11, %v2652_v19, 0.0  ;;  %v3653_v40 = vpop.f32.mrb[46].mxu1  ;;  %v2669_v24 = vadd.f32 %v2668_v5, %v2667_v29 }
 0x6bf   : > { %v2687_v16 = vrot.slane %v2686_v43, 4  ;;  %v2679_v48 = vsel %vm1345_vm11, %v2651_v15, 0.0  ;;  %v2546_v44 = vadd.f32 %v3653_v40, %v5127_v34  ;;  %v2540_v50 = vpop.f32.mrb[47].mxu1  ;;  %v2677_v4 = vrot.slane %v2676_v54, 1 }
 0x6c0   : > { %v2680_v49 = vrot.slane %v2679_v48, 4  ;;  %v2541_v39 = vadd.f32 %v5127_v34, %v2540_v50  ;;  %v2670_v22 = vrot.slane %v2669_v24, 1 }
 0x6c1   : > { %v2688_v10 = vadd.f32 %v2687_v16, %v2686_v43  ;;  %vm2604_vm5 = vcmp.gt.f32.partialorder %v2546_v44, 0.0  ;;  %v2620_v46 = vmul.f32 0.02, %v2546_v44  ;;  %v2678_v32 = vadd.f32 %v2677_v4, %v2676_v54 }
 0x6c2   : > { %v2681_v61 = vadd.f32 %v2680_v49, %v2679_v48  ;;  %vm2603_vm1 = vcmp.gt.f32.partialorder %v2541_v39, 0.0  ;;  %v2619_v28 = vmul.f32 0.02, %v2541_v39  ;;  %v2671_v31 = vadd.f32 %v2670_v22, %v2669_v24 }
 0x6c3   : > { %v2689_v30 = vrot.slane %v2688_v10, 2  ;;  %v2636_v33 = vsel %vm2604_vm5, %v2546_v44, %v2620_v46  ;;  %v5160_v55 = vadd.f32 %v5153_v37, %v2678_v32 }
 0x6c4   : > { %v2682_v58 = vrot.slane %v2681_v61, 2  ;;  %v2654_v18 = vmul.f32 %v5134_v63, %v2636_v33  ;;  %v2635_v11 = vsel %vm2603_vm1, %v2541_v39, %v2619_v28  ;;  %v5169_v38 = vadd.f32 %v5153_v37, %v2671_v31 }
 0x6c5   : > { %v2690_v45 = vadd.f32 %v2689_v30, %v2688_v10  ;;  %v2653_v0 = vmul.f32 %v5134_v63, %v2635_v11  ;;  %v2813_v27 = vrot.slane %v5160_v55, 7 }
 0x6c6   : > { %v2683_v41 = vadd.f32 %v2682_v58, %v2681_v61  ;;  %v2700_v57 = vsel %vm1345_vm11, %v2654_v18, 0.0  ;;  %v3656_v26 = vpop.f32.mrb[48].mxu1 }
 0x6c7   : > { %v2701_v62 = vrot.slane %v2700_v57, 4  ;;  %v2693_v51 = vsel %vm1345_vm11, %v2653_v0, 0.0  ;;  %v2556_v17 = vadd.f32 %v3656_v26, %v5127_v34  ;;  %v2550_v52 = vpop.f32.mrb[49].mxu1  ;;  %v2691_v12 = vrot.slane %v2690_v45, 1 }
 0x6c8   : > { %v2684_v53 = vrot.slane %v2683_v41, 1  ;;  %v2694_v21 = vrot.slane %v2693_v51, 4  ;;  %v2551_v23 = vadd.f32 %v5127_v34, %v2550_v52  ;;  %v2815_v18 = vsel %vm2814_vm7, %v2813_v27, %v5169_v38 }
 0x6c9   : > { %v2702_v3 = vadd.f32 %v2701_v62, %v2700_v57  ;;  %vm2606_vm3 = vcmp.gt.f32.partialorder %v2556_v17, 0.0  ;;  %v2622_v56 = vmul.f32 0.02, %v2556_v17  ;;  %v2692_v6 = vadd.f32 %v2691_v12, %v2690_v45 }
 0x6ca   : > { %v2685_v8 = vadd.f32 %v2684_v53, %v2683_v41  ;;  %v2695_v59 = vadd.f32 %v2694_v21, %v2693_v51  ;;  %vm2605_vm6 = vcmp.gt.f32.partialorder %v2551_v23, 0.0  ;;  %v2621_v60 = vmul.f32 0.02, %v2551_v23 }
 0x6cb   : > { %v2703_v36 = vrot.slane %v2702_v3, 2  ;;  %v2638_v42 = vsel %vm2606_vm3, %v2556_v17, %v2622_v56  ;;  %v5175_v15 = vadd.f32 %v5153_v37, %v2692_v6 }
 0x6cc   : > { %v2696_v9 = vrot.slane %v2695_v59, 2  ;;  %v2656_v14 = vmul.f32 %v5134_v63, %v2638_v42  ;;  %v2637_v1 = vsel %vm2605_vm6, %v2551_v23, %v2621_v60  ;;  %v5164_v13 = vadd.f32 %v5153_v37, %v2685_v8 }
 0x6cd   : > { %v2704_v2 = vadd.f32 %v2703_v36, %v2702_v3  ;;  %v2655_v47 = vmul.f32 %v5134_v63, %v2637_v1  ;;  %v2819_v41 = vrot.slane %v5175_v15, 5 }
 0x6ce   : > { %v2697_v29 = vadd.f32 %v2696_v9, %v2695_v59  ;;  %v2714_v25 = vsel %vm1345_vm11, %v2656_v14, 0.0  ;;  %v3659_v35 = vpop.f32.mrb[50].mxu1  ;;  %v2816_v16 = vrot.slane %v5164_v13, 6 }
 0x6cf   : > { %v2705_v20 = vrot.slane %v2704_v2, 1  ;;  %v2715_v5 = vrot.slane %v2714_v25, 4  ;;  %v2707_v19 = vsel %vm1345_vm11, %v2655_v47, 0.0  ;;  %v2566_v7 = vadd.f32 %v3659_v35, %v5127_v34  ;;  %v2560_v54 = vpop.f32.mrb[51].mxu1 }
 0x6d0   : > { %v2698_v43 = vrot.slane %v2697_v29, 1  ;;  %v2708_v40 = vrot.slane %v2707_v19, 4  ;;  %v2561_v24 = vadd.f32 %v5127_v34, %v2560_v54  ;;  %v2818_v0 = vsel %vm2817_vm8, %v2816_v16, %v2815_v18 }
 0x6d1   : > { %v2716_v48 = vadd.f32 %v2715_v5, %v2714_v25  ;;  %vm2608_vm9 = vcmp.gt.f32.partialorder %v2566_v7, 0.0  ;;  %v2624_v44 = vmul.f32 0.02, %v2566_v7  ;;  %v2706_v4 = vadd.f32 %v2705_v20, %v2704_v2 }
 0x6d2   : > { %v2699_v50 = vadd.f32 %v2698_v43, %v2697_v29  ;;  %v2709_v49 = vadd.f32 %v2708_v40, %v2707_v19  ;;  %vm2607_vm10 = vcmp.gt.f32.partialorder %v2561_v24, 0.0  ;;  %v2623_v39 = vmul.f32 0.02, %v2561_v24 }
 0x6d3   : > { %v2717_v10 = vrot.slane %v2716_v48, 2  ;;  %v2640_v46 = vsel %vm2608_vm9, %v2566_v7, %v2624_v44  ;;  %v5193_v12 = vadd.f32 %v5153_v37, %v2706_v4  ;;  %v2821_v36 = vsel %vm2820_vm12, %v2819_v41, %v2818_v0 }
 0x6d4   : > { %v5180_v61 = vadd.f32 %v5153_v37, %v2699_v50  ;;  %v2710_v28 = vrot.slane %v2709_v49, 2  ;;  %v2658_v22 = vmul.f32 %v5134_v63, %v2640_v46  ;;  %v2639_v30 = vsel %vm2607_vm10, %v2561_v24, %v2623_v39 }
 0x6d5   : > { %v2718_v33 = vadd.f32 %v2717_v10, %v2716_v48  ;;  %v2657_v58 = vmul.f32 %v5134_v63, %v2639_v30  ;;  %v2825_v47 = vrot.slane %v5193_v12, 3 }
 0x6d6   : > { %v2711_v11 = vadd.f32 %v2710_v28, %v2709_v49  ;;  %v2728_v32 = vsel %vm1345_vm11, %v2658_v22, 0.0  ;;  %v3662_v45 = vpop.f32.mrb[52].mxu1  ;;  %v2822_v53 = vrot.slane %v5180_v61, 4 }
 0x6d7   : > { %v2719_v57 = vrot.slane %v2718_v33, 1  ;;  %v2729_v26 = vrot.slane %v2728_v32, 4  ;;  %v2721_v31 = vsel %vm1345_vm11, %v2657_v58, 0.0  ;;  %v2576_v62 = vadd.f32 %v3662_v45, %v5127_v34  ;;  %v2570_v51 = vpop.f32.mrb[53].mxu1 }
 0x6d8   : > { %v2712_v17 = vrot.slane %v2711_v11, 1  ;;  %v2571_v52 = vadd.f32 %v5127_v34, %v2570_v51  ;;  %v2722_v21 = vrot.slane %v2721_v31, 4  ;;  %v2824_v14 = vsel %vm2823_vm13, %v2822_v53, %v2821_v36 }
 0x6d9   : > { %vm2610_vm14 = vcmp.gt.f32.partialorder %v2576_v62, 0.0  ;;  %v2626_v23 = vmul.f32 0.02, %v2576_v62  ;;  %v2720_v3 = vadd.f32 %v2719_v57, %v2718_v33  ;;  %v2730_v8 = vadd.f32 %v2729_v26, %v2728_v32 }
 0x6da   : > { %v2713_v56 = vadd.f32 %v2712_v17, %v2711_v11  ;;  %vm2609_vm0 = vcmp.gt.f32.partialorder %v2571_v52, 0.0  ;;  %v2625_v59 = vmul.f32 0.02, %v2571_v52  ;;  %v2723_v29 = vadd.f32 %v2722_v21, %v2721_v31 }
 0x6db   : > { %v2642_v60 = vsel %vm2610_vm14, %v2576_v62, %v2626_v23  ;;  %v5204_v2 = vadd.f32 %v5153_v37, %v2720_v3  ;;  %v2731_v27 = vrot.slane %v2730_v8, 2  ;;  %v2827_v43 = vsel %vm2826_vm2, %v2825_v47, %v2824_v14 }
 0x6dc   : > { %v2660_v42 = vmul.f32 %v5134_v63, %v2642_v60  ;;  %v2641_v6 = vsel %vm2609_vm0, %v2571_v52, %v2625_v59  ;;  %v5199_v9 = vadd.f32 %v5153_v37, %v2713_v56  ;;  %v2724_v49 = vrot.slane %v2723_v29, 2 }
 0x6dd   : > { %v2659_v1 = vmul.f32 %v5134_v63, %v2641_v6  ;;  %v2831_v50 = vrot.slane %v5204_v2, 1  ;;  %v2732_v10 = vadd.f32 %v2731_v27, %v2730_v8 }
 0x6de   : > { %v2742_v25 = vsel %vm1345_vm11, %v2660_v42, 0.0  ;;  %v3665_v35 = vpop.f32.mrb[54].mxu1  ;;  %v2828_v20 = vrot.slane %v5199_v9, 2  ;;  %v2725_v32 = vadd.f32 %v2724_v49, %v2723_v29 }
 0x6df   : > { %v2743_v5 = vrot.slane %v2742_v25, 4  ;;  %v2735_v19 = vsel %vm1345_vm11, %v2659_v1, 0.0  ;;  %v2586_v7 = vadd.f32 %v3665_v35, %v5127_v34  ;;  %v2580_v54 = vpop.f32.mrb[55].mxu1  ;;  %v2733_v57 = vrot.slane %v2732_v10, 1 }
 0x6e0   : > { %v2736_v40 = vrot.slane %v2735_v19, 4  ;;  %v2581_v24 = vadd.f32 %v5127_v34, %v2580_v54  ;;  %v2830_v16 = vsel %vm2829_vm4, %v2828_v20, %v2827_v43  ;;  %v2726_v60 = vrot.slane %v2725_v32, 1 }
 0x6e1   : > { %v2744_v48 = vadd.f32 %v2743_v5, %v2742_v25  ;;  %vm2612_vm5 = vcmp.gt.f32.partialorder %v2586_v7, 0.0  ;;  %v2628_v44 = vmul.f32 0.02, %v2586_v7  ;;  %v2833_v28 = vsel %vm2832_vm15, %v2831_v50, %v2830_v16 }
 0x6e2   : > { %v2737_v39 = vadd.f32 %v2736_v40, %v2735_v19  ;;  %vm2611_vm1 = vcmp.gt.f32.partialorder %v2581_v24, 0.0  ;;  %v2627_v4 = vmul.f32 0.02, %v2581_v24  ;;  %v2850_v11 = vsel %vm1345_vm11, %v2833_v28, -inf }
 0x6e3   : > { %v2644_v46 = vsel %vm2612_vm5, %v2586_v7, %v2628_v44  ;;  %v2745_v58 = vrot.slane %v2744_v48, 2  ;;  %2851 = vmax.xlane.f32.xlu0 %v2850_v11  ;;  %v2734_v59 = vadd.f32 %v2733_v57, %v2732_v10  ;;  %v2727_v5 = vadd.f32 %v2726_v60, %v2725_v32 }
 0x6e4   : > { %v2738_v22 = vrot.slane %v2737_v39, 2  ;;  %v2662_v30 = vmul.f32 %v5134_v63, %v2644_v46  ;;  %v2643_v33 = vsel %vm2611_vm1, %v2581_v24, %v2627_v4 }
 0x6e5   : > { %v2661_v18 = vmul.f32 %v5134_v63, %v2643_v33  ;;  %v2746_v21 = vadd.f32 %v2745_v58, %v2744_v48  ;;  %v5227_v20 = vadd.f32 %v5153_v37, %v2734_v59  ;;  %v5235_v49 = vadd.f32 %v5153_v37, %v2727_v5 }
 0x6e6   : > { %v2739_v45 = vadd.f32 %v2738_v22, %v2737_v39  ;;  %v2756_v0 = vsel %vm1345_vm11, %v2662_v30, 0.0  ;;  %v3668_v41 = vpop.f32.mrb[56].mxu1 }
 0x6e7   : > { %v2757_v26 = vrot.slane %v2756_v0, 4  ;;  %v2749_v31 = vsel %vm1345_vm11, %v2661_v18, 0.0  ;;  %v2596_v62 = vadd.f32 %v3668_v41, %v5127_v34  ;;  %v2590_v51 = vpop.f32.mrb[57].mxu1  ;;  %v2747_v27 = vrot.slane %v2746_v21, 1 }
 0x6e8   : > { %v2740_v17 = vrot.slane %v2739_v45, 1  ;;  %v2750_v52 = vrot.slane %v2749_v31, 4  ;;  %v2591_v53 = vadd.f32 %v5127_v34, %v2590_v51  ;;  %v2834_v50 = vrot.slane %v5227_v20, 7 }
 0x6e9   : > { %v2758_v23 = vadd.f32 %v2757_v26, %v2756_v0  ;;  %vm2614_vm3 = vcmp.gt.f32.partialorder %v2596_v62, 0.0  ;;  %v2630_v3 = vmul.f32 0.02, %v2596_v62  ;;  %v2748_v24 = vadd.f32 %v2747_v27, %v2746_v21 }
 0x6ea   : > { %v2751_v56 = vadd.f32 %v2750_v52, %v2749_v31  ;;  %vm2613_vm6 = vcmp.gt.f32.partialorder %v2591_v53, 0.0  ;;  %v2629_v8 = vmul.f32 0.02, %v2591_v53  ;;  %v2741_v6 = vadd.f32 %v2740_v17, %v2739_v45 }
 0x6eb   : > { %v2759_v36 = vrot.slane %v2758_v23, 2  ;;  %v2646_v42 = vsel %vm2614_vm3, %v2596_v62, %v2630_v3  ;;  %v5242_v28 = vadd.f32 %v5153_v37, %v2748_v24  ;;  %v2835_v18 = vsel %vm2814_vm7, %v2834_v50, %v5235_v49 }
 0x6ec   : > { %v2752_v14 = vrot.slane %v2751_v56, 2  ;;  %v2664_v1 = vmul.f32 %v5134_v63, %v2646_v42  ;;  %v2645_v47 = vsel %vm2613_vm6, %v2591_v53, %v2629_v8  ;;  %v5231_v54 = vadd.f32 %v5153_v37, %v2741_v6 }
 0x6ed   : > { %v2760_v29 = vadd.f32 %v2759_v36, %v2758_v23  ;;  %v2663_v34 = vmul.f32 %v5134_v63, %v2645_v47  ;;  %v2838_v57 = vrot.slane %v5242_v28, 5 }
 0x6ee   : > { %v2753_v25 = vadd.f32 %v2752_v14, %v2751_v56  ;;  %v2770_v35 = vsel %vm1345_vm11, %v2664_v1, 0.0  ;;  %v2836_v4 = vrot.slane %v5231_v54, 6 }
 0x6ef   : > { %v2771_v19 = vrot.slane %v2770_v35, 4  ;;  %v2763_v7 = vsel %vm1345_vm11, %v2663_v34, 0.0  ;;  %v2761_v16 = vrot.slane %v2760_v29, 1 }
 0x6f0   : > { %v2754_v43 = vrot.slane %v2753_v25, 1  ;;  %v2764_v40 = vrot.slane %v2763_v7, 4  ;;  %v2837_v32 = vsel %vm2817_vm8, %v2836_v4, %v2835_v18 }
 0x6f1   : > { %v2772_v48 = vadd.f32 %v2771_v19, %v2770_v35  ;;  %v2762_v22 = vadd.f32 %v2761_v16, %v2760_v29  ;;  %v2839_v62 = vsel %vm2820_vm12, %v2838_v57, %v2837_v32 }
 0x6f2   : > { %v2755_v44 = vadd.f32 %v2754_v43, %v2753_v25  ;;  %v2765_v63 = vadd.f32 %v2764_v40, %v2763_v7 }
 0x6f3   : > { %v2773_v39 = vrot.slane %v2772_v48, 2  ;;  %v5249_v41 = vadd.f32 %v5153_v37, %v2762_v22 }
 0x6f4   : > { %v5239_v10 = vadd.f32 %v5153_v37, %v2755_v44  ;;  %v2766_v46 = vrot.slane %v2765_v63, 2 }
 0x6f5   : > { %v2774_v30 = vadd.f32 %v2773_v39, %v2772_v48  ;;  %v2842_v52 = vrot.slane %v5249_v41, 3 }
 0x6f6   : > { %v2767_v33 = vadd.f32 %v2766_v46, %v2765_v63  ;;  %v2840_v45 = vrot.slane %v5239_v10, 4 }
 0x6f7   : > { %v2775_v58 = vrot.slane %v2774_v30, 1 }
 0x6f8   : > { %v2768_v11 = vrot.slane %v2767_v33, 1  ;;  %v2841_v17 = vsel %vm2823_vm13, %v2840_v45, %v2839_v62 }
 0x6f9   : > { %v2776_v0 = vadd.f32 %v2775_v58, %v2774_v30  ;;  %v2843_v21 = vsel %vm2826_vm2, %v2842_v52, %v2841_v17 }
 0x6fa   : > { %v2769_v26 = vadd.f32 %v2768_v11, %v2767_v33 }
 0x6fb   : > { %v5253_v31 = vadd.f32 %v5153_v37, %v2776_v0 }
 0x6fc   : > { %v5257_v51 = vadd.f32 %v5153_v37, %v2769_v26 }
 0x6fd   : > { %v2846_v23 = vrot.slane %v5253_v31, 1 }
 0x6fe   : > { %v2844_v53 = vrot.slane %v5257_v51, 2 }
 0x700   : > { %v2845_v3 = vsel %vm2829_vm4, %v2844_v53, %v2843_v21 }
 0x701   : > { %v2847_v56 = vsel %vm2832_vm15, %v2846_v23, %v2845_v3 }
 0x702   : > { %v2853_v8 = vsel %vm1345_vm11, %v2847_v56, -inf }
 0x703   : > { %2854 = vmax.xlane.f32.xlu1 %v2853_v8 }
 0x770   : > { %v2852_v59 = vpop.xlane.xlu0 %2851 }
 0x771   : > { %v2858_v37 = vrot.slane %v2852_v59, 1  ;;  %v2859_v60 = vrot.slane %v2852_v59, 2  ;;  %v2860_v36 = vrot.slane %v2852_v59, 3  ;;  %v2861_v42 = vrot.slane %v2852_v59, 4 }
 0x772   : > { %v2862_v6 = vrot.slane %v2852_v59, 5  ;;  %v2863_v14 = vrot.slane %v2852_v59, 6  ;;  %v2864_v1 = vrot.slane %v2852_v59, 7  ;;  %v2888_v47 = vsub.f32 %v5169_v38, %v2852_v59 }
 0x773   : > { %v2889_v27 = vsub.f32 %v5160_v55, %v2858_v37  ;;  %v2890_v29 = vsub.f32 %v5164_v13, %v2859_v60  ;;  %v2891_v34 = vsub.f32 %v5175_v15, %v2860_v36  ;;  %v2892_v25 = vsub.f32 %v5180_v61, %v2861_v42 }
 0x774   : > { %v2893_v35 = vsub.f32 %v5193_v12, %v2862_v6  ;;  %v2904_v5 = vmul.f32 1.442695, %v2888_v47  ;;  %v2894_v19 = vsub.f32 %v5199_v9, %v2863_v14  ;;  %v2895_v24 = vsub.f32 %v5204_v2, %v2864_v1 }
 0x775   : > { %v2906_v7 = vmul.f32 1.442695, %v2889_v27  ;;  %v2908_v43 = vmul.f32 1.442695, %v2890_v29  ;;  %v2910_v40 = vmul.f32 1.442695, %v2891_v34 }
 0x776   : > { %3781 = vpow2.f32 %v2904_v5  ;;  %v2912_v38 = vmul.f32 1.442695, %v2892_v25  ;;  %v2914_v55 = vmul.f32 1.442695, %v2893_v35  ;;  %v2916_v13 = vmul.f32 1.442695, %v2894_v19 }
 0x777   : > { %3783 = vpow2.f32 %v2906_v7  ;;  %v2918_v15 = vmul.f32 1.442695, %v2895_v24 }
 0x778   : > { %3785 = vpow2.f32 %v2908_v43 }
 0x779   : > { %3787 = vpow2.f32 %v2910_v40 }
 0x77a   : > { %3789 = vpow2.f32 %v2912_v38 }
 0x77b   : > { %3791 = vpow2.f32 %v2914_v55 }
 0x77c   : > { %3793 = vpow2.f32 %v2916_v13 }
 0x77d   : > { %3795 = vpow2.f32 %v2918_v15 }
 0x780   : > { %v5275_v61 = vpop.eup %3781 }
 0x781   : > { %v5277_v12 = vpop.eup %3783 }
 0x782   : > { %v5279_v9 = vpop.eup %3785  ;;  %v2952_v2 = vrot.slane %v5277_v12, 7 }
 0x783   : > { %v5282_v16 = vpop.eup %3787  ;;  %v2954_v48 = vrot.slane %v5279_v9, 6 }
 0x784   : > { %v5285_v44 = vpop.eup %3789  ;;  %v2953_v63 = vsel %vm2814_vm7, %v2952_v2, %v5275_v61  ;;  %v2956_v50 = vrot.slane %v5282_v16, 5 }
 0x785   : > { %v5290_v39 = vpop.eup %3791  ;;  %v2955_v4 = vsel %vm2817_vm8, %v2954_v48, %v2953_v63  ;;  %v2958_v46 = vrot.slane %v5285_v44, 4 }
 0x786   : > { %v5294_v22 = vpop.eup %3793  ;;  %v2957_v30 = vsel %vm2820_vm12, %v2956_v50, %v2955_v4  ;;  %v2960_v33 = vrot.slane %v5290_v39, 3 }
 0x787   : > { %v5298_v58 = vpop.eup %3795  ;;  %v2959_v18 = vsel %vm2823_vm13, %v2958_v46, %v2957_v30  ;;  %v2962_v11 = vrot.slane %v5294_v22, 2 }
 0x788   : > { %v2961_v32 = vsel %vm2826_vm2, %v2960_v33, %v2959_v18  ;;  %v2964_v45 = vrot.slane %v5298_v58, 1  ;;  %v3038_v33 = vlaneseq }
 0x789   : > { %v2963_v0 = vsel %vm2829_vm4, %v2962_v11, %v2961_v32 }
 0x78a   : > { %v2965_v57 = vsel %vm2832_vm15, %v2964_v45, %v2963_v0  ;;  %v3039_v18 = vshrl.u32 %v3038_v33, 7  ;;  %v3820_v33 = vld [vmem:[%s3994_s14 + $0x18] sm:$0xff] }
 0x78b   : > { %v2982_v26 = vsel %vm1345_vm11, %v2965_v57, 0.0 }
 0x78c   : > { %2983 = vadd.xlane.f32.xlu0 %v2982_v26  ;;  %v5347_v11 = vsub.s32 0, %v3039_v18 }
 0x790   : > { %v2855_v62 = vpop.xlane.xlu1 %2854 }
 0x791   : > { %v2865_v17 = vrot.slane %v2855_v62, 1  ;;  %v2866_v52 = vrot.slane %v2855_v62, 2  ;;  %v2867_v53 = vrot.slane %v2855_v62, 3  ;;  %v2868_v21 = vrot.slane %v2855_v62, 4 }
 0x792   : > { %v2869_v23 = vrot.slane %v2855_v62, 5  ;;  %v2870_v3 = vrot.slane %v2855_v62, 6  ;;  %v2871_v56 = vrot.slane %v2855_v62, 7  ;;  %v2896_v8 = vsub.f32 %v5235_v49, %v2855_v62 }
 0x793   : > { %v2897_v59 = vsub.f32 %v5227_v20, %v2865_v17  ;;  %v2898_v37 = vsub.f32 %v5231_v54, %v2866_v52  ;;  %v2899_v60 = vsub.f32 %v5242_v28, %v2867_v53  ;;  %v2900_v36 = vsub.f32 %v5239_v10, %v2868_v21 }
 0x794   : > { %v2901_v42 = vsub.f32 %v5249_v41, %v2869_v23  ;;  %v2920_v6 = vmul.f32 1.442695, %v2896_v8  ;;  %v2902_v14 = vsub.f32 %v5257_v51, %v2870_v3  ;;  %v2903_v29 = vsub.f32 %v5253_v31, %v2871_v56 }
 0x795   : > { %v2922_v1 = vmul.f32 1.442695, %v2897_v59  ;;  %v2924_v47 = vmul.f32 1.442695, %v2898_v37  ;;  %v2926_v27 = vmul.f32 1.442695, %v2899_v60 }
 0x796   : > { %3797 = vpow2.f32 %v2920_v6  ;;  %v2928_v49 = vmul.f32 1.442695, %v2900_v36  ;;  %v2930_v20 = vmul.f32 1.442695, %v2901_v42  ;;  %v2932_v54 = vmul.f32 1.442695, %v2902_v14 }
 0x797   : > { %3799 = vpow2.f32 %v2922_v1  ;;  %v2934_v28 = vmul.f32 1.442695, %v2903_v29 }
 0x798   : > { %3801 = vpow2.f32 %v2924_v47 }
 0x799   : > { %3803 = vpow2.f32 %v2926_v27 }
 0x79a   : > { %3805 = vpow2.f32 %v2928_v49 }
 0x79b   : > { %3807 = vpow2.f32 %v2930_v20 }
 0x79c   : > { %3809 = vpow2.f32 %v2932_v54 }
 0x79d   : > { %3811 = vpow2.f32 %v2934_v28 }
 0x7a0   : > { %v5315_v10 = vpop.eup %3797 }
 0x7a1   : > { %v5317_v41 = vpop.eup %3799 }
 0x7a2   : > { %v5319_v51 = vpop.eup %3801  ;;  %v2966_v31 = vrot.slane %v5317_v41, 7 }
 0x7a3   : > { %v5322_v34 = vpop.eup %3803  ;;  %v2968_v25 = vrot.slane %v5319_v51, 6 }
 0x7a4   : > { %v5325_v35 = vpop.eup %3805  ;;  %v2967_v5 = vsel %vm2814_vm7, %v2966_v31, %v5315_v10  ;;  %v2970_v19 = vrot.slane %v5322_v34, 5 }
 0x7a5   : > { %v5330_v7 = vpop.eup %3807  ;;  %v2969_v43 = vsel %vm2817_vm8, %v2968_v25, %v2967_v5  ;;  %v2972_v40 = vrot.slane %v5325_v35, 4 }
 0x7a6   : > { %v5334_v24 = vpop.eup %3809  ;;  %v2971_v38 = vsel %vm2820_vm12, %v2970_v19, %v2969_v43  ;;  %v2974_v55 = vrot.slane %v5330_v7, 3 }
 0x7a7   : > { %v5338_v13 = vpop.eup %3811  ;;  %v2973_v15 = vsel %vm2823_vm13, %v2972_v40, %v2971_v38  ;;  %v2976_v2 = vrot.slane %v5334_v24, 2 }
 0x7a8   : > { %v2975_v48 = vsel %vm2826_vm2, %v2974_v55, %v2973_v15  ;;  %v2978_v63 = vrot.slane %v5338_v13, 1 }
 0x7a9   : > { %v2977_v50 = vsel %vm2829_vm4, %v2976_v2, %v2975_v48  ;;  %v3817_v2 = vld [vmem:[%s3994_s14 + $0x8] sm:$0xff] }
 0x7aa   : > { %v2979_v4 = vsel %vm2832_vm15, %v2978_v63, %v2977_v50  ;;  %v3818_v63 = vld [vmem:[%s3994_s14 + $0x10] sm:$0xff] }
 0x7ab   : > { %v2985_v46 = vsel %vm1345_vm11, %v2979_v4, 0.0 }
 0x7ac   : > { %2986 = vadd.xlane.f32.xlu0 %v2985_v46 }
 0x819   : > { %v2984_v30 = vpop.xlane.xlu0 %2983 }
 0x81a   : > { %3813 = vrcp.f32 %v2984_v30 }
 0x824   : > { %v3814_v32 = vpop.eup %3813 }
 0x825   : > { %v3022_v45 = vmul.f32 %v3814_v32, %v5275_v61  ;;  %v2992_v0 = vrot.slane %v3814_v32, 1  ;;  %v2993_v57 = vrot.slane %v3814_v32, 2  ;;  %v2994_v53 = vrot.slane %v3814_v32, 3 }
 0x826   : > { %v2995_v3 = vrot.slane %v3814_v32, 4  ;;  %v2996_v8 = vrot.slane %v3814_v32, 5  ;;  %v2997_v37 = vrot.slane %v3814_v32, 6  ;;  %v2998_v36 = vrot.slane %v3814_v32, 7 }
 0x827   : > { %v3041_v26 = vrot.slane %v3022_v45, %v5347_v11  ;;  %v3023_v62 = vmul.f32 %v5277_v12, %v2992_v0  ;;  %v3024_v52 = vmul.f32 %v5279_v9, %v2993_v57  ;;  %v3025_v23 = vmul.f32 %v5282_v16, %v2994_v53  ;;  %v3821_v57 = vld [vmem:[%s3994_s14 + $0x20] sm:$0xff] }
 0x828   : > { %v3026_v56 = vmul.f32 %v5285_v44, %v2995_v3  ;;  %v3027_v59 = vmul.f32 %v5290_v39, %v2996_v8  ;;  %v3028_v16 = vmul.f32 %v5294_v22, %v2997_v37  ;;  %v3029_v44 = vmul.f32 %v5298_v58, %v2998_v36 }
 0x829   : > { %3043 = vbcast.lane.b32.xlu1 %v3041_v26, 256  ;;  %v3048_v17 = vrot.slane %v3023_v62, %v5347_v11  ;;  %v3055_v21 = vrot.slane %v3024_v52, %v5347_v11  ;;  %v3062_v61 = vrot.slane %v3025_v23, %v5347_v11 }
 0x82a   : > { %v3069_v12 = vrot.slane %v3026_v56, %v5347_v11  ;;  %v3076_v60 = vrot.slane %v3027_v59, %v5347_v11  ;;  %v3083_v42 = vrot.slane %v3028_v16, %v5347_v11  ;;  %v3090_v14 = vrot.slane %v3029_v44, %v5347_v11 }
 0x82b   : > { %3050 = vbcast.lane.b32.xlu0 %v3048_v17, 256 }
 0x82f   : > { %3057 = vbcast.lane.b32.xlu0 %v3055_v21, 256 }
 0x833   : > { %3064 = vbcast.lane.b32.xlu0 %v3062_v61, 256  ;;  %v3822_v61 = vld [vmem:[%s3994_s14 + $0x28] sm:$0xff] }
 0x837   : > { %3071 = vbcast.lane.b32.xlu0 %v3069_v12, 256 }
 0x839   : > { %v2987_v9 = vpop.xlane.xlu0 %2986 }
 0x83a   : > { %3815 = vrcp.f32 %v2987_v9 }
 0x83b   : > { %3078 = vbcast.lane.b32.xlu0 %v3076_v60, 256 }
 0x83f   : > { %3085 = vbcast.lane.b32.xlu0 %v3083_v42, 256  ;;  %v3823_v42 = vld [vmem:[%s3994_s14 + $0x30] sm:$0xff] }
 0x843   : > { %3092 = vbcast.lane.b32.xlu0 %v3090_v14, 256 }
 0x844   : > { %v3816_v6 = vpop.eup %3815 }
 0x845   : > { %v3030_v39 = vmul.f32 %v3816_v6, %v5315_v10  ;;  %v2999_v1 = vrot.slane %v3816_v6, 1  ;;  %v3000_v29 = vrot.slane %v3816_v6, 2  ;;  %v3001_v20 = vrot.slane %v3816_v6, 3 }
 0x846   : > { %v3002_v28 = vrot.slane %v3816_v6, 4  ;;  %v3003_v25 = vrot.slane %v3816_v6, 5  ;;  %v3005_v43 = vrot.slane %v3816_v6, 7 }
 0x847   : > { %v3097_v47 = vrot.slane %v3030_v39, %v5347_v11  ;;  %v3031_v27 = vmul.f32 %v5317_v41, %v2999_v1  ;;  %v3032_v49 = vmul.f32 %v5319_v51, %v3000_v29  ;;  %v3033_v54 = vmul.f32 %v5322_v34, %v3001_v20 }
 0x848   : > { %v3034_v31 = vmul.f32 %v5325_v35, %v3002_v28  ;;  %v3035_v5 = vmul.f32 %v5330_v7, %v3003_v25  ;;  %v3004_v51 = vrot.slane %v3816_v6, 6  ;;  %v3037_v35 = vmul.f32 %v5338_v13, %v3005_v43 }
 0x849   : > { %3099 = vbcast.lane.b32.xlu1 %v3097_v47, 256  ;;  %v3104_v22 = vrot.slane %v3031_v27, %v5347_v11  ;;  %v3111_v58 = vrot.slane %v3032_v49, %v5347_v11  ;;  %v3118_v10 = vrot.slane %v3033_v54, %v5347_v11 }
 0x84a   : > { %v3125_v41 = vrot.slane %v3034_v31, %v5347_v11  ;;  %v3132_v19 = vrot.slane %v3035_v5, %v5347_v11  ;;  %v3036_v34 = vmul.f32 %v5334_v24, %v3004_v51  ;;  %v3146_v38 = vrot.slane %v3037_v35, %v5347_v11  ;;  %v3819_v24 = vld [vmem:[%s3994_s14] sm:$0xff] }
 0x84c   : > { %v3139_v40 = vrot.slane %v3036_v34, %v5347_v11 }
 0x84d   : > { %3106 = vbcast.lane.b32.xlu1 %v3104_v22, 256 }
 0x851   : > { %3113 = vbcast.lane.b32.xlu1 %v3111_v58, 256  ;;  %v3824_v58 = vld [vmem:[%s3994_s14 + $0x38] sm:$0xff] }
 0x855   : > { %3120 = vbcast.lane.b32.xlu1 %v3118_v10, 256 }
 0x859   : > { %3127 = vbcast.lane.b32.xlu1 %v3125_v41, 256 }
 0x85d   : > { %3134 = vbcast.lane.b32.xlu1 %v3132_v19, 256 }
 0x861   : > { %3141 = vbcast.lane.b32.xlu1 %v3139_v40, 256 }
 0x865   : > { %3148 = vbcast.lane.b32.xlu1 %v3146_v38, 256 }
 0x89b   : > { %v3044_v55 = vpop.permute.xlu1 %3043 }
 0x89c   : > { %v3150_v4 = vmul.f32 %v3819_v24, %v3044_v55 }
 0x89d   : > { %v3051_v7 = vpop.permute.xlu0 %3050 }
 0x89e   : > { %v3151_v48 = vmul.f32 %v3817_v2, %v3051_v7  ;;  %v3166_v32 = vrot.slane %v3150_v4, 4 }
 0x8a0   : > { %v3172_v30 = vrot.slane %v3151_v48, 4  ;;  %v3167_v17 = vadd.f32 %v3166_v32, %v3150_v4  ;;  %v3825_v32 = vld [vmem:[%s3994_s14 + $0x48] sm:$0xff] }
 0x8a1   : > { %v3058_v15 = vpop.permute.xlu0 %3057 }
 0x8a2   : > { %v3152_v50 = vmul.f32 %v3818_v63, %v3058_v15  ;;  %v3173_v0 = vadd.f32 %v3172_v30, %v3151_v48  ;;  %v3168_v12 = vrot.slane %v3167_v17, 2 }
 0x8a4   : > { %v3178_v13 = vrot.slane %v3152_v50, 4  ;;  %v3174_v23 = vrot.slane %v3173_v0, 2  ;;  %v3169_v14 = vadd.f32 %v3168_v12, %v3167_v17  ;;  %v3827_v17 = vld [vmem:[%s3994_s14 + $0x40] sm:$0xff] }
 0x8a5   : > { %v3065_v46 = vpop.permute.xlu0 %3064 }
 0x8a6   : > { %v3153_v18 = vmul.f32 %v3820_v33, %v3065_v46  ;;  %v3179_v62 = vadd.f32 %v3178_v13, %v3152_v50  ;;  %v3175_v16 = vadd.f32 %v3174_v23, %v3173_v0  ;;  %v3170_v10 = vrot.slane %v3169_v14, 1 }
 0x8a8   : > { %v3184_v45 = vrot.slane %v3153_v18, 4  ;;  %v3180_v8 = vrot.slane %v3179_v62, 2  ;;  %v3176_v22 = vrot.slane %v3175_v16, 1  ;;  %v3171_v38 = vadd.f32 %v3170_v10, %v3169_v14  ;;  %v3831_v10 = vld [vmem:[%s3994_s14 + $0x70] sm:$0xff] }
 0x8a9   : > { %v3072_v11 = vpop.permute.xlu0 %3071 }
 0x8aa   : > { %v3154_v26 = vmul.f32 %v3821_v57, %v3072_v11  ;;  %v3185_v52 = vadd.f32 %v3184_v45, %v3153_v18  ;;  %v3181_v6 = vadd.f32 %v3180_v8, %v3179_v62  ;;  %v3177_v19 = vadd.f32 %v3176_v22, %v3175_v16  ;;  %v3826_v57 = vld [vmem:[%s3994_s14 + $0x50] sm:$0xff] }
 0x8ac   : > { %v3190_v53 = vrot.slane %v3154_v26, 4  ;;  %v3186_v59 = vrot.slane %v3185_v52, 2  ;;  %v3182_v28 = vrot.slane %v3181_v6, 1  ;;  %v3278_v63 = vsel %vm2814_vm7, %v3177_v19, %v3171_v38 }
 0x8ad   : > { %v3079_v21 = vpop.permute.xlu0 %3078 }
 0x8ae   : > { %v3191_v3 = vadd.f32 %v3190_v53, %v3154_v26  ;;  %v3155_v56 = vmul.f32 %v3822_v61, %v3079_v21  ;;  %v3187_v39 = vadd.f32 %v3186_v59, %v3185_v52  ;;  %v3183_v35 = vadd.f32 %v3182_v28, %v3181_v6 }
 0x8b0   : > { %v3196_v37 = vrot.slane %v3155_v56, 4  ;;  %v3192_v9 = vrot.slane %v3191_v3, 2  ;;  %v3188_v31 = vrot.slane %v3187_v39, 1  ;;  %v3279_v4 = vsel %vm2817_vm8, %v3183_v35, %v3278_v63 }
 0x8b1   : > { %v3086_v60 = vpop.permute.xlu0 %3085 }
 0x8b2   : > { %v3197_v36 = vadd.f32 %v3196_v37, %v3155_v56  ;;  %v3156_v44 = vmul.f32 %v3823_v42, %v3086_v60  ;;  %v3193_v27 = vadd.f32 %v3192_v9, %v3191_v3  ;;  %v3189_v7 = vadd.f32 %v3188_v31, %v3187_v39  ;;  %v3828_v3 = vld [vmem:[%s3994_s14 + $0x58] sm:$0xff]  ;;  %v3829_v9 = vld [vmem:[%s3994_s14 + $0x60] sm:$0xff] }
 0x8b4   : > { %v3198_v1 = vrot.slane %v3197_v36, 2  ;;  %v3202_v47 = vrot.slane %v3156_v44, 4  ;;  %v3194_v51 = vrot.slane %v3193_v27, 1  ;;  %v3280_v30 = vsel %vm2820_vm12, %v3189_v7, %v3279_v4  ;;  %v3832_v7 = vld [vmem:[%s3994_s14 + $0x78] sm:$0xff] }
 0x8b5   : > { %v3093_v29 = vpop.permute.xlu0 %3092 }
 0x8b6   : > { %v3199_v49 = vadd.f32 %v3198_v1, %v3197_v36  ;;  %v3203_v20 = vadd.f32 %v3202_v47, %v3156_v44  ;;  %v3157_v54 = vmul.f32 %v3824_v58, %v3093_v29  ;;  %v3195_v48 = vadd.f32 %v3194_v51, %v3193_v27  ;;  %v3830_v1 = vld [vmem:[%s3994_s14 + $0x68] sm:$0xff]  ;;  %s3472_s14 = sshll.u32 %s3943_s13, 8  ;;  %s5429_s13 = scalar_lea.sflag [#allocation3], %s135_s29 }
 0x8b7   : > { %s5420_s7 = scalar_lea.hbm %s5473_s2, %s3472_s14 }
 0x8b8   : > { %v3204_v25 = vrot.slane %v3203_v20, 2  ;;  %v3208_v41 = vrot.slane %v3157_v54, 4  ;;  %v3200_v34 = vrot.slane %v3199_v49, 1  ;;  %v3281_v13 = vsel %vm2823_vm13, %v3195_v48, %v3280_v30 }
 0x8ba   : > { %v3205_v43 = vadd.f32 %v3204_v25, %v3203_v20  ;;  %v3209_v40 = vadd.f32 %v3208_v41, %v3157_v54  ;;  %v3201_v50 = vadd.f32 %v3200_v34, %v3199_v49 }
 0x8bb   : > { %v3100_v5 = vpop.permute.xlu1 %3099 }
 0x8bc   : > { %v3206_v55 = vrot.slane %v3205_v43, 1  ;;  %v3210_v15 = vrot.slane %v3209_v40, 2  ;;  %v3282_v11 = vsel %vm2826_vm2, %v3201_v50, %v3281_v13  ;;  %v3158_v52 = vmul.f32 %v3827_v17, %v3100_v5 }
 0x8be   : > { %v3211_v24 = vadd.f32 %v3210_v15, %v3209_v40  ;;  %v3207_v46 = vadd.f32 %v3206_v55, %v3205_v43  ;;  %v3214_v8 = vrot.slane %v3158_v52, 4 }
 0x8bf   : > { %v3107_v2 = vpop.permute.xlu1 %3106 }
 0x8c0   : > { %v3212_v33 = vrot.slane %v3211_v24, 1  ;;  %v3159_v45 = vmul.f32 %v3825_v32, %v3107_v2  ;;  %v3283_v62 = vsel %vm2829_vm4, %v3207_v46, %v3282_v11  ;;  %v3215_v36 = vadd.f32 %v3214_v8, %v3158_v52 }
 0x8c2   : > { %v3213_v0 = vadd.f32 %v3212_v33, %v3211_v24  ;;  %v3220_v23 = vrot.slane %v3159_v45, 4  ;;  %v3216_v29 = vrot.slane %v3215_v36, 2 }
 0x8c3   : > { %v3114_v18 = vpop.permute.xlu1 %3113 }
 0x8c4   : > { %v3160_v26 = vmul.f32 %v3826_v57, %v3114_v18  ;;  %v3284_v53 = vsel %vm2832_vm15, %v3213_v0, %v3283_v62  ;;  %v3221_v37 = vadd.f32 %v3220_v23, %v3159_v45  ;;  %v3217_v41 = vadd.f32 %v3216_v29, %v3215_v36 }
 0x8c5   : > { %3294 = vst [vmem:[%s5403_s3] sm:$0xff] %v3284_v53 }
 0x8c6   : > { %v3226_v56 = vrot.slane %v3160_v26, 4  ;;  %v3222_v14 = vrot.slane %v3221_v37, 2  ;;  %v3218_v2 = vrot.slane %v3217_v41, 1 }
 0x8c7   : > { %v3121_v21 = vpop.permute.xlu1 %3120 }
 0x8c8   : > { %v3161_v61 = vmul.f32 %v3828_v3, %v3121_v21  ;;  %v3227_v16 = vadd.f32 %v3226_v56, %v3160_v26  ;;  %v3223_v54 = vadd.f32 %v3222_v14, %v3221_v37  ;;  %v3219_v13 = vadd.f32 %v3218_v2, %v3217_v41 }
 0x8ca   : > { %v3232_v12 = vrot.slane %v3161_v61, 4  ;;  %v3228_v27 = vrot.slane %v3227_v16, 2  ;;  %v3224_v40 = vrot.slane %v3223_v54, 1 }
 0x8cb   : > { %v3128_v59 = vpop.permute.xlu1 %3127 }
 0x8cc   : > { %v3162_v60 = vmul.f32 %v3829_v9, %v3128_v59  ;;  %v3233_v42 = vadd.f32 %v3232_v12, %v3161_v61  ;;  %v3229_v25 = vadd.f32 %v3228_v27, %v3227_v16  ;;  %v3225_v4 = vadd.f32 %v3224_v40, %v3223_v54 }
 0x8ce   : > { %v3238_v44 = vrot.slane %v3162_v60, 4  ;;  %v3234_v22 = vrot.slane %v3233_v42, 2  ;;  %v3230_v15 = vrot.slane %v3229_v25, 1  ;;  %v3285_v57 = vsel %vm2814_vm7, %v3225_v4, %v3219_v13 }
 0x8cf   : > { %v3135_v6 = vpop.permute.xlu1 %3134 }
 0x8d0   : > { %v3239_v39 = vadd.f32 %v3238_v44, %v3162_v60  ;;  %v3163_v47 = vmul.f32 %v3830_v1, %v3135_v6  ;;  %v3235_v5 = vadd.f32 %v3234_v22, %v3233_v42  ;;  %v3231_v18 = vadd.f32 %v3230_v15, %v3229_v25 }
 0x8d2   : > { %v3244_v49 = vrot.slane %v3163_v47, 4  ;;  %v3240_v20 = vrot.slane %v3239_v39, 2  ;;  %v3236_v48 = vrot.slane %v3235_v5, 1  ;;  %v3286_v17 = vsel %vm2817_vm8, %v3231_v18, %v3285_v57 }
 0x8d3   : > { %v3142_v58 = vpop.permute.xlu1 %3141 }
 0x8d4   : > { %v3245_v28 = vadd.f32 %v3244_v49, %v3163_v47  ;;  %v3164_v31 = vmul.f32 %v3831_v10, %v3142_v58  ;;  %v3241_v34 = vadd.f32 %v3240_v20, %v3239_v39  ;;  %v3237_v32 = vadd.f32 %v3236_v48, %v3235_v5 }
 0x8d6   : > { %v3246_v51 = vrot.slane %v3245_v28, 2  ;;  %v3250_v19 = vrot.slane %v3164_v31, 4  ;;  %v3242_v24 = vrot.slane %v3241_v34, 1  ;;  %v3287_v53 = vsel %vm2820_vm12, %v3237_v32, %v3286_v17 }
 0x8d7   : > { %v3149_v43 = vpop.permute.xlu1 %3148 }
 0x8d8   : > { %v3247_v35 = vadd.f32 %v3246_v51, %v3245_v28  ;;  %v3251_v38 = vadd.f32 %v3250_v19, %v3164_v31  ;;  %v3165_v55 = vmul.f32 %v3832_v7, %v3149_v43  ;;  %v3243_v0 = vadd.f32 %v3242_v24, %v3241_v34 }
 0x8da   : > { %v3252_v63 = vrot.slane %v3251_v38, 2  ;;  %v3256_v50 = vrot.slane %v3165_v55, 4  ;;  %v3248_v46 = vrot.slane %v3247_v35, 1  ;;  %v3288_v23 = vsel %vm2823_vm13, %v3243_v0, %v3287_v53 }
 0x8dc   : > { %v3253_v30 = vadd.f32 %v3252_v63, %v3251_v38  ;;  %v3257_v33 = vadd.f32 %v3256_v50, %v3165_v55  ;;  %v3249_v26 = vadd.f32 %v3248_v46, %v3247_v35 }
 0x8de   : > { %v3254_v45 = vrot.slane %v3253_v30, 1  ;;  %v3258_v11 = vrot.slane %v3257_v33, 2  ;;  %v3289_v3 = vsel %vm2826_vm2, %v3249_v26, %v3288_v23 }
 0x8e0   : > { %v3259_v62 = vadd.f32 %v3258_v11, %v3257_v33  ;;  %v3255_v52 = vadd.f32 %v3254_v45, %v3253_v30 }
 0x8e2   : > { %v3260_v21 = vrot.slane %v3259_v62, 1  ;;  %v3290_v56 = vsel %vm2829_vm4, %v3255_v52, %v3289_v3 }
 0x8e4   : > { %v3261_v61 = vadd.f32 %v3260_v21, %v3259_v62 }
 0x8e6   : > { %v3291_v8 = vsel %vm2832_vm15, %v3261_v61, %v3290_v56 }
 0x8e7   : > { %3295 = vst [vmem:[%s5403_s3 + $0x8] sm:$0xff] %v3291_v8 }
 0x8e8   : > { %3846 = shalt.err (!%p3843_p3)
}
 0x8e9   : > { %s3847_s22 = scalar_lea.hbm %s5420_s7, 256  ;;  %s3851_s25 = scalar_lea.hbm %s5473_s2, 512 }
 0x8ea   : > { %p3848_p4 = scmp.ne.s32.totalorder %s5420_s7, %s3847_s22  ;;  %p3852_p9 = scmp.lt.u32.totalorder %s5420_s7, %s5473_s2 }
 0x8eb   : > { %p3853_p10 = scmp.lt.u32.totalorder %s3851_s25, %s3847_s22  ;;  %p3855_p12 = scmp.lt.u32.totalorder %s3847_s22, %s5420_s7 }
 0x8ec   : > { %p3849_p7 = pnand %p3848_p4, %p3960_p5 }
 0x8ed   : > { %p3854_p11 = por %p3853_p10, %p3852_p9 }
 0x8ee   : > { %p3850_p8 = pneg %p3849_p7 }
 0x8ef   : > { %p3856_p13 = por %p3855_p12, %p3854_p11 }
 0x8f1   : > { %p3857_p0 = pnand %p3856_p13, %p3850_p8 }
 0x8f3   : > { %3860 = shalt.err (!%p3857_p0)
}
 0x8f4   : > { %s3906_s29 = smov 128  }
 0x8f5   : > { %3733 = dma.vmem_to_hbm [thread:$0]  (%p3960_p5), %s5423_s4, 256, %s5420_s7, %s5429_s13, %s3906_s29, %s3906_s29, %s3901_s27  }
 0x8f6 PF: > { %p3739_p1 = scmp.ge.s32.totalorder %s3895_s12, 2  ;;  %s3325_s30 = sand.u32 1, %s3883_s9  }
 0x8f7   : > { %s3326_s3 = scalar_lea.sflag [#allocation3], %s3325_s30 }
 0x8f8   : > { %p3736_p2 = pnand %p3739_p1, %p3964_p6 }
 0x8fa   : > { %3878 = dma.done.wait (!%p3736_p2), %s3326_s3, 256  }
 0x8fb   : > { %3880 = vsyncadd (!%p3736_p2), %s3326_s3, 4294967040  ;;  %p12_p3 = scmp.ge.s32.totalorder %s3947_s15, 4   ;;  %s5476_s9 = smov %s3887_s10 }
 0x8fc   : > { %s5477_s10 = smov %s3891_s11  ;;  %s5478_s11 = smov %s3958_s18 }
 0x8fd   : > { %s5479_s12 = smov %s3947_s15  ;;  %14 = sbr.rel (!%p12_p3) target bundleno = 3 (0x3), region = 63 }
 0x904   :  { %3331 = vsyncpa [#allocation3], 1 }
 0x905   :  { %3333 = vsyncpa [#allocation3 + $0x1], 1 }

</bundles_post_ra>
